<compile_context>
chip_gen: v7x
topology: tpu7x:2x2x1
jax: 0.10.0
libtpu: 0.0.40
codegen_flags: <defaults>
</compile_context>

<pallas_src>
import numpy as np
import jax
import jax.numpy as jnp
from jax.experimental import pallas as pl
from jax.experimental.pallas import tpu as pltpu


# --------------------------------------------------------------------------
# Fused Swin block kernel: LN1 -> window attention -> +res -> LN2 -> MLP -> +res
# --------------------------------------------------------------------------
def _swin_block_body(x_ref, msk_ref, p_refs, o_ref, *, num_head, n_win):
    (g1_ref, b1_ref, wq_ref, wk_ref, wv_ref, bq_ref, bk_ref, bv_ref,
     wo_ref, bo_ref, bias_ref, g2_ref, b2_ref,
     w1_ref, b1m_ref, w2_ref, b2m_ref) = p_refs

    x = x_ref[...]                                     # (M, C) f32, window-token order
    M, C = x.shape
    D = C // num_head
    WB = M // n_win                                    # windows in this row group

    # ---- LayerNorm 1 (f32 statistics) ----
    mu = jnp.mean(x, axis=-1, keepdims=True)
    xc = x - mu
    var = jnp.mean(xc * xc, axis=-1, keepdims=True)
    xn = (xc * jax.lax.rsqrt(var + 1e-5)) * g1_ref[...] + b1_ref[...]
    if msk_ref is not None:
        # Reference zero-pads AFTER norm1; zero out padded tokens so they act
        # as exact-zero keys/values inside boundary windows.
        xn = xn * msk_ref[...]
    xnb = xn.astype(jnp.bfloat16)

    # ---- QKV projections: one MXU matmul each over ALL windows.
    #      `scale` is pre-folded into wq / bq at parameter-prep time.
    # TODO(synk): when C % 128 == 0, fuse Wq/Wk/Wv into a single (C, 3C)
    # matmul and slice q/k/v at 128-aligned lane boundaries.
    q = jnp.dot(xnb, wq_ref[...], preferred_element_type=jnp.float32) + bq_ref[...]
    k = jnp.dot(xnb, wk_ref[...], preferred_element_type=jnp.float32) + bk_ref[...]
    v = jnp.dot(xnb, wv_ref[...], preferred_element_type=jnp.float32) + bv_ref[...]
    # Cast to bf16 ONCE (matmul operands only; softmax / LN stats stay f32).
    qb = q.astype(jnp.bfloat16)
    kb = k.astype(jnp.bfloat16)
    vb = v.astype(jnp.bfloat16)

    bias = bias_ref[...]                               # (num_head, N, N) f32

    # ---- per-head attention: D-wide channel slices, windows batched in a
    #      single-batch-dim einsum (contracts over D, not C) ----
    head_outs = []
    for h in range(num_head):                          # unrolled; num_head small
        lo = h * D
        qh = qb[:, lo:lo + D].reshape(WB, n_win, D)    # (WB, N, D) bf16
        kh = kb[:, lo:lo + D].reshape(WB, n_win, D)
        vh = vb[:, lo:lo + D].reshape(WB, n_win, D)
        s = jnp.einsum('wnd,wmd->wnm', qh, kh,
                       preferred_element_type=jnp.float32)      # (WB, N, N) f32
        s = s + bias[h]
        # NOTE: reference WindowAttention.forward ignores the shifted-window
        # attention mask, so it is intentionally NOT added here.
        s = s - jnp.max(s, axis=-1, keepdims=True)     # softmax in f32
        p = jnp.exp(s)
        p = p * pl.reciprocal(jnp.sum(p, axis=-1, keepdims=True), approx=True)
        head_outs.append(jnp.einsum('wnm,wmd->wnd', p.astype(jnp.bfloat16), vh,
                                    preferred_element_type=jnp.float32))
    y3 = jnp.concatenate(head_outs, axis=-1)           # (WB, N, C) f32

    # ---- output projection (single wide (M,C)x(C,C) matmul) ----
    y = jnp.dot(y3.reshape(M, C).astype(jnp.bfloat16), wo_ref[...],
                preferred_element_type=jnp.float32) + bo_ref[...]

    # ---- residual 1 (shortcut is the raw window-ordered input) ----
    x1 = x + y

    # ---- LayerNorm 2 ----
    mu2 = jnp.mean(x1, axis=-1, keepdims=True)
    xc2 = x1 - mu2
    var2 = jnp.mean(xc2 * xc2, axis=-1, keepdims=True)
    xn2 = (xc2 * jax.lax.rsqrt(var2 + 1e-5)) * g2_ref[...] + b2_ref[...]

    # ---- MLP: fc1 -> exact erf-GELU -> fc2 (hidden kept f32 for the
    #      activation math, bf16 only as the fc2 matmul operand) ----
    # TODO(synk): for production Hd = 4C, K-tile the hidden dimension with an
    # f32 accumulator scratch to keep a large Mg within v7x's 64 MiB VMEM.
    hdn = jnp.dot(xn2.astype(jnp.bfloat16), w1_ref[...],
                  preferred_element_type=jnp.float32) + b1m_ref[...]
    hdn = 0.5 * hdn * (1.0 + jax.lax.erf(hdn * 0.7071067811865476))
    mlp = jnp.dot(hdn.astype(jnp.bfloat16), w2_ref[...],
                  preferred_element_type=jnp.float32) + b2m_ref[...]

    # ---- residual 2 ----
    o_ref[...] = (x1 + mlp).astype(o_ref.dtype)


def _make_kernel(num_head, n_win, has_pad):
    def kernel(*refs):
        if has_pad:
            x_ref, msk_ref = refs[0], refs[1]
            p_refs = refs[2:-1]
        else:
            x_ref, msk_ref = refs[0], None
            p_refs = refs[1:-1]
        _swin_block_body(x_ref, msk_ref, p_refs, refs[-1],
                         num_head=num_head, n_win=n_win)
    return kernel


def _rows_per_group(n_windows, n_tokens, target_rows=1024, min_groups=2):
    """Pick the token-row group per grid step.

    * large groups (~target_rows) amortize the ~0.35us/step overhead and keep
      the MXU streams long (v5e/v6e guidance),
    * but keep >= min_groups grid steps whenever possible so the single
      "parallel" grid axis can shard across v7x's two TensorCores,
    * groups are whole windows and (unless the whole array) multiples of 8
      rows to satisfy the (8,128) block constraint.
    """
    mw = n_windows * n_tokens
    cands = []
    for wb in range(1, n_windows + 1):
        if n_windows % wb:
            continue
        rows = wb * n_tokens
        if rows != mw and rows % 8:
            continue
        cands.append(rows)
    cands.sort()
    best = None
    for rows in cands:                      # largest <= target with >= min_groups steps
        if rows <= target_rows and mw // rows >= min_groups:
            best = rows
    if best is None:
        for rows in cands:                  # largest <= target
            if rows <= target_rows:
                best = rows
    if best is None:
        best = cands[0] if cands else mw    # smallest legal group
    return best


def fused_block_pallas(xw, vw, p, num_head, ws):
    Mw, C = xw.shape
    N = ws * ws
    Hd = p["w1"].shape[1]
    Mg = _rows_per_group(Mw // N, N)
    grid = (Mw // Mg,)
    has_pad = vw is not None

    row = lambda i: (i, 0)

    def const_spec(shape):
        # Constant-index-map inputs (weights / biases / LN params / rel-pos
        # bias): single-buffer them so the resident footprint is 1x, not 2x.
        return pl.BlockSpec(shape, lambda i: (0,) * len(shape),
                            pipeline_mode=pl.Buffered(1))

    in_specs = [pl.BlockSpec((Mg, C), row)]            # xw (window-token order)
    args = [xw]
    if has_pad:
        in_specs.append(pl.BlockSpec((Mg, 1), row))    # pad validity mask
        args.append(vw)
    in_specs += [
        const_spec((1, C)),            # LN1 gamma
        const_spec((1, C)),            # LN1 beta
        const_spec((C, C)),            # Wq (bf16, scale folded in)
        const_spec((C, C)),            # Wk (bf16)
        const_spec((C, C)),            # Wv (bf16)
        const_spec((1, C)),            # bq (scale folded in)
        const_spec((1, C)),            # bk
        const_spec((1, C)),            # bv
        const_spec((C, C)),            # Wproj (bf16)
        const_spec((1, C)),            # bproj
        const_spec((num_head, N, N)),  # rel-pos bias
        const_spec((1, C)),            # LN2 gamma
        const_spec((1, C)),            # LN2 beta
        const_spec((C, Hd)),           # W1 (bf16)
        const_spec((1, Hd)),           # b1
        const_spec((Hd, C)),           # W2 (bf16)
        const_spec((1, C)),            # b2
    ]
    args += [p["g1"], p["b1"], p["wq"], p["wk"], p["wv"],
             p["bq"], p["bk"], p["bv"], p["wo"], p["bo"], p["bias"],
             p["g2"], p["b2"], p["w1"], p["bfc1"], p["w2"], p["bfc2"]]

    kernel = _make_kernel(num_head, N, has_pad)
    return pl.pallas_call(
        kernel,
        out_shape=jax.ShapeDtypeStruct((Mw, C), jnp.float32),
        grid=grid,
        in_specs=in_specs,
        out_specs=pl.BlockSpec((Mg, C), row),
        compiler_params=pltpu.CompilerParams(
            dimension_semantics=("parallel",),
            # Explicit scoped-VMEM budget: fits all generations' physical VMEM
            # (v7x 64 MiB, v5e/v6e 128 MiB); raises v5e's 16 MiB default.
            vmem_limit_bytes=64 * 1024 * 1024),
    )(*args)


# --------------------------------------------------------------------------
# JAX / numpy glue (windowing, padding, rolls, parameter setup)
# --------------------------------------------------------------------------
def relative_position_index(ws):
    h = np.arange(ws)
    w = np.arange(ws)
    coords = np.stack(np.meshgrid(h, w, indexing="ij"))            # (2, ws, ws)
    coords_flat = coords.reshape(2, -1)                            # (2, N)
    rel = coords_flat[:, :, None] - coords_flat[:, None, :]        # (2, N, N)
    rel = rel.transpose(1, 2, 0).copy()                            # (N, N, 2)
    rel[:, :, 0] += ws - 1
    rel[:, :, 1] += ws - 1
    rel[:, :, 0] *= 2 * ws - 1
    return rel.sum(-1)                                             # (N, N)


def create_mask(H, W, ws, shift):
    # Mirrors SwinTransformerLayer.create_mask (computed but unused by the
    # reference WindowAttention.forward, which ignores its mask argument).
    Hp = int(np.ceil(H / ws)) * ws
    Wp = int(np.ceil(W / ws)) * ws
    img_mask = np.zeros((1, Hp, Wp, 1), np.float32)
    slices = (slice(0, -ws), slice(-ws, -shift), slice(-shift, None))
    cnt = 0
    for hs in slices:
        for wslc in slices:
            img_mask[:, hs, wslc, :] = cnt
            cnt += 1
    mw = img_mask.reshape(1, Hp // ws, ws, Wp // ws, ws, 1)
    mw = mw.transpose(0, 1, 3, 2, 4, 5).reshape(-1, ws * ws)
    attn_mask = mw[:, None, :] - mw[:, :, None]
    attn_mask = np.where(attn_mask != 0, -100.0, 0.0).astype(np.float32)
    return attn_mask


def window_partition(x, ws):
    B, H, W, C = x.shape
    x = x.reshape(B, H // ws, ws, W // ws, ws, C)
    x = jnp.transpose(x, (0, 1, 3, 2, 4, 5))
    return x.reshape(-1, ws * ws, C)


def window_reverse(win, ws, Hp, Wp):
    C = win.shape[-1]
    B = win.shape[0] // ((Hp // ws) * (Wp // ws))
    x = win.reshape(B, Hp // ws, Wp // ws, ws, ws, C)
    x = jnp.transpose(x, (0, 1, 3, 2, 4, 5))
    return x.reshape(B, Hp, Wp, C)


def swin_block_forward(x, p, H, W, ws, num_head, shift):
    B, L, C = x.shape
    assert L == H * W
    N = ws * ws
    pad_r = (ws - W % ws) % ws
    pad_b = (ws - H % ws) % ws
    Hp, Wp = H + pad_b, W + pad_r

    xs = x.reshape(B, H, W, C)
    valid = None
    if pad_r or pad_b:
        xs = jnp.pad(xs, ((0, 0), (0, pad_b), (0, pad_r), (0, 0)))
        valid = jnp.pad(jnp.ones((B, H, W, 1), jnp.float32),
                        ((0, 0), (0, pad_b), (0, pad_r), (0, 0)))
    if shift > 0:
        xs = jnp.roll(xs, shift=(-shift, -shift), axis=(1, 2))
        if valid is not None:
            valid = jnp.roll(valid, shift=(-shift, -shift), axis=(1, 2))

    # TODO(synk): fold window partition/reverse (and ideally the rolls) into
    # the BlockSpec index_map (grid over (batch, window-row-strip)) to drop
    # the extra HBM passes between blocks; left as XLA glue at this size.
    xw = window_partition(xs, ws).reshape(-1, C)          # (B*nW*N, C)
    vw = (window_partition(valid, ws).reshape(-1, 1)
          if valid is not None else None)                 # None when no padding

    # Entire block (LN1 + attention + residual + LN2 + MLP + residual) in one
    # fused pallas_call; per-token ops commute with the window permutation.
    yw = fused_block_pallas(xw, vw, p, num_head, ws)

    y = window_reverse(yw.reshape(-1, N, C), ws, Hp, Wp)
    if shift > 0:
        y = jnp.roll(y, shift=(shift, shift), axis=(1, 2))
    if pad_r or pad_b:
        y = y[:, :H, :W, :]
    return y.reshape(B, L, C)


def swin_layer_forward(x, blocks, H, W, ws, num_head):
    shift_size = ws // 2
    _unused_attn_mask = create_mask(H, W, ws, shift_size)  # reproduced; unused (see NOTE)
    for i, blk in enumerate(blocks):
        shift = 0 if i % 2 == 0 else shift_size
        x = swin_block_forward(x, blk, H, W, ws, num_head, shift)
    # downsample=None in this configuration
    return x, H, W


def init_params(key, dim, depth, num_head, ws, mlp_ratio=4.0):
    hidden = int(dim * mlp_ratio)
    N = ws * ws
    rel_idx = relative_position_index(ws)                # numpy (N, N)
    blocks = []
    for _ in range(depth):
        key, k0, k1, k2, k3, k4 = jax.random.split(key, 6)
        table = jax.random.normal(k0, ((2 * ws - 1) ** 2, num_head), jnp.float32) * 0.02
        bias = table[jnp.asarray(rel_idx.reshape(-1))].reshape(N, N, num_head)
        bias = jnp.transpose(bias, (2, 0, 1))            # (num_head, N, N)
        blocks.append(dict(
            g1=jnp.ones((dim,), jnp.float32), b1=jnp.zeros((dim,), jnp.float32),
            wqkv=jax.random.normal(k1, (dim, 3 * dim), jnp.float32) * 0.02,
            bqkv=jnp.zeros((3 * dim,), jnp.float32),
            wproj=jax.random.normal(k2, (dim, dim), jnp.float32) * 0.02,
            bproj=jnp.zeros((dim,), jnp.float32),
            bias=bias,
            g2=jnp.ones((dim,), jnp.float32), b2=jnp.zeros((dim,), jnp.float32),
            w1=jax.random.normal(k3, (dim, hidden), jnp.float32) * 0.02,
            bfc1=jnp.zeros((hidden,), jnp.float32),
            w2=jax.random.normal(k4, (hidden, dim), jnp.float32) * 0.02,
            bfc2=jnp.zeros((dim,), jnp.float32),
        ))
    return blocks


def prepare_block_params(blk, num_head):
    # Split QKV, reshape biases to (1, C), pre-cast matmul weights to bf16
    # (f32 accumulation happens in-kernel), and fold the attention `scale`
    # into Wq / bq (one-time cost at parameter prep, not per-forward).
    C = blk["wqkv"].shape[0]
    bf = jnp.bfloat16
    scale = (C // num_head) ** (-0.5)
    wqkv, bqkv = blk["wqkv"], blk["bqkv"]
    return dict(
        g1=blk["g1"].reshape(1, C), b1=blk["b1"].reshape(1, C),
        wq=(wqkv[:, :C] * scale).astype(bf),
        wk=wqkv[:, C:2 * C].astype(bf),
        wv=wqkv[:, 2 * C:].astype(bf),
        bq=(bqkv[:C] * scale).reshape(1, C),
        bk=bqkv[C:2 * C].reshape(1, C),
        bv=bqkv[2 * C:].reshape(1, C),
        wo=blk["wproj"].astype(bf), bo=blk["bproj"].reshape(1, C),
        bias=blk["bias"],
        g2=blk["g2"].reshape(1, C), b2=blk["b2"].reshape(1, C),
        w1=blk["w1"].astype(bf), bfc1=blk["bfc1"].reshape(1, -1),
        w2=blk["w2"].astype(bf), bfc2=blk["bfc2"].reshape(1, C),
    )


if __name__ == "__main__":
    B, H, W = 2, 8, 8
    dim, depth, num_head, window_size = 32, 2, 4, 4

    key = jax.random.PRNGKey(0)
    kx, kp = jax.random.split(key)
    x = jax.random.normal(kx, (B, H * W, dim), jnp.float32)
    blocks = [prepare_block_params(b, num_head)
              for b in init_params(kp, dim, depth, num_head, window_size)]

    fwd = jax.jit(swin_layer_forward, static_argnums=(2, 3, 4, 5))
    out, Ho, Wo = fwd(x, blocks, H, W, window_size, num_head)
    out = jax.block_until_ready(out)

    assert out.shape == (B, H * W, dim)
    assert int(Ho) == H and int(Wo) == W
    assert bool(jnp.all(jnp.isfinite(out)))
    print("KERNEL_OK")
</pallas_src>

<mosaic_0001>
module attributes {stable_mosaic.version = 11 : i64} {
  func.func @kernel(%arg0: i32, %arg1: memref<64x32xf32, #tpu.memory_space<vmem>>, %arg2: memref<1x32xf32, #tpu.memory_space<vmem>>, %arg3: memref<1x32xf32, #tpu.memory_space<vmem>>, %arg4: memref<32x32xbf16, #tpu.memory_space<vmem>>, %arg5: memref<32x32xbf16, #tpu.memory_space<vmem>>, %arg6: memref<32x32xbf16, #tpu.memory_space<vmem>>, %arg7: memref<1x32xf32, #tpu.memory_space<vmem>>, %arg8: memref<1x32xf32, #tpu.memory_space<vmem>>, %arg9: memref<1x32xf32, #tpu.memory_space<vmem>>, %arg10: memref<32x32xbf16, #tpu.memory_space<vmem>>, %arg11: memref<1x32xf32, #tpu.memory_space<vmem>>, %arg12: memref<4x16x16xf32, #tpu.memory_space<vmem>>, %arg13: memref<1x32xf32, #tpu.memory_space<vmem>>, %arg14: memref<1x32xf32, #tpu.memory_space<vmem>>, %arg15: memref<32x128xbf16, #tpu.memory_space<vmem>>, %arg16: memref<1x128xf32, #tpu.memory_space<vmem>>, %arg17: memref<128x32xbf16, #tpu.memory_space<vmem>>, %arg18: memref<1x32xf32, #tpu.memory_space<vmem>>, %arg19: memref<64x32xf32, #tpu.memory_space<vmem>>) attributes {dimension_semantics = [#tpu.dimension_semantics<parallel>], iteration_bounds = array<i64: 2>, scalar_prefetch = 0 : i64, scratch_operands = 0 : i64, tpu.core_type = #tpu.core_type<tc>, window_params = [{transform_indices = @transform_0, window_bounds = array<i64: 64, 32>}, {pipeline_mode = #tpu.pipeline_mode<synchronous>, transform_indices = @transform_1, window_bounds = array<i64: 1, 32>}, {pipeline_mode = #tpu.pipeline_mode<synchronous>, transform_indices = @transform_2, window_bounds = array<i64: 1, 32>}, {pipeline_mode = #tpu.pipeline_mode<synchronous>, transform_indices = @transform_3, window_bounds = array<i64: 32, 32>}, {pipeline_mode = #tpu.pipeline_mode<synchronous>, transform_indices = @transform_4, window_bounds = array<i64: 32, 32>}, {pipeline_mode = #tpu.pipeline_mode<synchronous>, transform_indices = @transform_5, window_bounds = array<i64: 32, 32>}, {pipeline_mode = #tpu.pipeline_mode<synchronous>, transform_indices = @transform_6, window_bounds = array<i64: 1, 32>}, {pipeline_mode = #tpu.pipeline_mode<synchronous>, transform_indices = @transform_7, window_bounds = array<i64: 1, 32>}, {pipeline_mode = #tpu.pipeline_mode<synchronous>, transform_indices = @transform_8, window_bounds = array<i64: 1, 32>}, {pipeline_mode = #tpu.pipeline_mode<synchronous>, transform_indices = @transform_9, window_bounds = array<i64: 32, 32>}, {pipeline_mode = #tpu.pipeline_mode<synchronous>, transform_indices = @transform_10, window_bounds = array<i64: 1, 32>}, {pipeline_mode = #tpu.pipeline_mode<synchronous>, transform_indices = @transform_11, window_bounds = array<i64: 4, 16, 16>}, {pipeline_mode = #tpu.pipeline_mode<synchronous>, transform_indices = @transform_12, window_bounds = array<i64: 1, 32>}, {pipeline_mode = #tpu.pipeline_mode<synchronous>, transform_indices = @transform_13, window_bounds = array<i64: 1, 32>}, {pipeline_mode = #tpu.pipeline_mode<synchronous>, transform_indices = @transform_14, window_bounds = array<i64: 32, 128>}, {pipeline_mode = #tpu.pipeline_mode<synchronous>, transform_indices = @transform_15, window_bounds = array<i64: 1, 128>}, {pipeline_mode = #tpu.pipeline_mode<synchronous>, transform_indices = @transform_16, window_bounds = array<i64: 128, 32>}, {pipeline_mode = #tpu.pipeline_mode<synchronous>, transform_indices = @transform_17, window_bounds = array<i64: 1, 32>}, {transform_indices = @transform_18, window_bounds = array<i64: 64, 32>}]} {
    %c0 = arith.constant 0 : index
    %c0_0 = arith.constant 0 : index
    %0 = vector.load %arg1[%c0, %c0_0] : memref<64x32xf32, #tpu.memory_space<vmem>>, vector<64x32xf32>
    %cst = arith.constant dense<0.000000e+00> : vector<64xf32>
    %1 = vector.multi_reduction <add>, %0, %cst [1] : vector<64x32xf32> to vector<64xf32>
    %2 = vector.shape_cast %1 : vector<64xf32> to vector<64x1xf32>
    %cst_1 = arith.constant 3.200000e+01 : f32
    %3 = vector.broadcast %cst_1 : f32 to vector<64x1xf32>
    %4 = arith.divf %2, %3 : vector<64x1xf32>
    %5 = vector.broadcast %4 : vector<64x1xf32> to vector<64x32xf32>
    %6 = arith.subf %0, %5 : vector<64x32xf32>
    %7 = arith.mulf %6, %6 : vector<64x32xf32>
    %cst_2 = arith.constant dense<0.000000e+00> : vector<64xf32>
    %8 = vector.multi_reduction <add>, %7, %cst_2 [1] : vector<64x32xf32> to vector<64xf32>
    %9 = vector.shape_cast %8 : vector<64xf32> to vector<64x1xf32>
    %cst_3 = arith.constant 3.200000e+01 : f32
    %10 = vector.broadcast %cst_3 : f32 to vector<64x1xf32>
    %11 = arith.divf %9, %10 : vector<64x1xf32>
    %cst_4 = arith.constant 9.99999974E-6 : f32
    %12 = vector.broadcast %cst_4 : f32 to vector<64x1xf32>
    %13 = arith.addf %11, %12 : vector<64x1xf32>
    %14 = math.rsqrt %13 : vector<64x1xf32>
    %15 = vector.broadcast %14 : vector<64x1xf32> to vector<64x32xf32>
    %16 = arith.mulf %6, %15 : vector<64x32xf32>
    %c0_5 = arith.constant 0 : index
    %c0_6 = arith.constant 0 : index
    %17 = vector.load %arg2[%c0_5, %c0_6] : memref<1x32xf32, #tpu.memory_space<vmem>>, vector<1x32xf32>
    %18 = vector.broadcast %17 : vector<1x32xf32> to vector<64x32xf32>
    %19 = arith.mulf %16, %18 : vector<64x32xf32>
    %c0_7 = arith.constant 0 : index
    %c0_8 = arith.constant 0 : index
    %20 = vector.load %arg3[%c0_7, %c0_8] : memref<1x32xf32, #tpu.memory_space<vmem>>, vector<1x32xf32>
    %21 = vector.broadcast %20 : vector<1x32xf32> to vector<64x32xf32>
    %22 = arith.addf %19, %21 : vector<64x32xf32>
    %23 = arith.truncf %22 : vector<64x32xf32> to vector<64x32xbf16>
    %c0_9 = arith.constant 0 : index
    %c0_10 = arith.constant 0 : index
    %24 = vector.load %arg4[%c0_9, %c0_10] : memref<32x32xbf16, #tpu.memory_space<vmem>>, vector<32x32xbf16>
    %cst_11 = arith.constant dense<0.000000e+00> : vector<64x32xf32>
    %25 = tpu.matmul %23, %24, %cst_11 {dimension_numbers = #tpu.dot_dimension_numbers<[1], [0], [0], [1], [0, 0, 1, 1], [], []>} : vector<64x32xbf16>, vector<32x32xbf16>, vector<64x32xf32> -> vector<64x32xf32>
    %c0_12 = arith.constant 0 : index
    %c0_13 = arith.constant 0 : index
    %26 = vector.load %arg7[%c0_12, %c0_13] : memref<1x32xf32, #tpu.memory_space<vmem>>, vector<1x32xf32>
    %27 = vector.broadcast %26 : vector<1x32xf32> to vector<64x32xf32>
    %28 = arith.addf %25, %27 : vector<64x32xf32>
    %c0_14 = arith.constant 0 : index
    %c0_15 = arith.constant 0 : index
    %29 = vector.load %arg5[%c0_14, %c0_15] : memref<32x32xbf16, #tpu.memory_space<vmem>>, vector<32x32xbf16>
    %cst_16 = arith.constant dense<0.000000e+00> : vector<64x32xf32>
    %30 = tpu.matmul %23, %29, %cst_16 {dimension_numbers = #tpu.dot_dimension_numbers<[1], [0], [0], [1], [0, 0, 1, 1], [], []>} : vector<64x32xbf16>, vector<32x32xbf16>, vector<64x32xf32> -> vector<64x32xf32>
    %c0_17 = arith.constant 0 : index
    %c0_18 = arith.constant 0 : index
    %31 = vector.load %arg8[%c0_17, %c0_18] : memref<1x32xf32, #tpu.memory_space<vmem>>, vector<1x32xf32>
    %32 = vector.broadcast %31 : vector<1x32xf32> to vector<64x32xf32>
    %33 = arith.addf %30, %32 : vector<64x32xf32>
    %c0_19 = arith.constant 0 : index
    %c0_20 = arith.constant 0 : index
    %34 = vector.load %arg6[%c0_19, %c0_20] : memref<32x32xbf16, #tpu.memory_space<vmem>>, vector<32x32xbf16>
    %cst_21 = arith.constant dense<0.000000e+00> : vector<64x32xf32>
    %35 = tpu.matmul %23, %34, %cst_21 {dimension_numbers = #tpu.dot_dimension_numbers<[1], [0], [0], [1], [0, 0, 1, 1], [], []>} : vector<64x32xbf16>, vector<32x32xbf16>, vector<64x32xf32> -> vector<64x32xf32>
    %c0_22 = arith.constant 0 : index
    %c0_23 = arith.constant 0 : index
    %36 = vector.load %arg9[%c0_22, %c0_23] : memref<1x32xf32, #tpu.memory_space<vmem>>, vector<1x32xf32>
    %37 = vector.broadcast %36 : vector<1x32xf32> to vector<64x32xf32>
    %38 = arith.addf %35, %37 : vector<64x32xf32>
    %39 = arith.truncf %28 : vector<64x32xf32> to vector<64x32xbf16>
    %40 = arith.truncf %33 : vector<64x32xf32> to vector<64x32xbf16>
    %41 = arith.truncf %38 : vector<64x32xf32> to vector<64x32xbf16>
    %c0_24 = arith.constant 0 : index
    %c0_25 = arith.constant 0 : index
    %c0_26 = arith.constant 0 : index
    %42 = vector.load %arg12[%c0_24, %c0_25, %c0_26] : memref<4x16x16xf32, #tpu.memory_space<vmem>>, vector<4x16x16xf32>
    %43 = vector.extract_strided_slice %39 {offsets = [0, 0], sizes = [64, 8], strides = [1, 1]} : vector<64x32xbf16> to vector<64x8xbf16>
    %44 = vector.shape_cast %43 : vector<64x8xbf16> to vector<4x16x8xbf16>
    %45 = vector.extract_strided_slice %40 {offsets = [0, 0], sizes = [64, 8], strides = [1, 1]} : vector<64x32xbf16> to vector<64x8xbf16>
    %46 = vector.shape_cast %45 : vector<64x8xbf16> to vector<4x16x8xbf16>
    %47 = vector.extract_strided_slice %41 {offsets = [0, 0], sizes = [64, 8], strides = [1, 1]} : vector<64x32xbf16> to vector<64x8xbf16>
    %48 = vector.shape_cast %47 : vector<64x8xbf16> to vector<4x16x8xbf16>
    "tpu.trace_start"() <{level = 10 : i32, message = "wnd,wmd->wnm"}> : () -> ()
    %cst_27 = arith.constant dense<0.000000e+00> : vector<4x16x16xf32>
    %49 = tpu.matmul %44, %46, %cst_27 {dimension_numbers = #tpu.dot_dimension_numbers<[2], [2], [1], [1], [0, 0, 0, 1, 1, 1], [0], [0]>} : vector<4x16x8xbf16>, vector<4x16x8xbf16>, vector<4x16x16xf32> -> vector<4x16x16xf32>
    "tpu.trace_stop"() : () -> ()
    %50 = vector.extract_strided_slice %42 {offsets = [0, 0, 0], sizes = [1, 16, 16], strides = [1, 1, 1]} : vector<4x16x16xf32> to vector<1x16x16xf32>
    %51 = vector.shape_cast %50 : vector<1x16x16xf32> to vector<16x16xf32>
    %52 = vector.shape_cast %51 : vector<16x16xf32> to vector<1x16x16xf32>
    %53 = vector.broadcast %52 : vector<1x16x16xf32> to vector<4x16x16xf32>
    %54 = arith.addf %49, %53 : vector<4x16x16xf32>
    %cst_28 = arith.constant dense<0xFF800000> : vector<4x16xf32>
    %55 = vector.multi_reduction <maximumf>, %54, %cst_28 [2] : vector<4x16x16xf32> to vector<4x16xf32>
    %56 = vector.shape_cast %55 : vector<4x16xf32> to vector<4x16x1xf32>
    %57 = vector.broadcast %56 : vector<4x16x1xf32> to vector<4x16x16xf32>
    %58 = arith.subf %54, %57 : vector<4x16x16xf32>
    %59 = math.exp %58 : vector<4x16x16xf32>
    %cst_29 = arith.constant dense<0.000000e+00> : vector<4x16xf32>
    %60 = vector.multi_reduction <add>, %59, %cst_29 [2] : vector<4x16x16xf32> to vector<4x16xf32>
    %61 = vector.shape_cast %60 : vector<4x16xf32> to vector<4x16x1xf32>
    %62 = tpu.reciprocal %61 {approx = true} : vector<4x16x1xf32> -> vector<4x16x1xf32>
    %63 = vector.broadcast %62 : vector<4x16x1xf32> to vector<4x16x16xf32>
    %64 = arith.mulf %59, %63 : vector<4x16x16xf32>
    %65 = arith.truncf %64 : vector<4x16x16xf32> to vector<4x16x16xbf16>
    "tpu.trace_start"() <{level = 10 : i32, message = "wnm,wmd->wnd"}> : () -> ()
    %cst_30 = arith.constant dense<0.000000e+00> : vector<4x16x8xf32>
    %66 = tpu.matmul %65, %48, %cst_30 {dimension_numbers = #tpu.dot_dimension_numbers<[2], [1], [1], [2], [0, 0, 0, 1, 1, 2], [0], [0]>} : vector<4x16x16xbf16>, vector<4x16x8xbf16>, vector<4x16x8xf32> -> vector<4x16x8xf32>
    "tpu.trace_stop"() : () -> ()
    %67 = vector.extract_strided_slice %39 {offsets = [0, 8], sizes = [64, 8], strides = [1, 1]} : vector<64x32xbf16> to vector<64x8xbf16>
    %68 = vector.shape_cast %67 : vector<64x8xbf16> to vector<4x16x8xbf16>
    %69 = vector.extract_strided_slice %40 {offsets = [0, 8], sizes = [64, 8], strides = [1, 1]} : vector<64x32xbf16> to vector<64x8xbf16>
    %70 = vector.shape_cast %69 : vector<64x8xbf16> to vector<4x16x8xbf16>
    %71 = vector.extract_strided_slice %41 {offsets = [0, 8], sizes = [64, 8], strides = [1, 1]} : vector<64x32xbf16> to vector<64x8xbf16>
    %72 = vector.shape_cast %71 : vector<64x8xbf16> to vector<4x16x8xbf16>
    "tpu.trace_start"() <{level = 10 : i32, message = "wnd,wmd->wnm"}> : () -> ()
    %cst_31 = arith.constant dense<0.000000e+00> : vector<4x16x16xf32>
    %73 = tpu.matmul %68, %70, %cst_31 {dimension_numbers = #tpu.dot_dimension_numbers<[2], [2], [1], [1], [0, 0, 0, 1, 1, 1], [0], [0]>} : vector<4x16x8xbf16>, vector<4x16x8xbf16>, vector<4x16x16xf32> -> vector<4x16x16xf32>
    "tpu.trace_stop"() : () -> ()
    %74 = vector.extract_strided_slice %42 {offsets = [1, 0, 0], sizes = [1, 16, 16], strides = [1, 1, 1]} : vector<4x16x16xf32> to vector<1x16x16xf32>
    %75 = vector.shape_cast %74 : vector<1x16x16xf32> to vector<16x16xf32>
    %76 = vector.shape_cast %75 : vector<16x16xf32> to vector<1x16x16xf32>
    %77 = vector.broadcast %76 : vector<1x16x16xf32> to vector<4x16x16xf32>
    %78 = arith.addf %73, %77 : vector<4x16x16xf32>
    %cst_32 = arith.constant dense<0xFF800000> : vector<4x16xf32>
    %79 = vector.multi_reduction <maximumf>, %78, %cst_32 [2] : vector<4x16x16xf32> to vector<4x16xf32>
    %80 = vector.shape_cast %79 : vector<4x16xf32> to vector<4x16x1xf32>
    %81 = vector.broadcast %80 : vector<4x16x1xf32> to vector<4x16x16xf32>
    %82 = arith.subf %78, %81 : vector<4x16x16xf32>
    %83 = math.exp %82 : vector<4x16x16xf32>
    %cst_33 = arith.constant dense<0.000000e+00> : vector<4x16xf32>
    %84 = vector.multi_reduction <add>, %83, %cst_33 [2] : vector<4x16x16xf32> to vector<4x16xf32>
    %85 = vector.shape_cast %84 : vector<4x16xf32> to vector<4x16x1xf32>
    %86 = tpu.reciprocal %85 {approx = true} : vector<4x16x1xf32> -> vector<4x16x1xf32>
    %87 = vector.broadcast %86 : vector<4x16x1xf32> to vector<4x16x16xf32>
    %88 = arith.mulf %83, %87 : vector<4x16x16xf32>
    %89 = arith.truncf %88 : vector<4x16x16xf32> to vector<4x16x16xbf16>
    "tpu.trace_start"() <{level = 10 : i32, message = "wnm,wmd->wnd"}> : () -> ()
    %cst_34 = arith.constant dense<0.000000e+00> : vector<4x16x8xf32>
    %90 = tpu.matmul %89, %72, %cst_34 {dimension_numbers = #tpu.dot_dimension_numbers<[2], [1], [1], [2], [0, 0, 0, 1, 1, 2], [0], [0]>} : vector<4x16x16xbf16>, vector<4x16x8xbf16>, vector<4x16x8xf32> -> vector<4x16x8xf32>
    "tpu.trace_stop"() : () -> ()
    %91 = vector.extract_strided_slice %39 {offsets = [0, 16], sizes = [64, 8], strides = [1, 1]} : vector<64x32xbf16> to vector<64x8xbf16>
    %92 = vector.shape_cast %91 : vector<64x8xbf16> to vector<4x16x8xbf16>
    %93 = vector.extract_strided_slice %40 {offsets = [0, 16], sizes = [64, 8], strides = [1, 1]} : vector<64x32xbf16> to vector<64x8xbf16>
    %94 = vector.shape_cast %93 : vector<64x8xbf16> to vector<4x16x8xbf16>
    %95 = vector.extract_strided_slice %41 {offsets = [0, 16], sizes = [64, 8], strides = [1, 1]} : vector<64x32xbf16> to vector<64x8xbf16>
    %96 = vector.shape_cast %95 : vector<64x8xbf16> to vector<4x16x8xbf16>
    "tpu.trace_start"() <{level = 10 : i32, message = "wnd,wmd->wnm"}> : () -> ()
    %cst_35 = arith.constant dense<0.000000e+00> : vector<4x16x16xf32>
    %97 = tpu.matmul %92, %94, %cst_35 {dimension_numbers = #tpu.dot_dimension_numbers<[2], [2], [1], [1], [0, 0, 0, 1, 1, 1], [0], [0]>} : vector<4x16x8xbf16>, vector<4x16x8xbf16>, vector<4x16x16xf32> -> vector<4x16x16xf32>
    "tpu.trace_stop"() : () -> ()
    %98 = vector.extract_strided_slice %42 {offsets = [2, 0, 0], sizes = [1, 16, 16], strides = [1, 1, 1]} : vector<4x16x16xf32> to vector<1x16x16xf32>
    %99 = vector.shape_cast %98 : vector<1x16x16xf32> to vector<16x16xf32>
    %100 = vector.shape_cast %99 : vector<16x16xf32> to vector<1x16x16xf32>
    %101 = vector.broadcast %100 : vector<1x16x16xf32> to vector<4x16x16xf32>
    %102 = arith.addf %97, %101 : vector<4x16x16xf32>
    %cst_36 = arith.constant dense<0xFF800000> : vector<4x16xf32>
    %103 = vector.multi_reduction <maximumf>, %102, %cst_36 [2] : vector<4x16x16xf32> to vector<4x16xf32>
    %104 = vector.shape_cast %103 : vector<4x16xf32> to vector<4x16x1xf32>
    %105 = vector.broadcast %104 : vector<4x16x1xf32> to vector<4x16x16xf32>
    %106 = arith.subf %102, %105 : vector<4x16x16xf32>
    %107 = math.exp %106 : vector<4x16x16xf32>
    %cst_37 = arith.constant dense<0.000000e+00> : vector<4x16xf32>
    %108 = vector.multi_reduction <add>, %107, %cst_37 [2] : vector<4x16x16xf32> to vector<4x16xf32>
    %109 = vector.shape_cast %108 : vector<4x16xf32> to vector<4x16x1xf32>
    %110 = tpu.reciprocal %109 {approx = true} : vector<4x16x1xf32> -> vector<4x16x1xf32>
    %111 = vector.broadcast %110 : vector<4x16x1xf32> to vector<4x16x16xf32>
    %112 = arith.mulf %107, %111 : vector<4x16x16xf32>
    %113 = arith.truncf %112 : vector<4x16x16xf32> to vector<4x16x16xbf16>
    "tpu.trace_start"() <{level = 10 : i32, message = "wnm,wmd->wnd"}> : () -> ()
    %cst_38 = arith.constant dense<0.000000e+00> : vector<4x16x8xf32>
    %114 = tpu.matmul %113, %96, %cst_38 {dimension_numbers = #tpu.dot_dimension_numbers<[2], [1], [1], [2], [0, 0, 0, 1, 1, 2], [0], [0]>} : vector<4x16x16xbf16>, vector<4x16x8xbf16>, vector<4x16x8xf32> -> vector<4x16x8xf32>
    "tpu.trace_stop"() : () -> ()
    %115 = vector.extract_strided_slice %39 {offsets = [0, 24], sizes = [64, 8], strides = [1, 1]} : vector<64x32xbf16> to vector<64x8xbf16>
    %116 = vector.shape_cast %115 : vector<64x8xbf16> to vector<4x16x8xbf16>
    %117 = vector.extract_strided_slice %40 {offsets = [0, 24], sizes = [64, 8], strides = [1, 1]} : vector<64x32xbf16> to vector<64x8xbf16>
    %118 = vector.shape_cast %117 : vector<64x8xbf16> to vector<4x16x8xbf16>
    %119 = vector.extract_strided_slice %41 {offsets = [0, 24], sizes = [64, 8], strides = [1, 1]} : vector<64x32xbf16> to vector<64x8xbf16>
    %120 = vector.shape_cast %119 : vector<64x8xbf16> to vector<4x16x8xbf16>
    "tpu.trace_start"() <{level = 10 : i32, message = "wnd,wmd->wnm"}> : () -> ()
    %cst_39 = arith.constant dense<0.000000e+00> : vector<4x16x16xf32>
    %121 = tpu.matmul %116, %118, %cst_39 {dimension_numbers = #tpu.dot_dimension_numbers<[2], [2], [1], [1], [0, 0, 0, 1, 1, 1], [0], [0]>} : vector<4x16x8xbf16>, vector<4x16x8xbf16>, vector<4x16x16xf32> -> vector<4x16x16xf32>
    "tpu.trace_stop"() : () -> ()
    %122 = vector.extract_strided_slice %42 {offsets = [3, 0, 0], sizes = [1, 16, 16], strides = [1, 1, 1]} : vector<4x16x16xf32> to vector<1x16x16xf32>
    %123 = vector.shape_cast %122 : vector<1x16x16xf32> to vector<16x16xf32>
    %124 = vector.shape_cast %123 : vector<16x16xf32> to vector<1x16x16xf32>
    %125 = vector.broadcast %124 : vector<1x16x16xf32> to vector<4x16x16xf32>
    %126 = arith.addf %121, %125 : vector<4x16x16xf32>
    %cst_40 = arith.constant dense<0xFF800000> : vector<4x16xf32>
    %127 = vector.multi_reduction <maximumf>, %126, %cst_40 [2] : vector<4x16x16xf32> to vector<4x16xf32>
    %128 = vector.shape_cast %127 : vector<4x16xf32> to vector<4x16x1xf32>
    %129 = vector.broadcast %128 : vector<4x16x1xf32> to vector<4x16x16xf32>
    %130 = arith.subf %126, %129 : vector<4x16x16xf32>
    %131 = math.exp %130 : vector<4x16x16xf32>
    %cst_41 = arith.constant dense<0.000000e+00> : vector<4x16xf32>
    %132 = vector.multi_reduction <add>, %131, %cst_41 [2] : vector<4x16x16xf32> to vector<4x16xf32>
    %133 = vector.shape_cast %132 : vector<4x16xf32> to vector<4x16x1xf32>
    %134 = tpu.reciprocal %133 {approx = true} : vector<4x16x1xf32> -> vector<4x16x1xf32>
    %135 = vector.broadcast %134 : vector<4x16x1xf32> to vector<4x16x16xf32>
    %136 = arith.mulf %131, %135 : vector<4x16x16xf32>
    %137 = arith.truncf %136 : vector<4x16x16xf32> to vector<4x16x16xbf16>
    "tpu.trace_start"() <{level = 10 : i32, message = "wnm,wmd->wnd"}> : () -> ()
    %cst_42 = arith.constant dense<0.000000e+00> : vector<4x16x8xf32>
    %138 = tpu.matmul %137, %120, %cst_42 {dimension_numbers = #tpu.dot_dimension_numbers<[2], [1], [1], [2], [0, 0, 0, 1, 1, 2], [0], [0]>} : vector<4x16x16xbf16>, vector<4x16x8xbf16>, vector<4x16x8xf32> -> vector<4x16x8xf32>
    "tpu.trace_stop"() : () -> ()
    %139 = tpu.concatenate %66, %90, %114, %138 in 2 : vector<4x16x8xf32>, vector<4x16x8xf32>, vector<4x16x8xf32>, vector<4x16x8xf32> -> vector<4x16x32xf32>
    %140 = vector.shape_cast %139 : vector<4x16x32xf32> to vector<64x32xf32>
    %141 = arith.truncf %140 : vector<64x32xf32> to vector<64x32xbf16>
    %c0_43 = arith.constant 0 : index
    %c0_44 = arith.constant 0 : index
    %142 = vector.load %arg10[%c0_43, %c0_44] : memref<32x32xbf16, #tpu.memory_space<vmem>>, vector<32x32xbf16>
    %cst_45 = arith.constant dense<0.000000e+00> : vector<64x32xf32>
    %143 = tpu.matmul %141, %142, %cst_45 {dimension_numbers = #tpu.dot_dimension_numbers<[1], [0], [0], [1], [0, 0, 1, 1], [], []>} : vector<64x32xbf16>, vector<32x32xbf16>, vector<64x32xf32> -> vector<64x32xf32>
    %c0_46 = arith.constant 0 : index
    %c0_47 = arith.constant 0 : index
    %144 = vector.load %arg11[%c0_46, %c0_47] : memref<1x32xf32, #tpu.memory_space<vmem>>, vector<1x32xf32>
    %145 = vector.broadcast %144 : vector<1x32xf32> to vector<64x32xf32>
    %146 = arith.addf %143, %145 : vector<64x32xf32>
    %147 = arith.addf %0, %146 : vector<64x32xf32>
    %cst_48 = arith.constant dense<0.000000e+00> : vector<64xf32>
    %148 = vector.multi_reduction <add>, %147, %cst_48 [1] : vector<64x32xf32> to vector<64xf32>
    %149 = vector.shape_cast %148 : vector<64xf32> to vector<64x1xf32>
    %cst_49 = arith.constant 3.200000e+01 : f32
    %150 = vector.broadcast %cst_49 : f32 to vector<64x1xf32>
    %151 = arith.divf %149, %150 : vector<64x1xf32>
    %152 = vector.broadcast %151 : vector<64x1xf32> to vector<64x32xf32>
    %153 = arith.subf %147, %152 : vector<64x32xf32>
    %154 = arith.mulf %153, %153 : vector<64x32xf32>
    %cst_50 = arith.constant dense<0.000000e+00> : vector<64xf32>
    %155 = vector.multi_reduction <add>, %154, %cst_50 [1] : vector<64x32xf32> to vector<64xf32>
    %156 = vector.shape_cast %155 : vector<64xf32> to vector<64x1xf32>
    %cst_51 = arith.constant 3.200000e+01 : f32
    %157 = vector.broadcast %cst_51 : f32 to vector<64x1xf32>
    %158 = arith.divf %156, %157 : vector<64x1xf32>
    %cst_52 = arith.constant 9.99999974E-6 : f32
    %159 = vector.broadcast %cst_52 : f32 to vector<64x1xf32>
    %160 = arith.addf %158, %159 : vector<64x1xf32>
    %161 = math.rsqrt %160 : vector<64x1xf32>
    %162 = vector.broadcast %161 : vector<64x1xf32> to vector<64x32xf32>
    %163 = arith.mulf %153, %162 : vector<64x32xf32>
    %c0_53 = arith.constant 0 : index
    %c0_54 = arith.constant 0 : index
    %164 = vector.load %arg13[%c0_53, %c0_54] : memref<1x32xf32, #tpu.memory_space<vmem>>, vector<1x32xf32>
    %165 = vector.broadcast %164 : vector<1x32xf32> to vector<64x32xf32>
    %166 = arith.mulf %163, %165 : vector<64x32xf32>
    %c0_55 = arith.constant 0 : index
    %c0_56 = arith.constant 0 : index
    %167 = vector.load %arg14[%c0_55, %c0_56] : memref<1x32xf32, #tpu.memory_space<vmem>>, vector<1x32xf32>
    %168 = vector.broadcast %167 : vector<1x32xf32> to vector<64x32xf32>
    %169 = arith.addf %166, %168 : vector<64x32xf32>
    %170 = arith.truncf %169 : vector<64x32xf32> to vector<64x32xbf16>
    %c0_57 = arith.constant 0 : index
    %c0_58 = arith.constant 0 : index
    %171 = vector.load %arg15[%c0_57, %c0_58] : memref<32x128xbf16, #tpu.memory_space<vmem>>, vector<32x128xbf16>
    %cst_59 = arith.constant dense<0.000000e+00> : vector<64x128xf32>
    %172 = tpu.matmul %170, %171, %cst_59 {dimension_numbers = #tpu.dot_dimension_numbers<[1], [0], [0], [1], [0, 0, 1, 1], [], []>} : vector<64x32xbf16>, vector<32x128xbf16>, vector<64x128xf32> -> vector<64x128xf32>
    %c0_60 = arith.constant 0 : index
    %c0_61 = arith.constant 0 : index
    %173 = vector.load %arg16[%c0_60, %c0_61] : memref<1x128xf32, #tpu.memory_space<vmem>>, vector<1x128xf32>
    %174 = vector.broadcast %173 : vector<1x128xf32> to vector<64x128xf32>
    %175 = arith.addf %172, %174 : vector<64x128xf32>
    %cst_62 = arith.constant 5.000000e-01 : f32
    %176 = vector.broadcast %cst_62 : f32 to vector<64x128xf32>
    %177 = arith.mulf %176, %175 : vector<64x128xf32>
    %cst_63 = arith.constant 0.707106769 : f32
    %178 = vector.broadcast %cst_63 : f32 to vector<64x128xf32>
    %179 = arith.mulf %175, %178 : vector<64x128xf32>
    %180 = math.erf %179 : vector<64x128xf32>
    %cst_64 = arith.constant 1.000000e+00 : f32
    %181 = vector.broadcast %cst_64 : f32 to vector<64x128xf32>
    %182 = arith.addf %181, %180 : vector<64x128xf32>
    %183 = arith.mulf %177, %182 : vector<64x128xf32>
    %184 = arith.truncf %183 : vector<64x128xf32> to vector<64x128xbf16>
    %c0_65 = arith.constant 0 : index
    %c0_66 = arith.constant 0 : index
    %185 = vector.load %arg17[%c0_65, %c0_66] : memref<128x32xbf16, #tpu.memory_space<vmem>>, vector<128x32xbf16>
    %cst_67 = arith.constant dense<0.000000e+00> : vector<64x32xf32>
    %186 = tpu.matmul %184, %185, %cst_67 {dimension_numbers = #tpu.dot_dimension_numbers<[1], [0], [0], [1], [0, 0, 1, 1], [], []>} : vector<64x128xbf16>, vector<128x32xbf16>, vector<64x32xf32> -> vector<64x32xf32>
    %c0_68 = arith.constant 0 : index
    %c0_69 = arith.constant 0 : index
    %187 = vector.load %arg18[%c0_68, %c0_69] : memref<1x32xf32, #tpu.memory_space<vmem>>, vector<1x32xf32>
    %188 = vector.broadcast %187 : vector<1x32xf32> to vector<64x32xf32>
    %189 = arith.addf %186, %188 : vector<64x32xf32>
    %190 = arith.addf %147, %189 : vector<64x32xf32>
    %c0_70 = arith.constant 0 : index
    %c0_71 = arith.constant 0 : index
    %191 = vector.load %arg19[%c0_70, %c0_71] : memref<64x32xf32, #tpu.memory_space<vmem>>, vector<64x32xf32>
    tpu.vector_store %arg19[%c0_70, %c0_71], %190 {strides = array<i32>} : memref<64x32xf32, #tpu.memory_space<vmem>>, vector<64x32xf32>,
    return
  }
  func.func @transform_0(%arg0: i32) -> (i32, i32) {
    %c0_i32 = arith.constant 0 : i32
    %c0_i32_0 = arith.constant 0 : i32
    return %arg0, %c0_i32 : i32, i32
  }
  func.func @transform_1(%arg0: i32) -> (i32, i32) {
    %c0_i32 = arith.constant 0 : i32
    %c0_i32_0 = arith.constant 0 : i32
    %c0_i32_1 = arith.constant 0 : i32
    return %c0_i32, %c0_i32_0 : i32, i32
  }
  func.func @transform_2(%arg0: i32) -> (i32, i32) {
    %c0_i32 = arith.constant 0 : i32
    %c0_i32_0 = arith.constant 0 : i32
    %c0_i32_1 = arith.constant 0 : i32
    return %c0_i32, %c0_i32_0 : i32, i32
  }
  func.func @transform_3(%arg0: i32) -> (i32, i32) {
    %c0_i32 = arith.constant 0 : i32
    %c0_i32_0 = arith.constant 0 : i32
    %c0_i32_1 = arith.constant 0 : i32
    return %c0_i32, %c0_i32_0 : i32, i32
  }
  func.func @transform_4(%arg0: i32) -> (i32, i32) {
    %c0_i32 = arith.constant 0 : i32
    %c0_i32_0 = arith.constant 0 : i32
    %c0_i32_1 = arith.constant 0 : i32
    return %c0_i32, %c0_i32_0 : i32, i32
  }
  func.func @transform_5(%arg0: i32) -> (i32, i32) {
    %c0_i32 = arith.constant 0 : i32
    %c0_i32_0 = arith.constant 0 : i32
    %c0_i32_1 = arith.constant 0 : i32
    return %c0_i32, %c0_i32_0 : i32, i32
  }
  func.func @transform_6(%arg0: i32) -> (i32, i32) {
    %c0_i32 = arith.constant 0 : i32
    %c0_i32_0 = arith.constant 0 : i32
    %c0_i32_1 = arith.constant 0 : i32
    return %c0_i32, %c0_i32_0 : i32, i32
  }
  func.func @transform_7(%arg0: i32) -> (i32, i32) {
    %c0_i32 = arith.constant 0 : i32
    %c0_i32_0 = arith.constant 0 : i32
    %c0_i32_1 = arith.constant 0 : i32
    return %c0_i32, %c0_i32_0 : i32, i32
  }
  func.func @transform_8(%arg0: i32) -> (i32, i32) {
    %c0_i32 = arith.constant 0 : i32
    %c0_i32_0 = arith.constant 0 : i32
    %c0_i32_1 = arith.constant 0 : i32
    return %c0_i32, %c0_i32_0 : i32, i32
  }
  func.func @transform_9(%arg0: i32) -> (i32, i32) {
    %c0_i32 = arith.constant 0 : i32
    %c0_i32_0 = arith.constant 0 : i32
    %c0_i32_1 = arith.constant 0 : i32
    return %c0_i32, %c0_i32_0 : i32, i32
  }
  func.func @transform_10(%arg0: i32) -> (i32, i32) {
    %c0_i32 = arith.constant 0 : i32
    %c0_i32_0 = arith.constant 0 : i32
    %c0_i32_1 = arith.constant 0 : i32
    return %c0_i32, %c0_i32_0 : i32, i32
  }
  func.func @transform_11(%arg0: i32) -> (i32, i32, i32) {
    %c0_i32 = arith.constant 0 : i32
    %c0_i32_0 = arith.constant 0 : i32
    %c0_i32_1 = arith.constant 0 : i32
    %c0_i32_2 = arith.constant 0 : i32
    return %c0_i32, %c0_i32_0, %c0_i32_1 : i32, i32, i32
  }
  func.func @transform_12(%arg0: i32) -> (i32, i32) {
    %c0_i32 = arith.constant 0 : i32
    %c0_i32_0 = arith.constant 0 : i32
    %c0_i32_1 = arith.constant 0 : i32
    return %c0_i32, %c0_i32_0 : i32, i32
  }
  func.func @transform_13(%arg0: i32) -> (i32, i32) {
    %c0_i32 = arith.constant 0 : i32
    %c0_i32_0 = arith.constant 0 : i32
    %c0_i32_1 = arith.constant 0 : i32
    return %c0_i32, %c0_i32_0 : i32, i32
  }
  func.func @transform_14(%arg0: i32) -> (i32, i32) {
    %c0_i32 = arith.constant 0 : i32
    %c0_i32_0 = arith.constant 0 : i32
    %c0_i32_1 = arith.constant 0 : i32
    return %c0_i32, %c0_i32_0 : i32, i32
  }
  func.func @transform_15(%arg0: i32) -> (i32, i32) {
    %c0_i32 = arith.constant 0 : i32
    %c0_i32_0 = arith.constant 0 : i32
    %c0_i32_1 = arith.constant 0 : i32
    return %c0_i32, %c0_i32_0 : i32, i32
  }
  func.func @transform_16(%arg0: i32) -> (i32, i32) {
    %c0_i32 = arith.constant 0 : i32
    %c0_i32_0 = arith.constant 0 : i32
    %c0_i32_1 = arith.constant 0 : i32
    return %c0_i32, %c0_i32_0 : i32, i32
  }
  func.func @transform_17(%arg0: i32) -> (i32, i32) {
    %c0_i32 = arith.constant 0 : i32
    %c0_i32_0 = arith.constant 0 : i32
    %c0_i32_1 = arith.constant 0 : i32
    return %c0_i32, %c0_i32_0 : i32, i32
  }
  func.func @transform_18(%arg0: i32) -> (i32, i32) {
    %c0_i32 = arith.constant 0 : i32
    %c0_i32_0 = arith.constant 0 : i32
    return %arg0, %c0_i32 : i32, i32
  }
}

</mosaic_0001>

<bundles_post_ra>
// kernel: swin_layer_forward.2
= control target key start
LH: loop header
LB: loop body
LE: loop exit
PB: predicated region body
PF: predicated region fallthrough
CT: control target
= control target key end

     0   :  { %s7178_s0 = inlined_call_operand.hbm [shape: f32[128,32], index: 0, kind: input, shape index: {}]   ;;  %s7179_s1 = inlined_call_operand.hbm [shape: f32[1,32], index: 1, kind: input, shape index: {}]   ;;  %s7180_s2 = inlined_call_operand.hbm [shape: f32[1,32], index: 2, kind: input, shape index: {}]   ;;  %s7181_s3 = inlined_call_operand.hbm [shape: bf16[32,32], index: 3, kind: input, shape index: {}]   ;;  %s7182_s4 = inlined_call_operand.hbm [shape: bf16[32,32], index: 4, kind: input, shape index: {}]   ;;  %s7183_s5 = inlined_call_operand.hbm [shape: bf16[32,32], index: 5, kind: input, shape index: {}]   ;;  %s7184_s6 = inlined_call_operand.hbm [shape: f32[1,32], index: 6, kind: input, shape index: {}]   ;;  %s7185_s7 = inlined_call_operand.hbm [shape: f32[1,32], index: 7, kind: input, shape index: {}]   ;;  %s7186_s8 = inlined_call_operand.hbm [shape: f32[1,32], index: 8, kind: input, shape index: {}]   ;;  %s7187_s9 = inlined_call_operand.hbm [shape: bf16[32,32], index: 9, kind: input, shape index: {}]   ;;  %s7188_s10 = inlined_call_operand.hbm [shape: f32[1,32], index: 10, kind: input, shape index: {}]   ;;  %s7189_s11 = inlined_call_operand.hbm [shape: f32[4,16,16], index: 11, kind: input, shape index: {}]   ;;  %s7190_s12 = inlined_call_operand.hbm [shape: f32[1,32], index: 12, kind: input, shape index: {}]   ;;  %s7191_s13 = inlined_call_operand.hbm [shape: f32[1,32], index: 13, kind: input, shape index: {}]   ;;  %s7192_s14 = inlined_call_operand.hbm [shape: bf16[32,128], index: 14, kind: input, shape index: {}]   ;;  %s7193_s15 = inlined_call_operand.hbm [shape: f32[1,128], index: 15, kind: input, shape index: {}]   ;;  %s7194_s16 = inlined_call_operand.hbm [shape: bf16[128,32], index: 16, kind: input, shape index: {}]   ;;  %s7195_s17 = inlined_call_operand.hbm [shape: f32[1,32], index: 17, kind: input, shape index: {}]   ;;  %s7196_s18 = inlined_call_operand.hbm [shape: f32[128,32], index: 18, kind: output, shape index: {}]  }
   0x1   :  { %7218 = sst [smem:[#allocation49_spill]] %s7178_s0 }
   0x2   :  { %7219 = sst [smem:[#allocation50_spill]] %s7179_s1 }
   0x3   :  { %7220 = sst [smem:[#allocation51_spill]] %s7180_s2 }
   0x4   :  { %7221 = sst [smem:[#allocation52_spill]] %s7181_s3 }
   0x5   :  { %7222 = sst [smem:[#allocation53_spill]] %s7182_s4 }
   0x6   :  { %7223 = sst [smem:[#allocation54_spill]] %s7196_s18 }
   0x7   :  { %23 = vsyncpa [#allocation3], 0 }
   0x8   :  { %25 = vsyncpa [#allocation3 + $0x1], 0 }
   0x9   :  { %26 = vsyncpa [#allocation6], 0 }
   0xa   :  { %27 = vsyncpa [#allocation9], 0 }
   0xb   :  { %28 = vsyncpa [#allocation12], 0 }
   0xc   :  { %29 = vsyncpa [#allocation15], 0 }
   0xd   :  { %30 = vsyncpa [#allocation18], 0 }
   0xe   :  { %31 = vsyncpa [#allocation21], 0 }
   0xf   :  { %32 = vsyncpa [#allocation24], 0 }
  0x10   :  { %33 = vsyncpa [#allocation27], 0 }
  0x11   :  { %34 = vsyncpa [#allocation30], 0 }
  0x12   :  { %35 = vsyncpa [#allocation4], 0 }
  0x13   :  { %37 = vsyncpa [#allocation4 + $0x1], 0  ;;  %s5847_s27 = smov 0   ;;  %s5849_s28 = smov 0  }
  0x14   :  { %s5851_s29 = smov 0   ;;  %s5853_s30 = smov 0  }
  0x15 LB: > { %7224 = sst [smem:[#allocation43_spill]] %s5706_s27  ;;  %s5720_s0 = smov [#allocation5]   ;;  %s5718_s30 = sphi %s5853_s30, %s7282_s30   ;;  %s5714_s29 = sphi %s5851_s29, %s7281_s29   ;;  %s5710_s28 = sphi %s5849_s28, %s7280_s28   ;;  %s5706_s27 = sphi %s5847_s27, %s7279_s27  }
  0x16   : > { %7225 = sst [smem:[#allocation44_spill]] %s5710_s28  ;;  %s470_s19 = sshll.u32 %s5720_s0, 4  ;;  %s5873_s19 = int_to_ptr.vmem [resolvable:$true] %s470_s19 }
  0x17   : > { %7226 = sst [smem:[#allocation45_spill]] %s5714_s29  ;;  %s5868_s1 = sadd.s32 4294967295, %s5718_s30  }
  0x18   : > { %7227 = sst [smem:[#allocation46_spill]] %s5718_s30  ;;  %p4107_p0 = scmp.ge.s32.totalorder %s5718_s30, 1 }
  0x19   : > { %7228 = sst [smem:[#allocation47_spill]] %s5868_s1  ;;  %p7210_p1 = scmp.eq.s32.totalorder %s5868_s1, 0 }
  0x1a   : > { %p457_p2 = scmp.lt.s32.totalorder %s5718_s30, 3  ;;  %s5721_s21 = smov [#allocation8]  }
  0x1b   : > { %s491_s22 = sshll.u32 %s5721_s21, 4  ;;  %s5722_s23 = smov [#allocation11]   ;;  %s5882_s22 = int_to_ptr.vmem [resolvable:$true] %s491_s22 }
  0x1c   : > { %p5875_p3 = pnand %p4107_p0, %p457_p2  ;;  %s517_s24 = sshll.u32 %s5722_s23, 4  ;;  %s5890_s24 = int_to_ptr.vmem [resolvable:$true] %s517_s24 }
  0x1d   : > { %s7232_s0 = sld [smem:[#allocation50_spill]] }
  0x1e   : > { %s7229_s20 = scalar_select %p5875_p3, 1, 0 }
  0x1f   : > { %p4690_p5 = pneg %p5875_p3 }
  0x20   : > { %7230 = sst [smem:[#allocation48_spill]] %s7229_s20 }
  0x21   : > { %p5886_p6 = pnand %p4690_p5, %p7210_p1 }
  0x23   : > { %s5110_s18 = scalar_lea.hbm %s7232_s0, 16  ;;  %p5900_p8 = pneg %p5886_p6 }
  0x24   : > { %p5111_p7 = scmp.ne.s32.totalorder %s7232_s0, %s5110_s18  ;;  %p5117_p11 = scmp.lt.u32.totalorder %s5110_s18, %s7232_s0 }
  0x26   : > { %p5113_p9 = pnand %p5900_p8, %p5111_p7 }
  0x28   : > { %p5114_p10 = pneg %p5113_p9 }
  0x2a   : > { %p5119_p12 = pnand %p5117_p11, %p5114_p10 }
  0x2c   : > { %5122 = shalt.err (!%p5119_p12)
}
  0x2d   : > { %s5123_s27 = scalar_lea.vmem %s5873_s19, 16  ;;  %s5130_s20 = scalar_lea.vmem %s5873_s19, 32 }
  0x2e   : > { %p5124_p13 = scmp.ne.s32.totalorder %s5873_s19, %s5123_s27  ;;  %p5131_p5 = scmp.lt.s32.totalorder %s5873_s19, %s5873_s19 }
  0x2f   : > { %p5132_p7 = scmp.lt.s32.totalorder %s5130_s20, %s5123_s27 }
  0x30   : > { %p5126_p0 = pnand %p5124_p13, %p5900_p8 }
  0x31   : > { %p5133_p9 = por %p5132_p7, %p5131_p5 }
  0x32   : > { %p5127_p2 = pneg %p5126_p0 }
  0x34   : > { %p5134_p4 = pnand %p5133_p9, %p5127_p2 }
  0x36   : > { %5137 = shalt.err (!%p5134_p4)
}
  0x37   : > { %4693 = dma.hbm_to_vmem [thread:$0]  (!%p5886_p6), %s7232_s0, 16, %s5873_s19, [#allocation6]  }
  0x38   : > { %s7234_s3 = sld [smem:[#allocation52_spill]] }
  0x3e   : > { %s5138_s23 = scalar_lea.hbm %s7234_s3, 256 }
  0x3f   : > { %p5139_p10 = scmp.ne.s32.totalorder %s7234_s3, %s5138_s23  ;;  %p5145_p4 = scmp.lt.u32.totalorder %s5138_s23, %s7234_s3 }
  0x41   : > { %p5141_p11 = pnand %p5139_p10, %p5900_p8 }
  0x43   : > { %p5142_p12 = pneg %p5141_p11 }
  0x45   : > { %p5147_p13 = pnand %p5145_p4, %p5142_p12 }
  0x47   : > { %5150 = shalt.err (!%p5147_p13)
}
  0x48   : > { %s5151_s19 = scalar_lea.vmem %s5882_s22, 256  ;;  %p5159_p7 = scmp.lt.s32.totalorder %s5882_s22, %s5882_s22 }
  0x49   : > { %p5152_p0 = scmp.ne.s32.totalorder %s5882_s22, %s5151_s19  ;;  %p5160_p9 = scmp.lt.s32.totalorder %s5151_s19, %s5151_s19 }
  0x4b   : > { %p5154_p2 = pnand %p5152_p0, %p5900_p8  ;;  %p5161_p10 = por %p5160_p9, %p5159_p7 }
  0x4d   : > { %p5155_p5 = pneg %p5154_p2 }
  0x4f   : > { %p5162_p11 = pnand %p5161_p10, %p5155_p5 }
  0x51   : > { %5165 = shalt.err (!%p5162_p11)
}
  0x52   : > { %s7212_s28 = smov 64   ;;  %s5724_s29 = smov 4  }
  0x53   : > { %4699 = dma.hbm_to_vmem [thread:$0]  (!%p5886_p6), %s7234_s3, 256, %s5882_s22, [#allocation9], %s7212_s28, %s7212_s28, %s5724_s29  }
  0x54   : > { %s5166_s23 = scalar_lea.hbm %s7183_s5, 256 }
  0x55   : > { %p5167_p12 = scmp.ne.s32.totalorder %s7183_s5, %s5166_s23  ;;  %p5173_p0 = scmp.lt.u32.totalorder %s5166_s23, %s7183_s5 }
  0x57   : > { %p5169_p4 = pnand %p5167_p12, %p5900_p8 }
  0x59   : > { %p5170_p13 = pneg %p5169_p4 }
  0x5b   : > { %p5175_p2 = pnand %p5173_p0, %p5170_p13 }
  0x5d   : > { %5178 = shalt.err (!%p5175_p2)
}
  0x5e   : > { %s5179_s22 = scalar_lea.vmem %s5890_s24, 256  ;;  %p5187_p10 = scmp.lt.s32.totalorder %s5890_s24, %s5890_s24 }
  0x5f   : > { %p5180_p5 = scmp.ne.s32.totalorder %s5890_s24, %s5179_s22  ;;  %p5188_p11 = scmp.lt.s32.totalorder %s5179_s22, %s5179_s22 }
  0x61   : > { %p5182_p7 = pnand %p5180_p5, %p5900_p8  ;;  %p5189_p12 = por %p5188_p11, %p5187_p10 }
  0x63   : > { %p5183_p9 = pneg %p5182_p7 }
  0x65   : > { %p5190_p4 = pnand %p5189_p12, %p5183_p9 }
  0x67   : > { %5193 = shalt.err (!%p5190_p4)
}
  0x68   : > { %4705 = dma.hbm_to_vmem [thread:$0]  (!%p5886_p6), %s7183_s5, 256, %s5890_s24, [#allocation12], %s7212_s28, %s7212_s28, %s5724_s29  }
  0x69   : > { %s5725_s1 = smov [#allocation14]   ;;  %s5726_s26 = smov [#allocation17]  }
  0x6a   : > { %s542_s25 = sshll.u32 %s5725_s1, 4  ;;  %s563_s23 = sshll.u32 %s5726_s26, 4  ;;  %s543_s25 = int_to_ptr.vmem [resolvable:$true] %s542_s25  ;;  %s564_s23 = int_to_ptr.vmem [resolvable:$true] %s563_s23 }
  0x6b   : > { %s5194_s19 = scalar_lea.hbm %s7185_s7, 16 }
  0x6c   : > { %p5195_p13 = scmp.ne.s32.totalorder %s7185_s7, %s5194_s19  ;;  %p5201_p5 = scmp.lt.u32.totalorder %s5194_s19, %s7185_s7 }
  0x6e   : > { %p5197_p0 = pnand %p5195_p13, %p5900_p8 }
  0x70   : > { %p5198_p2 = pneg %p5197_p0 }
  0x72   : > { %p5203_p7 = pnand %p5201_p5, %p5198_p2 }
  0x74   : > { %5206 = shalt.err (!%p5203_p7)
}
  0x75   : > { %s5207_s24 = scalar_lea.vmem %s543_s25, 16  ;;  %s5214_s18 = scalar_lea.vmem %s543_s25, 32 }
  0x76   : > { %p5208_p9 = scmp.ne.s32.totalorder %s543_s25, %s5207_s24  ;;  %p5215_p12 = scmp.lt.s32.totalorder %s543_s25, %s543_s25 }
  0x77   : > { %p5216_p4 = scmp.lt.s32.totalorder %s5214_s18, %s5207_s24 }
  0x78   : > { %p5210_p10 = pnand %p5208_p9, %p5900_p8 }
  0x79   : > { %p5217_p1 = por %p5216_p4, %p5215_p12 }
  0x7a   : > { %p5211_p11 = pneg %p5210_p10 }
  0x7c   : > { %p5218_p3 = pnand %p5217_p1, %p5211_p11 }
  0x7e   : > { %5221 = shalt.err (!%p5218_p3)
}
  0x7f   : > { %4711 = dma.hbm_to_vmem [thread:$0]  (!%p5886_p6), %s7185_s7, 16, %s543_s25, [#allocation15]  }
  0x80   : > { %s5222_s27 = scalar_lea.hbm %s7187_s9, 256 }
  0x81   : > { %p5223_p13 = scmp.ne.s32.totalorder %s7187_s9, %s5222_s27  ;;  %p5229_p3 = scmp.lt.u32.totalorder %s5222_s27, %s7187_s9 }
  0x83   : > { %p5225_p0 = pnand %p5223_p13, %p5900_p8 }
  0x85   : > { %p5226_p1 = pneg %p5225_p0 }
  0x87   : > { %p5231_p2 = pnand %p5229_p3, %p5226_p1 }
  0x89   : > { %5234 = shalt.err (!%p5231_p2)
}
  0x8a   : > { %s5235_s24 = scalar_lea.vmem %s564_s23, 256  ;;  %p5243_p10 = scmp.lt.s32.totalorder %s564_s23, %s564_s23 }
  0x8b   : > { %p5236_p5 = scmp.ne.s32.totalorder %s564_s23, %s5235_s24  ;;  %p5244_p11 = scmp.lt.s32.totalorder %s5235_s24, %s5235_s24 }
  0x8d   : > { %p5238_p7 = pnand %p5236_p5, %p5900_p8  ;;  %p5245_p12 = por %p5244_p11, %p5243_p10 }
  0x8f   : > { %p5239_p9 = pneg %p5238_p7 }
  0x91   : > { %p5246_p4 = pnand %p5245_p12, %p5239_p9 }
  0x93   : > { %5249 = shalt.err (!%p5246_p4)
}
  0x94   : > { %4717 = dma.hbm_to_vmem [thread:$0]  (!%p5886_p6), %s7187_s9, 256, %s564_s23, [#allocation18], %s7212_s28, %s7212_s28, %s5724_s29  }
  0x95   : > { %s5727_s3 = smov [#allocation20]   ;;  %s5250_s27 = scalar_lea.hbm %s7189_s11, 1024 }
  0x96   : > { %s587_s1 = sshll.u32 %s5727_s3, 4  ;;  %p5251_p13 = scmp.ne.s32.totalorder %s7189_s11, %s5250_s27  ;;  %s588_s1 = int_to_ptr.vmem [resolvable:$true] %s587_s1 }
  0x97   : > { %p5257_p3 = scmp.lt.u32.totalorder %s5250_s27, %s7189_s11 }
  0x98   : > { %p5253_p0 = pnand %p5251_p13, %p5900_p8 }
  0x9a   : > { %p5254_p1 = pneg %p5253_p0 }
  0x9c   : > { %p5259_p2 = pnand %p5257_p3, %p5254_p1 }
  0x9e   : > { %5262 = shalt.err (!%p5259_p2)
}
  0x9f   : > { %s5263_s23 = scalar_lea.vmem %s588_s1, 1024  ;;  %p5271_p10 = scmp.lt.s32.totalorder %s588_s1, %s588_s1 }
  0xa0   : > { %p5264_p5 = scmp.ne.s32.totalorder %s588_s1, %s5263_s23  ;;  %p5272_p11 = scmp.lt.s32.totalorder %s5263_s23, %s5263_s23 }
  0xa2   : > { %p5266_p7 = pnand %p5264_p5, %p5900_p8  ;;  %p5273_p12 = por %p5272_p11, %p5271_p10 }
  0xa4   : > { %p5267_p9 = pneg %p5266_p7 }
  0xa6   : > { %p5274_p4 = pnand %p5273_p12, %p5267_p9 }
  0xa8   : > { %5277 = shalt.err (!%p5274_p4)
}
  0xa9   : > { %s7214_s24 = smov 128   ;;  %s7215_s25 = smov 8  }
  0xaa   : > { %4723 = dma.hbm_to_vmem [thread:$0]  (!%p5886_p6), %s7189_s11, 1024, %s588_s1, [#allocation21], %s7214_s24, %s7214_s24, %s7215_s25  }
  0xab   : > { %s5730_s30 = smov [#allocation23]   ;;  %s5731_s27 = smov [#allocation26]  }
  0xac   : > { %s612_s26 = sshll.u32 %s5730_s30, 4  ;;  %s636_s20 = sshll.u32 %s5731_s27, 4  ;;  %s613_s26 = int_to_ptr.vmem [resolvable:$true] %s612_s26  ;;  %s6034_s20 = int_to_ptr.vmem [resolvable:$true] %s636_s20 }
  0xad   : > { %s5278_s0 = scalar_lea.hbm %s7191_s13, 16 }
  0xae   : > { %p5279_p13 = scmp.ne.s32.totalorder %s7191_s13, %s5278_s0  ;;  %p5285_p3 = scmp.lt.u32.totalorder %s5278_s0, %s7191_s13 }
  0xb0   : > { %p5281_p0 = pnand %p5279_p13, %p5900_p8 }
  0xb2   : > { %p5282_p1 = pneg %p5281_p0 }
  0xb4   : > { %p5287_p2 = pnand %p5285_p3, %p5282_p1 }
  0xb6   : > { %5290 = shalt.err (!%p5287_p2)
}
  0xb7   : > { %s5291_s3 = scalar_lea.vmem %s613_s26, 16  ;;  %s5298_s30 = scalar_lea.vmem %s613_s26, 32 }
  0xb8   : > { %p5292_p5 = scmp.ne.s32.totalorder %s613_s26, %s5291_s3  ;;  %p5299_p10 = scmp.lt.s32.totalorder %s613_s26, %s613_s26 }
  0xb9   : > { %p5300_p11 = scmp.lt.s32.totalorder %s5298_s30, %s5291_s3 }
  0xba   : > { %p5294_p7 = pnand %p5292_p5, %p5900_p8 }
  0xbb   : > { %p5301_p12 = por %p5300_p11, %p5299_p10 }
  0xbc   : > { %p5295_p9 = pneg %p5294_p7 }
  0xbe   : > { %p5302_p4 = pnand %p5301_p12, %p5295_p9 }
  0xc0   : > { %5305 = shalt.err (!%p5302_p4)
}
  0xc1   : > { %4729 = dma.hbm_to_vmem [thread:$0]  (!%p5886_p6), %s7191_s13, 16, %s613_s26, [#allocation24]  }
  0xc2   : > { %s5306_s0 = scalar_lea.hbm %s7193_s15, 16 }
  0xc3   : > { %p5307_p13 = scmp.ne.s32.totalorder %s7193_s15, %s5306_s0  ;;  %p5313_p3 = scmp.lt.u32.totalorder %s5306_s0, %s7193_s15 }
  0xc5   : > { %p5309_p0 = pnand %p5307_p13, %p5900_p8 }
  0xc7   : > { %p5310_p1 = pneg %p5309_p0 }
  0xc9   : > { %p5315_p2 = pnand %p5313_p3, %p5310_p1 }
  0xcb   : > { %5318 = shalt.err (!%p5315_p2)
}
  0xcc   : > { %s5319_s26 = scalar_lea.vmem %s6034_s20, 16  ;;  %s5326_s30 = scalar_lea.vmem %s6034_s20, 32 }
  0xcd   : > { %p5320_p5 = scmp.ne.s32.totalorder %s6034_s20, %s5319_s26  ;;  %p5327_p10 = scmp.lt.s32.totalorder %s6034_s20, %s6034_s20 }
  0xce   : > { %p5328_p11 = scmp.lt.s32.totalorder %s5326_s30, %s5319_s26 }
  0xcf   : > { %p5322_p7 = pnand %p5320_p5, %p5900_p8 }
  0xd0   : > { %p5329_p12 = por %p5328_p11, %p5327_p10 }
  0xd1   : > { %p5323_p9 = pneg %p5322_p7 }
  0xd3   : > { %p5330_p4 = pnand %p5329_p12, %p5323_p9 }
  0xd5   : > { %5333 = shalt.err (!%p5330_p4)
}
  0xd6   : > { %4735 = dma.hbm_to_vmem [thread:$0]  (!%p5886_p6), %s7193_s15, 16, %s6034_s20, [#allocation27]  }
  0xd7   : > { %s5732_s19 = smov [#allocation7]   ;;  %s5733_s0 = smov [#allocation10]  }
  0xd8   : > { %s481_s22 = sshll.u32 %s5732_s19, 4  ;;  %s504_s23 = sshll.u32 %s5733_s0, 4  ;;  %s482_s22 = int_to_ptr.vmem [resolvable:$true] %s481_s22  ;;  %s6078_s23 = int_to_ptr.vmem [resolvable:$true] %s504_s23 }
  0xd9   : > { %s7235_s3 = sld [smem:[#allocation51_spill]] }
  0xdf   : > { %s5334_s26 = scalar_lea.hbm %s7235_s3, 16 }
  0xe0   : > { %p5335_p13 = scmp.ne.s32.totalorder %s7235_s3, %s5334_s26  ;;  %p5341_p3 = scmp.lt.u32.totalorder %s5334_s26, %s7235_s3 }
  0xe2   : > { %p5337_p0 = pnand %p5335_p13, %p5900_p8 }
  0xe4   : > { %p5338_p1 = pneg %p5337_p0 }
  0xe6   : > { %p5343_p2 = pnand %p5341_p3, %p5338_p1 }
  0xe8   : > { %5346 = shalt.err (!%p5343_p2)
}
  0xe9   : > { %s5347_s27 = scalar_lea.vmem %s482_s22, 16  ;;  %s5354_s19 = scalar_lea.vmem %s482_s22, 32 }
  0xea   : > { %p5348_p5 = scmp.ne.s32.totalorder %s482_s22, %s5347_s27  ;;  %p5355_p10 = scmp.lt.s32.totalorder %s482_s22, %s482_s22 }
  0xeb   : > { %p5356_p11 = scmp.lt.s32.totalorder %s5354_s19, %s5347_s27 }
  0xec   : > { %p5350_p7 = pnand %p5348_p5, %p5900_p8 }
  0xed   : > { %p5357_p12 = por %p5356_p11, %p5355_p10 }
  0xee   : > { %p5351_p9 = pneg %p5350_p7 }
  0xf0   : > { %p5358_p4 = pnand %p5357_p12, %p5351_p9 }
  0xf2   : > { %5361 = shalt.err (!%p5358_p4)
}
  0xf3   : > { %4696 = dma.hbm_to_vmem [thread:$0]  (!%p5886_p6), %s7235_s3, 16, %s482_s22, [#allocation6]  }
  0xf4   : > { %s7236_s4 = sld [smem:[#allocation53_spill]] }
  0xfa   : > { %s5362_s26 = scalar_lea.hbm %s7236_s4, 256 }
  0xfb   : > { %p5363_p13 = scmp.ne.s32.totalorder %s7236_s4, %s5362_s26  ;;  %p5369_p3 = scmp.lt.u32.totalorder %s5362_s26, %s7236_s4 }
  0xfd   : > { %p5365_p0 = pnand %p5363_p13, %p5900_p8 }
  0xff   : > { %p5366_p1 = pneg %p5365_p0 }
 0x101   : > { %p5371_p2 = pnand %p5369_p3, %p5366_p1 }
 0x103   : > { %5374 = shalt.err (!%p5371_p2)
}
 0x104   : > { %s5375_s22 = scalar_lea.vmem %s6078_s23, 256  ;;  %p5383_p10 = scmp.lt.s32.totalorder %s6078_s23, %s6078_s23 }
 0x105   : > { %p5376_p5 = scmp.ne.s32.totalorder %s6078_s23, %s5375_s22  ;;  %p5384_p11 = scmp.lt.s32.totalorder %s5375_s22, %s5375_s22 }
 0x107   : > { %p5378_p7 = pnand %p5376_p5, %p5900_p8  ;;  %p5385_p12 = por %p5384_p11, %p5383_p10 }
 0x109   : > { %p5379_p9 = pneg %p5378_p7 }
 0x10b   : > { %p5386_p4 = pnand %p5385_p12, %p5379_p9 }
 0x10d   : > { %5389 = shalt.err (!%p5386_p4)
}
 0x10e   : > { %s7237_s19 = smov 64   ;;  %s5734_s18 = smov [#allocation13]  }
 0x10f   : > { %4702 = dma.hbm_to_vmem [thread:$0]  (!%p5886_p6), %s7236_s4, 256, %s6078_s23, [#allocation9], %s7237_s19, %s7237_s19, %s5724_s29  }
 0x110   : > { %s531_s1 = sshll.u32 %s5734_s18, 4  ;;  %s5735_s26 = smov [#allocation16]   ;;  %s532_s1 = int_to_ptr.vmem [resolvable:$true] %s531_s1 }
 0x111   : > { %s553_s30 = sshll.u32 %s5735_s26, 4  ;;  %s5390_s27 = scalar_lea.hbm %s7184_s6, 16  ;;  %s6124_s30 = int_to_ptr.vmem [resolvable:$true] %s553_s30 }
 0x112   : > { %p5391_p13 = scmp.ne.s32.totalorder %s7184_s6, %s5390_s27  ;;  %p5397_p3 = scmp.lt.u32.totalorder %s5390_s27, %s7184_s6 }
 0x114   : > { %p5393_p0 = pnand %p5391_p13, %p5900_p8 }
 0x116   : > { %p5394_p1 = pneg %p5393_p0 }
 0x118   : > { %p5399_p2 = pnand %p5397_p3, %p5394_p1 }
 0x11a   : > { %5402 = shalt.err (!%p5399_p2)
}
 0x11b   : > { %s5403_s0 = scalar_lea.vmem %s532_s1, 16  ;;  %s5410_s18 = scalar_lea.vmem %s532_s1, 32 }
 0x11c   : > { %p5404_p5 = scmp.ne.s32.totalorder %s532_s1, %s5403_s0  ;;  %p5411_p10 = scmp.lt.s32.totalorder %s532_s1, %s532_s1 }
 0x11d   : > { %p5412_p11 = scmp.lt.s32.totalorder %s5410_s18, %s5403_s0 }
 0x11e   : > { %p5406_p7 = pnand %p5404_p5, %p5900_p8 }
 0x11f   : > { %p5413_p12 = por %p5412_p11, %p5411_p10 }
 0x120   : > { %p5407_p9 = pneg %p5406_p7 }
 0x122   : > { %p5414_p4 = pnand %p5413_p12, %p5407_p9 }
 0x124   : > { %5417 = shalt.err (!%p5414_p4)
}
 0x125   : > { %4708 = dma.hbm_to_vmem [thread:$0]  (!%p5886_p6), %s7184_s6, 16, %s532_s1, [#allocation12]  }
 0x126   : > { %s5418_s27 = scalar_lea.hbm %s7186_s8, 16 }
 0x127   : > { %p5419_p13 = scmp.ne.s32.totalorder %s7186_s8, %s5418_s27  ;;  %p5425_p3 = scmp.lt.u32.totalorder %s5418_s27, %s7186_s8 }
 0x129   : > { %p5421_p0 = pnand %p5419_p13, %p5900_p8 }
 0x12b   : > { %p5422_p1 = pneg %p5421_p0 }
 0x12d   : > { %p5427_p2 = pnand %p5425_p3, %p5422_p1 }
 0x12f   : > { %5430 = shalt.err (!%p5427_p2)
}
 0x130   : > { %s5431_s1 = scalar_lea.vmem %s6124_s30, 16  ;;  %s5438_s18 = scalar_lea.vmem %s6124_s30, 32 }
 0x131   : > { %p5432_p5 = scmp.ne.s32.totalorder %s6124_s30, %s5431_s1  ;;  %p5439_p10 = scmp.lt.s32.totalorder %s6124_s30, %s6124_s30 }
 0x132   : > { %p5440_p11 = scmp.lt.s32.totalorder %s5438_s18, %s5431_s1 }
 0x133   : > { %p5434_p7 = pnand %p5432_p5, %p5900_p8 }
 0x134   : > { %p5441_p12 = por %p5440_p11, %p5439_p10 }
 0x135   : > { %p5435_p9 = pneg %p5434_p7 }
 0x137   : > { %p5442_p4 = pnand %p5441_p12, %p5435_p9 }
 0x139   : > { %5445 = shalt.err (!%p5442_p4)
}
 0x13a   : > { %4714 = dma.hbm_to_vmem [thread:$0]  (!%p5886_p6), %s7186_s8, 16, %s6124_s30, [#allocation15]  }
 0x13b   : > { %s5736_s28 = smov [#allocation19]   ;;  %s5737_s27 = smov [#allocation22]  }
 0x13c   : > { %s577_s20 = sshll.u32 %s5736_s28, 4  ;;  %s601_s22 = sshll.u32 %s5737_s27, 4  ;;  %s578_s20 = int_to_ptr.vmem [resolvable:$true] %s577_s20  ;;  %s6168_s22 = int_to_ptr.vmem [resolvable:$true] %s601_s22 }
 0x13d   : > { %s5446_s0 = scalar_lea.hbm %s7188_s10, 16 }
 0x13e   : > { %p5447_p13 = scmp.ne.s32.totalorder %s7188_s10, %s5446_s0  ;;  %p5453_p3 = scmp.lt.u32.totalorder %s5446_s0, %s7188_s10 }
 0x140   : > { %p5449_p0 = pnand %p5447_p13, %p5900_p8 }
 0x142   : > { %p5450_p1 = pneg %p5449_p0 }
 0x144   : > { %p5455_p2 = pnand %p5453_p3, %p5450_p1 }
 0x146   : > { %5458 = shalt.err (!%p5455_p2)
}
 0x147   : > { %s5459_s26 = scalar_lea.vmem %s578_s20, 16  ;;  %s5466_s28 = scalar_lea.vmem %s578_s20, 32 }
 0x148   : > { %p5460_p5 = scmp.ne.s32.totalorder %s578_s20, %s5459_s26  ;;  %p5467_p10 = scmp.lt.s32.totalorder %s578_s20, %s578_s20 }
 0x149   : > { %p5468_p11 = scmp.lt.s32.totalorder %s5466_s28, %s5459_s26 }
 0x14a   : > { %p5462_p7 = pnand %p5460_p5, %p5900_p8 }
 0x14b   : > { %p5469_p12 = por %p5468_p11, %p5467_p10 }
 0x14c   : > { %p5463_p9 = pneg %p5462_p7 }
 0x14e   : > { %p5470_p4 = pnand %p5469_p12, %p5463_p9 }
 0x150   : > { %5473 = shalt.err (!%p5470_p4)
}
 0x151   : > { %4720 = dma.hbm_to_vmem [thread:$0]  (!%p5886_p6), %s7188_s10, 16, %s578_s20, [#allocation18]  }
 0x152   : > { %s5474_s1 = scalar_lea.hbm %s7190_s12, 16 }
 0x153   : > { %p5475_p13 = scmp.ne.s32.totalorder %s7190_s12, %s5474_s1  ;;  %p5481_p3 = scmp.lt.u32.totalorder %s5474_s1, %s7190_s12 }
 0x155   : > { %p5477_p0 = pnand %p5475_p13, %p5900_p8 }
 0x157   : > { %p5478_p1 = pneg %p5477_p0 }
 0x159   : > { %p5483_p2 = pnand %p5481_p3, %p5478_p1 }
 0x15b   : > { %5486 = shalt.err (!%p5483_p2)
}
 0x15c   : > { %s5487_s20 = scalar_lea.vmem %s6168_s22, 16  ;;  %s5494_s28 = scalar_lea.vmem %s6168_s22, 32 }
 0x15d   : > { %p5488_p5 = scmp.ne.s32.totalorder %s6168_s22, %s5487_s20  ;;  %p5495_p10 = scmp.lt.s32.totalorder %s6168_s22, %s6168_s22 }
 0x15e   : > { %p5496_p11 = scmp.lt.s32.totalorder %s5494_s28, %s5487_s20 }
 0x15f   : > { %p5490_p7 = pnand %p5488_p5, %p5900_p8 }
 0x160   : > { %p5497_p12 = por %p5496_p11, %p5495_p10 }
 0x161   : > { %p5491_p9 = pneg %p5490_p7 }
 0x163   : > { %p5498_p4 = pnand %p5497_p12, %p5491_p9 }
 0x165   : > { %5501 = shalt.err (!%p5498_p4)
}
 0x166   : > { %4726 = dma.hbm_to_vmem [thread:$0]  (!%p5886_p6), %s7190_s12, 16, %s6168_s22, [#allocation21]  }
 0x167   : > { %s5738_s23 = smov [#allocation25]   ;;  %s5739_s1 = smov [#allocation28]  }
 0x168   : > { %s622_s0 = sshll.u32 %s5738_s23, 4  ;;  %s646_s18 = sshll.u32 %s5739_s1, 4  ;;  %s623_s0 = int_to_ptr.vmem [resolvable:$true] %s622_s0  ;;  %s6212_s18 = int_to_ptr.vmem [resolvable:$true] %s646_s18 }
 0x169   : > { %s5502_s26 = scalar_lea.hbm %s7192_s14, 256 }
 0x16a   : > { %p5503_p13 = scmp.ne.s32.totalorder %s7192_s14, %s5502_s26  ;;  %p5509_p3 = scmp.lt.u32.totalorder %s5502_s26, %s7192_s14 }
 0x16c   : > { %p5505_p0 = pnand %p5503_p13, %p5900_p8 }
 0x16e   : > { %p5506_p1 = pneg %p5505_p0 }
 0x170   : > { %p5511_p2 = pnand %p5509_p3, %p5506_p1 }
 0x172   : > { %5514 = shalt.err (!%p5511_p2)
}
 0x173   : > { %s5515_s24 = scalar_lea.vmem %s623_s0, 256  ;;  %p5523_p10 = scmp.lt.s32.totalorder %s623_s0, %s623_s0 }
 0x174   : > { %p5516_p5 = scmp.ne.s32.totalorder %s623_s0, %s5515_s24  ;;  %p5524_p11 = scmp.lt.s32.totalorder %s5515_s24, %s5515_s24 }
 0x176   : > { %p5518_p7 = pnand %p5516_p5, %p5900_p8  ;;  %p5525_p12 = por %p5524_p11, %p5523_p10 }
 0x178   : > { %p5519_p9 = pneg %p5518_p7 }
 0x17a   : > { %p5526_p4 = pnand %p5525_p12, %p5519_p9 }
 0x17c   : > { %5529 = shalt.err (!%p5526_p4)
}
 0x17d   : > { %4732 = dma.hbm_to_vmem [thread:$0]  (!%p5886_p6), %s7192_s14, 256, %s623_s0, [#allocation24], %s7237_s19, %s7237_s19, %s5724_s29  }
 0x17e   : > { %s5530_s26 = scalar_lea.hbm %s7194_s16, 1024 }
 0x17f   : > { %p5531_p13 = scmp.ne.s32.totalorder %s7194_s16, %s5530_s26  ;;  %p5537_p3 = scmp.lt.u32.totalorder %s5530_s26, %s7194_s16 }
 0x181   : > { %p5533_p0 = pnand %p5531_p13, %p5900_p8 }
 0x183   : > { %p5534_p1 = pneg %p5533_p0 }
 0x185   : > { %p5539_p2 = pnand %p5537_p3, %p5534_p1 }
 0x187   : > { %5542 = shalt.err (!%p5539_p2)
}
 0x188   : > { %s5543_s0 = scalar_lea.vmem %s6212_s18, 1024  ;;  %p5551_p10 = scmp.lt.s32.totalorder %s6212_s18, %s6212_s18 }
 0x189   : > { %p5544_p5 = scmp.ne.s32.totalorder %s6212_s18, %s5543_s0  ;;  %p5552_p11 = scmp.lt.s32.totalorder %s5543_s0, %s5543_s0 }
 0x18b   : > { %p5546_p7 = pnand %p5544_p5, %p5900_p8  ;;  %p5553_p12 = por %p5552_p11, %p5551_p10 }
 0x18d   : > { %p5547_p9 = pneg %p5546_p7 }
 0x18f   : > { %p5554_p4 = pnand %p5553_p12, %p5547_p9 }
 0x191   : > { %5557 = shalt.err (!%p5554_p4)
}
 0x192   : > { %4738 = dma.hbm_to_vmem [thread:$0]  (!%p5886_p6), %s7194_s16, 1024, %s6212_s18, [#allocation27], %s7237_s19, %s7237_s19, %s5724_s29  }
 0x193   : > { %s5740_s1 = smov [#allocation29]   ;;  %s5558_s20 = scalar_lea.hbm %s7195_s17, 16 }
 0x194   : > { %s660_s25 = sshll.u32 %s5740_s1, 4  ;;  %p5559_p13 = scmp.ne.s32.totalorder %s7195_s17, %s5558_s20  ;;  %s661_s25 = int_to_ptr.vmem [resolvable:$true] %s660_s25 }
 0x195   : > { %p5565_p3 = scmp.lt.u32.totalorder %s5558_s20, %s7195_s17 }
 0x196   : > { %p5561_p0 = pnand %p5559_p13, %p5900_p8 }
 0x198   : > { %p5562_p1 = pneg %p5561_p0 }
 0x19a   : > { %p5567_p2 = pnand %p5565_p3, %p5562_p1 }
 0x19c   : > { %5570 = shalt.err (!%p5567_p2)
}
 0x19d   : > { %s5571_s29 = scalar_lea.vmem %s661_s25, 16  ;;  %s5578_s19 = scalar_lea.vmem %s661_s25, 32 }
 0x19e   : > { %p5572_p5 = scmp.ne.s32.totalorder %s661_s25, %s5571_s29  ;;  %p5579_p10 = scmp.lt.s32.totalorder %s661_s25, %s661_s25 }
 0x19f   : > { %p5580_p11 = scmp.lt.s32.totalorder %s5578_s19, %s5571_s29 }
 0x1a0   : > { %p5574_p7 = pnand %p5572_p5, %p5900_p8 }
 0x1a1   : > { %p5581_p12 = por %p5580_p11, %p5579_p10 }
 0x1a2   : > { %p5575_p9 = pneg %p5574_p7 }
 0x1a4   : > { %p5582_p4 = pnand %p5581_p12, %p5575_p9 }
 0x1a6   : > { %5585 = shalt.err (!%p5582_p4)
}
 0x1a7   : > { %s7238_s23 = sld [smem:[#allocation46_spill]]  ;;  %s7239_s1 = sld [smem:[#allocation45_spill]] }
 0x1a8   : > { %s7240_s30 = sld [smem:[#allocation44_spill]]  ;;  %s7241_s21 = sld [smem:[#allocation43_spill]] }
 0x1a9   : > { %s7242_s26 = sld [smem:[#allocation47_spill]] }
 0x1aa   : > { %4741 = dma.hbm_to_vmem [thread:$0]  (!%p5886_p6), %s7195_s17, 16, %s661_s25, [#allocation30]  }
 0x1ad   : > { %s4106_s20 = sadd.s32 4294967294, %s7238_s23   ;;  %s6281_s2 = sadd.s32 1, %s7238_s23  }
 0x1ae   : > { %s50_s28 = sadd.s32 1, %s7239_s1  ;;  %s47_s27 = ssub.s32 %s7238_s23, %s6281_s2 }
 0x1af   : > { %p57_p8 = scmp.ne.s32.totalorder %s7239_s1, %s7240_s30  ;;  %p48_p13 = scmp.eq.s32.totalorder %s47_s27, 0 }
 0x1b0   : > { %p58_p0 = scmp.eq.s32.totalorder %s7238_s23, 0  ;;  %p63_p1 = scmp.ne.s32.totalorder %s7240_s30, %s7241_s21 }
 0x1b1   : > { %p444_p3 = scmp.eq.s32.totalorder %s7242_s26, 1  ;;  %p7243_p5 = scmp.eq.s32.totalorder %s7242_s26, 0 }
 0x1b2   : > { %s6293_s22 = scalar_select %p48_p13, %s7239_s1, %s50_s28  }
 0x1b3   : > { %p59_p2 = por %p58_p0, %p57_p8  ;;  %p6297_p7 = por %p7243_p5, %p63_p1 }
 0x1b4   : > { %p6301_p6 = por %p444_p3, %p57_p8  ;;  %p450_p9 = scmp.eq.s32.totalorder %s4106_s20, 1 }
 0x1b5   : > { %p4767_p10 = scmp.lt.s32.totalorder %s7238_s23, 2  ;;  %s671_s29 = sand.u32 1, %s7239_s1  }
 0x1b6   : > { %s7245_s25 = scalar_select %p6301_p6, 1, 0 }
 0x1b7   : > { %p6307_p11 = por %p450_p9, %p63_p1  ;;  %s4126_s18 = sshll.u32 %s671_s29, 6 }
 0x1b8   : > { %s4234_s24 = sshll.u32 %s7238_s23, 10  ;;  %s7247_s26 = sld [smem:[#allocation49_spill]] }
 0x1b9   : > { %s7246_s19 = scalar_select %p6307_p11, 1, 0 }
 0x1ba   : > { %s675_s27 = scalar_lea.vmem [#allocation2], %s4126_s18  ;;  %p6317_p12 = pnand %p4767_p10, %p59_p2 }
 0x1bb   : > { %s682_s3 = sshll.u32 %s675_s27, 4  ;;  %s6323_s23 = scalar_lea.sflag [#allocation3], %s671_s29  ;;  %s6321_s3 = int_to_ptr.vmem [resolvable:$true] %s682_s3 }
 0x1bc   : > { %p5588_p8 = pneg %p6317_p12 }
 0x1be   : > { %s6315_s28 = scalar_lea.hbm %s7247_s26, %s4234_s24  ;;  %s5591_s30 = scalar_lea.hbm %s7247_s26, 2048 }
 0x1bf   : > { %s5586_s1 = scalar_lea.hbm %s6315_s28, 1024  ;;  %p5592_p1 = scmp.lt.u32.totalorder %s6315_s28, %s7247_s26 }
 0x1c0   : > { %p5587_p4 = scmp.ne.s32.totalorder %s6315_s28, %s5586_s1  ;;  %p5593_p3 = scmp.lt.u32.totalorder %s5591_s30, %s5586_s1 }
 0x1c1   : > { %p5595_p5 = scmp.lt.u32.totalorder %s5586_s1, %s6315_s28 }
 0x1c2   : > { %p5589_p13 = pnand %p5588_p8, %p5587_p4  ;;  %p5594_p2 = por %p5593_p3, %p5592_p1 }
 0x1c4   : > { %p5590_p0 = pneg %p5589_p13  ;;  %p5596_p9 = por %p5595_p5, %p5594_p2 }
 0x1c6   : > { %p5597_p10 = pnand %p5596_p9, %p5590_p0 }
 0x1c8   : > { %5600 = shalt.err (!%p5597_p10)
}
 0x1c9   : > { %s5601_s29 = scalar_lea.vmem %s6321_s3, 1024  ;;  %s5741_s18 = smov [#allocation2]  }
 0x1ca   : > { %p5602_p4 = scmp.ne.s32.totalorder %s6321_s3, %s5601_s29  ;;  %s5606_s24 = sshll.u32 %s5741_s18, 4  ;;  %s5607_s24 = int_to_ptr.vmem [resolvable:$false] %s5606_s24 }
 0x1cb   : > { %s5608_s21 = scalar_lea.vmem %s5607_s24, 2048  ;;  %p5609_p6 = scmp.lt.s32.totalorder %s6321_s3, %s5607_s24 }
 0x1cc   : > { %p5604_p13 = pnand %p5602_p4, %p5588_p8  ;;  %p5610_p1 = scmp.lt.s32.totalorder %s5608_s21, %s5601_s29 }
 0x1ce   : > { %p5605_p11 = pneg %p5604_p13  ;;  %p5611_p3 = por %p5610_p1, %p5609_p6 }
 0x1d0   : > { %p5612_p2 = pnand %p5611_p3, %p5605_p11 }
 0x1d2   : > { %5615 = shalt.err (!%p5612_p2)
}
 0x1d3   : > { %s7249_s1 = smov 8   ;;  %s7250_s30 = smov 128  }
 0x1d4   : > { %4745 = dma.hbm_to_vmem [thread:$0]  (!%p6317_p12), %s6315_s28, 1024, %s6321_s3, %s6323_s23, %s7250_s30, %s7250_s30, %s7249_s1  }
 0x1d5   : > { %s7251_s27 = sld [smem:[#allocation48_spill]] }
 0x1db   : > { %p7252_p8 = scmp.ne.s32.totalorder %s7251_s27, 0 }
 0x1dc   : > { %s7253_s18 = sld [smem:[#allocation44_spill]] (!%p7252_p8) }
 0x1dd   : > { %694 = sbr.rel (%p7252_p8) target bundleno = 4834 (0x12e2), region = 92 }
 0x1e2   : > { %s6357_s4 = sand.u32 (!%p7252_p8), 1, %s7253_s18  }
 0x1e3   : > { %s4130_s29 = sshll.u32 (!%p7252_p8), %s6357_s4, 6  ;;  %s697_s24 = scalar_lea.sflag (!%p7252_p8), [#allocation3], %s6357_s4 }
 0x1e4   : > { %s6363_s20 = scalar_lea.vmem [#allocation2], %s4130_s29 }
 0x1e5   : > { %5661 = dma.done.wait (%p6297_p7), %s697_s24, 1024  }
 0x1e6   : > { %5663 = vsyncadd (%p6297_p7), %s697_s24, 4294966272  ;;  %s7254_s3 = sld [smem:[#allocation47_spill]] }
 0x1ec   : > { %p7255_p6 = scmp.eq.s32.totalorder %s7254_s3, 0 }
 0x1ee   : > { %5665 = dma.done.wait (%p7255_p6), [#allocation6], 32   ;;  %p7256_p11 = pmov %p7255_p6 }
 0x1ef   : > { %p7257_p12 = pmov %p7255_p6 }
 0x1f0   : > { %5667 = vsyncadd (%p7256_p11), [#allocation6], 4294967264 }
 0x1f1   : > { %5669 = dma.done.wait (%p7257_p12), [#allocation9], 512   ;;  %p7258_p0 = pmov %p7255_p6 }
 0x1f3   : > { %5671 = vsyncadd (%p7258_p0), [#allocation9], 4294966784  ;;  %p7259_p5 = pmov %p7258_p0 }
 0x1f4   : > { %p7260_p9 = pmov %p7258_p0 }
 0x1f5   : > { %5673 = dma.done.wait (%p7259_p5), [#allocation12], 272  }
 0x1f6   : > { %5675 = vsyncadd (%p7260_p9), [#allocation12], 4294967024  ;;  %p7261_p7 = pmov %p7258_p0 }
 0x1f7   : > { %p7262_p10 = pmov %p7258_p0 }
 0x1f8   : > { %5677 = dma.done.wait (%p7261_p7), [#allocation15], 32  }
 0x1f9   : > { %5679 = vsyncadd (%p7262_p10), [#allocation15], 4294967264  ;;  %p7263_p4 = pmov %p7258_p0 }
 0x1fa   : > { %p7264_p13 = pmov %p7258_p0 }
 0x1fb   : > { %5681 = dma.done.wait (%p7263_p4), [#allocation18], 272  }
 0x1fc   : > { %5683 = vsyncadd (%p7264_p13), [#allocation18], 4294967024  ;;  %p7265_p1 = pmov %p7258_p0 }
 0x1fd   : > { %p7266_p3 = pmov %p7258_p0 }
 0x1fe   : > { %5685 = dma.done.wait (%p7265_p1), [#allocation21], 1040  }
 0x1ff   : > { %5687 = vsyncadd (%p7266_p3), [#allocation21], 4294966256  ;;  %p7267_p2 = pmov %p7258_p0 }
 0x200   : > { %p7268_p8 = pmov %p7258_p0 }
 0x201   : > { %5689 = dma.done.wait (%p7267_p2), [#allocation24], 272  }
 0x202   : > { %5691 = vsyncadd (%p7268_p8), [#allocation24], 4294967024  ;;  %p7269_p6 = pmov %p7258_p0 }
 0x203   : > { %p7270_p11 = pmov %p7258_p0 }
 0x204   : > { %5693 = dma.done.wait (%p7269_p6), [#allocation27], 1040  }
 0x205   : > { %5695 = vsyncadd (%p7270_p11), [#allocation27], 4294966256  ;;  %p7271_p12 = pmov %p7258_p0 }
 0x207   : > { %5697 = dma.done.wait (%p7271_p12), [#allocation30], 16  }
 0x208   : > { %5699 = vsyncadd (%p7258_p0), [#allocation30], 4294967280  ;;  %vm832_vm0 = vcmask 261120   ;;  %v824_v0 = vld [vmem:[%s6363_s20] sm:$0xff]  ;;  %v826_v1 = vld [vmem:[%s6363_s20 + $0x10] sm:$0xff]  ;;  %vm5743_vm1 = vmmov 0  }
 0x209   : > { %v825_v2 = vld [vmem:[%s6363_s20 + $0x8] sm:$0xff]  ;;  %v833_v3 = vsel %vm832_vm0, %v824_v0, 0.0  ;;  %v839_v4 = vsel %vm832_vm0, %v826_v1, 0.0  ;;  %v827_v5 = vld [vmem:[%s6363_s20 + $0x18] sm:$0xff]  ;;  %v828_v6 = vld [vmem:[%s6363_s20 + $0x20] sm:$0xff]  ;;  %vm1268_vm2 = vcmask 64512  }
 0x20a   : > { %v829_v7 = vld [vmem:[%s6363_s20 + $0x28] sm:$0xff]  ;;  %834 = vadd.xlane.f32.xlu0 %v833_v3  ;;  %840 = vadd.xlane.f32.xlu1 %v839_v4  ;;  %v836_v8 = vsel %vm832_vm0, %v825_v2, 0.0  ;;  %v842_v9 = vsel %vm832_vm0, %v827_v5, 0.0  ;;  %v845_v10 = vsel %vm832_vm0, %v828_v6, 0.0  ;;  %v830_v12 = vld [vmem:[%s6363_s20 + $0x30] sm:$0xff]  ;;  %v831_v13 = vld [vmem:[%s6363_s20 + $0x38] sm:$0xff] }
 0x20b   : > { %v848_v11 = vsel %vm832_vm0, %v829_v7, 0.0  ;;  %v851_v14 = vsel %vm832_vm0, %v830_v12, 0.0  ;;  %v854_v15 = vsel %vm832_vm0, %v831_v13, 0.0  ;;  %v4908_v56 = vld [vmem:[#allocation8] sm:$0xff]   ;;  %v4910_v58 = vld [vmem:[#allocation8 + $0x8] sm:$0xff]   ;;  %v6461_v60 = vld [vmem:[#allocation10] sm:$0xff]  }
 0x20c   : > { %v4909_v57 = vld [vmem:[#allocation11] sm:$0xff]   ;;  %4342 = vmatprep.subr.bf16.mxu1 %v4908_v56  ;;  %v4911_v59 = vld [vmem:[#allocation11 + $0x8] sm:$0xff]   ;;  %vm1457_vm3 = vcmask 130048   ;;  %s5744_s0 = smov 120   ;;  %s5745_s28 = smov 112   ;;  %vm3302_vm4 = vcmask 195584  }
 0x20d   : > { %4366 = vmatprep.subr.bf16.mxu0 %v4909_v57  ;;  %4343 = vmatpush3.bf16.msra.mxu1 %v4908_v56  ;;  %s5746_s23 = smov 104   ;;  %s5747_s21 = smov 8  }
 0x20e   : > { %837 = vadd.xlane.f32.xlu0 %v836_v8  ;;  %843 = vadd.xlane.f32.xlu1 %v842_v9  ;;  %s5748_s1 = smov 16   ;;  %s5749_s30 = smov 24  }
 0x20f   : > { %4367 = vmatpush3.bf16.msra.mxu0 %v4909_v57  ;;  %4344 = vmatprep.subr.bf16.mxu1 %v4910_v58  ;;  %s820_s27 = scalar_lea.vmem [#allocation31], %s4130_s29  ;;  %s4235_s18 = sshll.u32 %s7254_s3, 10 }
 0x210   : > { %4368 = vmatprep.subr.bf16.mxu0 %v4911_v59  ;;  %s3871_s29 = sshll.u32 %s820_s27, 4  ;;  %p7273_p9 = scmp.ne.s32.totalorder %s7245_s25, 0  ;;  %s7131_s29 = int_to_ptr.vmem [resolvable:$true] %s3871_s29 }
 0x211   : > { %4345 = vmatpush3.bf16.msra.mxu1 %v4910_v58 }
 0x212   : > { %846 = vadd.xlane.f32.xlu0 %v845_v10  ;;  %849 = vadd.xlane.f32.xlu1 %v848_v11 }
 0x213   : > { %4369 = vmatpush3.bf16.msra.mxu0 %v4911_v59  ;;  %4354 = vmatprep.subr.bf16.mxu1 %v6461_v60 }
 0x216   : > { %852 = vadd.xlane.f32.xlu0 %v851_v14  ;;  %855 = vadd.xlane.f32.xlu1 %v854_v15 }
 0x297   : > { %v835_v16 = vpop.xlane.xlu0 %834  ;;  %v841_v17 = vpop.xlane.xlu1 %840 }
 0x298   : > { %v858_v18 = vmul.f32 0.03125, %v835_v16  ;;  %v860_v19 = vmul.f32 0.03125, %v841_v17 }
 0x29a   : > { %v6421_v20 = vsub.f32 %v824_v0, %v858_v18  ;;  %v6423_v21 = vsub.f32 %v826_v1, %v860_v19 }
 0x29b   : > { %v838_v22 = vpop.xlane.xlu0 %837  ;;  %v844_v23 = vpop.xlane.xlu1 %843 }
 0x29c   : > { %v859_v24 = vmul.f32 0.03125, %v838_v22  ;;  %v861_v25 = vmul.f32 0.03125, %v844_v23  ;;  %v874_v26 = vmul.f32 %v6421_v20, %v6421_v20  ;;  %v876_v27 = vmul.f32 %v6423_v21, %v6423_v21 }
 0x29e   : > { %v6429_v28 = vsub.f32 %v825_v2, %v859_v24  ;;  %v6431_v29 = vsub.f32 %v827_v5, %v861_v25  ;;  %v882_v30 = vsel %vm832_vm0, %v874_v26, 0.0  ;;  %v888_v33 = vsel %vm832_vm0, %v876_v27, 0.0  ;;  %v4149_v24 = vld [vmem:[#allocation5] ss:$0 sm:$0xff] }
 0x29f   : > { %883 = vadd.xlane.f32.xlu0 %v882_v30  ;;  %v847_v31 = vpop.xlane.xlu0 %846  ;;  %v850_v32 = vpop.xlane.xlu1 %849 }
 0x2a0   : > { %v862_v34 = vmul.f32 0.03125, %v847_v31  ;;  %v863_v35 = vmul.f32 0.03125, %v850_v32  ;;  %v875_v36 = vmul.f32 %v6429_v28, %v6429_v28  ;;  %v877_v37 = vmul.f32 %v6431_v29, %v6431_v29  ;;  %v4150_v32 = vld [vmem:[#allocation7] ss:$0 sm:$0xff] }
 0x2a2   : > { %v6439_v38 = vsub.f32 %v828_v6, %v862_v34  ;;  %v6441_v39 = vsub.f32 %v829_v7, %v863_v35  ;;  %v885_v40 = vsel %vm832_vm0, %v875_v36, 0.0  ;;  %v891_v43 = vsel %vm832_vm0, %v877_v37, 0.0 }
 0x2a3   : > { %889 = vadd.xlane.f32.xlu0 %v888_v33  ;;  %886 = vadd.xlane.f32.xlu1 %v885_v40  ;;  %v853_v41 = vpop.xlane.xlu0 %852  ;;  %v856_v42 = vpop.xlane.xlu1 %855 }
 0x2a4   : > { %v864_v44 = vmul.f32 0.03125, %v853_v41  ;;  %v865_v45 = vmul.f32 0.03125, %v856_v42  ;;  %v878_v46 = vmul.f32 %v6439_v38, %v6439_v38  ;;  %v879_v47 = vmul.f32 %v6441_v39, %v6441_v39 }
 0x2a6   : > { %v6449_v48 = vsub.f32 %v830_v12, %v864_v44  ;;  %v6451_v49 = vsub.f32 %v831_v13, %v865_v45  ;;  %v894_v50 = vsel %vm832_vm0, %v878_v46, 0.0  ;;  %v897_v51 = vsel %vm832_vm0, %v879_v47, 0.0 }
 0x2a7   : > { %892 = vadd.xlane.f32.xlu1 %v891_v43  ;;  %895 = vadd.xlane.f32.xlu0 %v894_v50 }
 0x2a8   : > { %v880_v52 = vmul.f32 %v6449_v48, %v6449_v48  ;;  %v881_v53 = vmul.f32 %v6451_v49, %v6451_v49 }
 0x2aa   : > { %v900_v54 = vsel %vm832_vm0, %v880_v52, 0.0  ;;  %v903_v55 = vsel %vm832_vm0, %v881_v53, 0.0  ;;  %v4913_v53 = vld [vmem:[#allocation10 + $0x8] sm:$0xff]  }
 0x2ab   : > { %898 = vadd.xlane.f32.xlu1 %v897_v51  ;;  %901 = vadd.xlane.f32.xlu0 %v900_v54 }
 0x2af   : > { %904 = vadd.xlane.f32.xlu1 %v903_v55 }
 0x32c   : > { %v884_v61 = vpop.xlane.xlu0 %883 }
 0x32d   : > { %v906_v62 = vmul.f32 0.03125, %v884_v61 }
 0x32f   : > { %v914_v63 = vadd.f32 1e-05, %v906_v62  ;;  %v4151_v62 = vld [vmem:[#allocation13] ss:$0 sm:$0xff] }
 0x330   : > { %v887_v0 = vpop.xlane.xlu1 %886  ;;  %v890_v1 = vpop.xlane.xlu0 %889 }
 0x331   : > { %4926 = vrsqrt.f32 %v914_v63  ;;  %v907_v2 = vmul.f32 0.03125, %v887_v0  ;;  %v908_v3 = vmul.f32 0.03125, %v890_v1  ;;  %v4165_v0 = vld [vmem:[#allocation16] ss:$0 sm:$0xff] }
 0x333   : > { %v915_v4 = vadd.f32 1e-05, %v907_v2  ;;  %v916_v5 = vadd.f32 1e-05, %v908_v3 }
 0x334   : > { %v893_v6 = vpop.xlane.xlu1 %892  ;;  %v896_v7 = vpop.xlane.xlu0 %895 }
 0x335   : > { %4928 = vrsqrt.f32 %v915_v4  ;;  %v909_v8 = vmul.f32 0.03125, %v893_v6  ;;  %v910_v9 = vmul.f32 0.03125, %v896_v7 }
 0x336   : > { %4930 = vrsqrt.f32 %v916_v5 }
 0x337   : > { %v917_v10 = vadd.f32 1e-05, %v909_v8  ;;  %v918_v11 = vadd.f32 1e-05, %v910_v9 }
 0x338   : > { %v899_v12 = vpop.xlane.xlu1 %898  ;;  %v902_v13 = vpop.xlane.xlu0 %901 }
 0x339   : > { %4932 = vrsqrt.f32 %v917_v10  ;;  %v911_v14 = vmul.f32 0.03125, %v899_v12  ;;  %v912_v15 = vmul.f32 0.03125, %v902_v13 }
 0x33a   : > { %4934 = vrsqrt.f32 %v918_v11 }
 0x33b   : > { %v4927_v16 = vpop.eup %4926  ;;  %v919_v17 = vadd.f32 1e-05, %v911_v14  ;;  %v920_v18 = vadd.f32 1e-05, %v912_v15 }
 0x33c   : > { %v905_v19 = vpop.xlane.xlu1 %904  ;;  %v930_v22 = vmul.f32 %v4927_v16, %v6421_v20 }
 0x33d   : > { %4936 = vrsqrt.f32 %v919_v17  ;;  %v913_v23 = vmul.f32 0.03125, %v905_v19 }
 0x33e   : > { %4938 = vrsqrt.f32 %v920_v18  ;;  %v945_v31 = vmul.f32 %v4149_v24, %v930_v22 }
 0x33f   : > { %v4929_v25 = vpop.eup %4928  ;;  %v921_v26 = vadd.f32 1e-05, %v913_v23 }
 0x340   : > { %v4931_v27 = vpop.eup %4930  ;;  %v931_v30 = vmul.f32 %v4929_v25, %v6429_v28  ;;  %v960_v37 = vadd.f32 %v4150_v32, %v945_v31 }
 0x341   : > { %4940 = vrsqrt.f32 %v921_v26  ;;  %v932_v33 = vmul.f32 %v4931_v27, %v6423_v21 }
 0x342   : > { %v946_v34 = vmul.f32 %v4149_v24, %v931_v30 }
 0x343   : > { %v4933_v35 = vpop.eup %4932  ;;  %v947_v41 = vmul.f32 %v4149_v24, %v932_v33 }
 0x344   : > { %v4935_v36 = vpop.eup %4934  ;;  %v961_v40 = vadd.f32 %v4150_v32, %v946_v34  ;;  %v933_v20 = vmul.f32 %v4933_v35, %v6431_v29 }
 0x345   : > { %v934_v42 = vmul.f32 %v4935_v36, %v6439_v38  ;;  %v962_v21 = vadd.f32 %v4150_v32, %v947_v41 }
 0x346   : > { %v968_v43 = vpack.c.bf16 %v961_v40, %v960_v37  ;;  %v948_v44 = vmul.f32 %v4149_v24, %v933_v20 }
 0x347   : > { %v4937_v45 = vpop.eup %4936  ;;  %v949_v46 = vmul.f32 %v4149_v24, %v934_v42 }
 0x348   : > { %v4939_v28 = vpop.eup %4938  ;;  %4346 = vmatprep.mubr.msk.bf16.mxu1 %vm832_vm0, %v968_v43  ;;  %4370 = vmatprep.mubr.msk.bf16.mxu0 %vm832_vm0, %v968_v43  ;;  %v963_v47 = vadd.f32 %v4150_v32, %v948_v44  ;;  %v935_v50 = vmul.f32 %v4937_v45, %v6441_v39  ;;  %v4158_v45 = vld [vmem:[#allocation14] ss:$0 sm:$0xff] }
 0x349   : > { %v936_v51 = vmul.f32 %v4939_v28, %v6449_v48  ;;  %v964_v38 = vadd.f32 %v4150_v32, %v949_v46 }
 0x34a   : > { %v969_v52 = vpack.c.bf16 %v963_v47, %v962_v21  ;;  %v950_v29 = vmul.f32 %v4149_v24, %v935_v50 }
 0x34b   : > { %v4941_v54 = vpop.eup %4940  ;;  %v951_v57 = vmul.f32 %v4149_v24, %v936_v51 }
 0x34c   : > { %4347 = vmatmul.mubr.msk.bf16.vlgmr.msra.gmra.mrb[0].mxu1 %vm832_vm0, %v969_v52  ;;  %4371 = vmatmul.mubr.msk.bf16.vlgmr.msra.gmra.mrb[0].mxu0 %vm832_vm0, %v969_v52  ;;  %v965_v55 = vadd.f32 %v4150_v32, %v950_v29  ;;  %v937_v56 = vmul.f32 %v4941_v54, %v6451_v49  ;;  %v5742_v49 = vmov 0.0  }
 0x34d   : > { %4355 = vmatpush3.bf16.msra.mxu1 %v6461_v60  ;;  %v966_v39 = vadd.f32 %v4150_v32, %v951_v57  ;;  %4390 = vmatprep.subr.bf16.mxu0 %v5742_v49 }
 0x34e   : > { %v970_v58 = vpack.c.bf16 %v965_v55, %v964_v38  ;;  %v952_v59 = vmul.f32 %v4149_v24, %v937_v56  ;;  %4356 = vmatprep.subr.bf16.mxu1 %v4913_v53 }
 0x350   : > { %4350 = vmatprep.mubr.msk.bf16.mxu1 %vm832_vm0, %v970_v58  ;;  %4374 = vmatprep.mubr.msk.bf16.mxu0 %vm832_vm0, %v970_v58  ;;  %v967_v48 = vadd.f32 %v4150_v32, %v952_v59 }
 0x351   : > { %4357 = vmatpush3.bf16.msra.mxu1 %v4913_v53 }
 0x352   : > { %v971_v61 = vpack.c.bf16 %v967_v48, %v966_v39  ;;  %4378 = vmatprep.subr.bf16.mxu1 %v5742_v49 }
 0x354   : > { %4351 = vmatmul.mubr.msk.bf16.gmra.mrb[4].mxu1 %vm832_vm0, %v971_v61  ;;  %4375 = vmatmul.mubr.msk.bf16.gmra.mrb[4].mxu0 %vm832_vm0, %v971_v61 }
 0x355   : > { %4358 = vmatprep.mubr.msk.bf16.mxu1 %vm832_vm0, %v968_v43  ;;  %4392 = vmatprep.mubr.msk.bf16.mxu0 %vm5743_vm1, %v5742_v49 }
 0x35c   : > { %4359 = vmatmul.mubr.msk.bf16.vlgmr.msra.gmra.mrb[8].mxu1 %vm832_vm0, %v969_v52 }
 0x35d   : > { %4362 = vmatprep.mubr.msk.bf16.mxu1 %vm832_vm0, %v970_v58 }
 0x364   : > { %4363 = vmatmul.mubr.msk.bf16.gmra.mrb[12].mxu1 %vm832_vm0, %v971_v61 }
 0x365   : > { %4380 = vmatprep.mubr.msk.bf16.mxu1 %vm5743_vm1, %v5742_v49 }
 0x41f   : > { %v4348_v60 = vpop.f32.mrb[0].mxu1  ;;  %v4372_v63 = vpop.f32.mrb[0].mxu0 }
 0x420   : > { %v1041_v1 = vpop.f32.mrb[1].mxu1  ;;  %v1217_v2 = vpop.f32.mrb[1].mxu0  ;;  %v1050_v5 = vadd.f32 %v4348_v60, %v4151_v62  ;;  %v1226_v6 = vadd.f32 %v4372_v63, %v4165_v0 }
 0x421   : > { %v4349_v3 = vpop.f32.mrb[2].mxu1  ;;  %v4373_v4 = vpop.f32.mrb[2].mxu0  ;;  %v1042_v11 = vadd.f32 %v4151_v62, %v1041_v1  ;;  %v1218_v12 = vadd.f32 %v4165_v0, %v1217_v2  ;;  %v1260_v1 = vld [vmem:[#allocation20] sm:$0xff] }
 0x422   : > { %v1053_v7 = vadd.f32 %v4349_v3, %v4151_v62  ;;  %v1229_v8 = vadd.f32 %v4373_v4, %v4165_v0  ;;  %v1044_v9 = vpop.f32.mrb[3].mxu1  ;;  %v1220_v10 = vpop.f32.mrb[3].mxu0  ;;  %v1261_v3 = vld [vmem:[#allocation20 + $0x8] sm:$0xff] }
 0x423   : > { %v1045_v13 = vadd.f32 %v4151_v62, %v1044_v9  ;;  %v1221_v14 = vadd.f32 %v4165_v0, %v1220_v10 }
 0x424   : > { %v6491_v15 = vpack.c.bf16 %v1053_v7, %v1050_v5  ;;  %v6493_v16 = vpack.c.bf16 %v1229_v8, %v1226_v6 }
 0x425   : > { %v6495_v17 = vpack.c.bf16 %v1045_v13, %v1042_v11  ;;  %v6497_v18 = vpack.c.bf16 %v1221_v14, %v1218_v12 }
 0x427   : > { %v4352_v19 = vpop.f32.mrb[4].mxu1  ;;  %v4376_v22 = vpop.f32.mrb[4].mxu0 }
 0x428   : > { %v1242_v23 = vadd.f32 %v4376_v22, %v4165_v0  ;;  %v1057_v24 = vpop.f32.mrb[5].mxu1  ;;  %v1233_v25 = vpop.f32.mrb[5].mxu0  ;;  %v1066_v31 = vadd.f32 %v4352_v19, %v4151_v62 }
 0x429   : > { %v1234_v26 = vadd.f32 %v4165_v0, %v1233_v25  ;;  %v4353_v27 = vpop.f32.mrb[6].mxu1  ;;  %v4377_v30 = vpop.f32.mrb[6].mxu0  ;;  %v1058_v36 = vadd.f32 %v4151_v62, %v1057_v24 }
 0x42a   : > { %v1069_v32 = vadd.f32 %v4353_v27, %v4151_v62  ;;  %v1245_v33 = vadd.f32 %v4377_v30, %v4165_v0  ;;  %v1060_v34 = vpop.f32.mrb[7].mxu1  ;;  %v1236_v35 = vpop.f32.mrb[7].mxu0 }
 0x42b   : > { %v1061_v37 = vadd.f32 %v4151_v62, %v1060_v34  ;;  %v1237_v40 = vadd.f32 %v4165_v0, %v1236_v35 }
 0x42c   : > { %v6499_v20 = vpack.c.bf16 %v1069_v32, %v1066_v31  ;;  %v6501_v41 = vpack.c.bf16 %v1245_v33, %v1242_v23 }
 0x42d   : > { %v6503_v42 = vpack.c.bf16 %v1061_v37, %v1058_v36  ;;  %v6505_v43 = vpack.c.bf16 %v1237_v40, %v1234_v26 }
 0x42f   : > { %v4360_v44 = vpop.f32.mrb[8].mxu1 }
 0x430   : > { %v1129_v46 = vpop.f32.mrb[9].mxu1  ;;  %v1138_v21 = vadd.f32 %v4360_v44, %v4158_v45 }
 0x431   : > { %v4361_v28 = vpop.f32.mrb[10].mxu1  ;;  %v1130_v51 = vadd.f32 %v4158_v45, %v1129_v46 }
 0x432   : > { %v1141_v47 = vadd.f32 %v4361_v28, %v4158_v45  ;;  %v1132_v50 = vpop.f32.mrb[11].mxu1 }
 0x433   : > { %v1133_v52 = vadd.f32 %v4158_v45, %v1132_v50 }
 0x434   : > { %v6507_v29 = vpack.c.bf16 %v1141_v47, %v1138_v21 }
 0x435   : > { %v6509_v53 = vpack.c.bf16 %v1133_v52, %v1130_v51 }
 0x436   : > { %v1320_v62 = vsel %vm1268_vm2, %v6507_v29, 0 }
 0x437   : > { %v4364_v54 = vpop.f32.mrb[12].mxu1  ;;  %v1273_v38 = vsel %vm1268_vm2, %v6509_v53, 0 }
 0x438   : > { %v1145_v55 = vpop.f32.mrb[13].mxu1  ;;  %4379 = vmatpush3.bf16.xpose.msra.mxu1 %v1273_v38  ;;  %v1154_v57 = vadd.f32 %v4364_v54, %v4158_v45 }
 0x439   : > { %v4365_v56 = vpop.f32.mrb[14].mxu1  ;;  %4384 = vmatprep.subr.bf16.mxu1 %v5742_v49  ;;  %v1146_v39 = vadd.f32 %v4158_v45, %v1145_v55 }
 0x43a   : > { %v1157_v58 = vadd.f32 %v4365_v56, %v4158_v45  ;;  %v1148_v59 = vpop.f32.mrb[15].mxu1 }
 0x43b   : > { %v1149_v48 = vadd.f32 %v4158_v45, %v1148_v59 }
 0x43c   : > { %v6514_v61 = vpack.c.bf16 %v1157_v58, %v1154_v57 }
 0x43d   : > { %v6516_v60 = vpack.c.bf16 %v1149_v48, %v1146_v39 }
 0x43e   : > { %v1414_v0 = vsel %vm1268_vm2, %v6514_v61, 0 }
 0x43f   : > { %4381 = vmatmul.mubr.msk.bf16.vlgmr.msra.gmra.mrb[16].mxu1 %vm1268_vm2, %v6495_v17  ;;  %v1367_v63 = vsel %vm1268_vm2, %v6516_v60, 0 }
 0x440   : > { %4385 = vmatpush3.bf16.xpose.msra.mxu1 %v1320_v62  ;;  %4391 = vmatpush3.bf16.xpose.msra.mxu0 %v1367_v63 }
 0x441   : > { %4386 = vmatprep.mubr.msk.bf16.mxu1 %vm5743_vm1, %v5742_v49  ;;  %4396 = vmatprep.subr.bf16.mxu1 %v5742_v49 }
 0x442   : > { %4402 = vmatprep.subr.bf16.mxu0 %v5742_v49 }
 0x447   : > { %4387 = vmatmul.mubr.msk.bf16.vlgmr.msra.gmra.mrb[20].mxu1 %vm1268_vm2, %v6491_v15  ;;  %4393 = vmatmul.mubr.msk.bf16.vlgmr.msra.gmra.mrb[8].mxu0 %vm1268_vm2, %v6503_v42 }
 0x448   : > { %4397 = vmatpush3.bf16.xpose.msra.mxu1 %v1414_v0  ;;  %4403 = vmatpush3.bf16.msra.mxu0 %v6497_v18 }
 0x449   : > { %4398 = vmatprep.mubr.msk.bf16.mxu1 %vm5743_vm1, %v5742_v49  ;;  %4408 = vmatprep.subr.bf16.mxu1 %v5742_v49 }
 0x44a   : > { %4404 = vmatprep.mubr.msk.bf16.mxu0 %vm5743_vm1, %v5742_v49  ;;  %4414 = vmatprep.subr.bf16.mxu0 %v5742_v49 }
 0x44f   : > { %4399 = vmatmul.mubr.msk.bf16.vlgmr.msra.gmra.mrb[24].mxu1 %vm1268_vm2, %v6499_v20 }
 0x450   : > { %4409 = vmatpush3.bf16.msra.mxu1 %v6493_v16  ;;  %4410 = vmatprep.mubr.msk.bf16.mxu1 %vm5743_vm1, %v5742_v49 }
 0x451   : > { %4420 = vmatprep.subr.bf16.mxu1 %v5742_v49 }
 0x512   : > { %v1309_v2 = vpop.f32.mrb[16].mxu1 }
 0x513   : > { %v1310_v4 = vadd.f32 %v1309_v2, %v1260_v1  ;;  %v4382_v5 = vpop.f32.mrb[17].mxu1 }
 0x514   : > { %v1312_v6 = vpop.f32.mrb[18].mxu1 }
 0x515   : > { %v1313_v7 = vadd.f32 %v1312_v6, %v1261_v3  ;;  %v4383_v8 = vpop.f32.mrb[19].mxu1  ;;  %v1458_v9 = vsel %vm1457_vm3, %v1310_v4, -inf }
 0x516   : > { %1459 = vmax.xlane.f32.xlu0 %v1458_v9 }
 0x517   : > { %v1461_v10 = vsel %vm1457_vm3, %v1313_v7, -inf }
 0x518   : > { %1462 = vmax.xlane.f32.xlu1 %v1461_v10 }
 0x51a   : > { %v1356_v11 = vpop.f32.mrb[20].mxu1  ;;  %v1403_v12 = vpop.f32.mrb[8].mxu0 }
 0x51b   : > { %v1357_v13 = vadd.f32 %v1356_v11, %v1260_v1  ;;  %v4388_v14 = vpop.f32.mrb[21].mxu1  ;;  %v4394_v19 = vpop.f32.mrb[9].mxu0  ;;  %v1404_v24 = vadd.f32 %v1403_v12, %v1260_v1 }
 0x51c   : > { %v1359_v22 = vpop.f32.mrb[22].mxu1  ;;  %v1406_v23 = vpop.f32.mrb[10].mxu0 }
 0x51d   : > { %v1360_v25 = vadd.f32 %v1359_v22, %v1261_v3  ;;  %v4389_v26 = vpop.f32.mrb[23].mxu1  ;;  %v4395_v27 = vpop.f32.mrb[11].mxu0  ;;  %v1464_v30 = vsel %vm1457_vm3, %v1357_v13, -inf  ;;  %v1407_v31 = vadd.f32 %v1406_v23, %v1261_v3  ;;  %v1470_v33 = vsel %vm1457_vm3, %v1404_v24, -inf }
 0x51e   : > { %1465 = vmax.xlane.f32.xlu0 %v1464_v30 }
 0x51f   : > { %v1467_v32 = vsel %vm1457_vm3, %v1360_v25, -inf  ;;  %v1473_v37 = vsel %vm1457_vm3, %v1407_v31, -inf }
 0x520   : > { %1468 = vmax.xlane.f32.xlu1 %v1467_v32 }
 0x522   : > { %v1450_v34 = vpop.f32.mrb[24].mxu1  ;;  %1471 = vmax.xlane.f32.xlu0 %v1470_v33 }
 0x523   : > { %v1451_v35 = vadd.f32 %v1450_v34, %v1260_v1  ;;  %v4400_v36 = vpop.f32.mrb[25].mxu1 }
 0x524   : > { %v1453_v40 = vpop.f32.mrb[26].mxu1  ;;  %1474 = vmax.xlane.f32.xlu1 %v1473_v37 }
 0x525   : > { %v6553_v44 = vadd.f32 %v1453_v40, %v1261_v3  ;;  %v4401_v45 = vpop.f32.mrb[27].mxu1  ;;  %v1476_v46 = vsel %vm1457_vm3, %v1451_v35, -inf }
 0x526   : > { %1477 = vmax.xlane.f32.xlu0 %v1476_v46 }
 0x527   : > { %v1479_v28 = vsel %vm1457_vm3, %v6553_v44, -inf }
 0x528   : > { %1480 = vmax.xlane.f32.xlu1 %v1479_v28 }
 0x5a3   : > { %v1460_v21 = vpop.xlane.xlu0 %1459 }
 0x5a4   : > { %v1482_v47 = vsub.f32 %v1310_v4, %v1460_v21 }
 0x5a5   : > { %v1463_v50 = vpop.xlane.xlu1 %1462 }
 0x5a6   : > { %v1490_v51 = vmul.f32 1.442695, %v1482_v47  ;;  %v1483_v52 = vsub.f32 %v1313_v7, %v1463_v50 }
 0x5a8   : > { %4942 = vpow2.f32 %v1490_v51  ;;  %v1492_v54 = vmul.f32 1.442695, %v1483_v52 }
 0x5aa   : > { %4944 = vpow2.f32 %v1492_v54 }
 0x5ab   : > { %v1466_v38 = vpop.xlane.xlu0 %1465 }
 0x5ac   : > { %v1484_v55 = vsub.f32 %v1357_v13, %v1466_v38 }
 0x5ad   : > { %v1469_v56 = vpop.xlane.xlu1 %1468 }
 0x5ae   : > { %v1494_v57 = vmul.f32 1.442695, %v1484_v55  ;;  %v1485_v58 = vsub.f32 %v1360_v25, %v1469_v56 }
 0x5af   : > { %v1472_v59 = vpop.xlane.xlu0 %1471 }
 0x5b0   : > { %4946 = vpow2.f32 %v1494_v57  ;;  %v1496_v39 = vmul.f32 1.442695, %v1485_v58  ;;  %v1486_v48 = vsub.f32 %v1404_v24, %v1472_v59 }
 0x5b1   : > { %v1475_v62 = vpop.xlane.xlu1 %1474 }
 0x5b2   : > { %v4943_v63 = vpop.eup %4942  ;;  %4948 = vpow2.f32 %v1496_v39  ;;  %v1498_v0 = vmul.f32 1.442695, %v1486_v48  ;;  %v1487_v1 = vsub.f32 %v1407_v31, %v1475_v62 }
 0x5b3   : > { %v1478_v2 = vpop.xlane.xlu0 %1477  ;;  %v1506_v3 = vsel %vm1457_vm3, %v4943_v63, 0.0 }
 0x5b4   : > { %v4945_v4 = vpop.eup %4944  ;;  %4950 = vpow2.f32 %v1498_v0  ;;  %v1500_v5 = vmul.f32 1.442695, %v1487_v1  ;;  %v1488_v6 = vsub.f32 %v1451_v35, %v1478_v2  ;;  %1507 = vadd.xlane.f32.xlu0 %v1506_v3 }
 0x5b5   : > { %v1509_v7 = vsel %vm1457_vm3, %v4945_v4, 0.0  ;;  %v1481_v25 = vpop.xlane.xlu1 %1480 }
 0x5b6   : > { %4952 = vpow2.f32 %v1500_v5  ;;  %v1502_v8 = vmul.f32 1.442695, %v1488_v6  ;;  %1510 = vadd.xlane.f32.xlu1 %v1509_v7  ;;  %v1489_v26 = vsub.f32 %v6553_v44, %v1481_v25 }
 0x5b8   : > { %4954 = vpow2.f32 %v1502_v8  ;;  %v1504_v27 = vmul.f32 1.442695, %v1489_v26 }
 0x5ba   : > { %v4947_v9 = vpop.eup %4946  ;;  %4956 = vpow2.f32 %v1504_v27 }
 0x5bb   : > { %v1512_v10 = vsel %vm1457_vm3, %v4947_v9, 0.0 }
 0x5bc   : > { %v4949_v11 = vpop.eup %4948  ;;  %1513 = vadd.xlane.f32.xlu0 %v1512_v10 }
 0x5bd   : > { %v1515_v12 = vsel %vm1457_vm3, %v4949_v11, 0.0 }
 0x5be   : > { %v4951_v13 = vpop.eup %4950  ;;  %1516 = vadd.xlane.f32.xlu1 %v1515_v12 }
 0x5bf   : > { %v1518_v14 = vsel %vm1457_vm3, %v4951_v13, 0.0 }
 0x5c0   : > { %v4953_v19 = vpop.eup %4952  ;;  %1519 = vadd.xlane.f32.xlu0 %v1518_v14 }
 0x5c1   : > { %v1521_v22 = vsel %vm1457_vm3, %v4953_v19, 0.0 }
 0x5c2   : > { %v6564_v23 = vpop.eup %4954  ;;  %1522 = vadd.xlane.f32.xlu1 %v1521_v22 }
 0x5c3   : > { %v1524_v24 = vsel %vm1457_vm3, %v6564_v23, 0.0 }
 0x5c4   : > { %1525 = vadd.xlane.f32.xlu0 %v1524_v24  ;;  %v6579_v30 = vpop.eup %4956 }
 0x5c5   : > { %v1527_v31 = vsel %vm1457_vm3, %v6579_v30, 0.0 }
 0x5d3   : > { %1783 = vrot.lane.b32.xlu1 %v6507_v29, %s5744_s0 }
 0x5d7   : > { %1727 = vrot.lane.b32.xlu1 %v6495_v17, %s5744_s0 }
 0x5da   : > { %1730 = vrot.lane.b32.xlu0 %v6509_v53, %s5744_s0 }
 0x5de   : > { %1780 = vrot.lane.b32.xlu0 %v6491_v15, %s5744_s0 }
 0x5e2   : > { %1833 = vrot.lane.b32.xlu0 %v6503_v42, %s5744_s0 }
 0x5fb   : > { %1528 = vadd.xlane.f32.xlu1 %v1527_v31 }
 0x60c   : > { %1836 = vrot.lane.b32.xlu1 %v6516_v60, %s5744_s0 }
 0x610   : > { %1889 = vrot.lane.b32.xlu1 %v6514_v61, %s5744_s0 }
 0x614   : > { %1886 = vrot.lane.b32.xlu1 %v6499_v20, %s5744_s0 }
 0x641   : > { %v1508_v32 = vpop.xlane.xlu0 %1507 }
 0x642   : > { %4958 = vrcp.f32 %v1508_v32 }
 0x643   : > { %v1511_v33 = vpop.xlane.xlu1 %1510 }
 0x644   : > { %4960 = vrcp.f32 %v1511_v33  ;;  %v1262_v33 = vld [vmem:[#allocation20 + $0x10] sm:$0xff] }
 0x649   : > { %v1514_v34 = vpop.xlane.xlu0 %1513 }
 0x64a   : > { %4962 = vrcp.f32 %v1514_v34 }
 0x64b   : > { %v1517_v35 = vpop.xlane.xlu1 %1516 }
 0x64c   : > { %v4959_v36 = vpop.eup %4958  ;;  %4964 = vrcp.f32 %v1517_v35  ;;  %v1263_v35 = vld [vmem:[#allocation20 + $0x18] sm:$0xff] }
 0x64d   : > { %v1520_v37 = vpop.xlane.xlu0 %1519  ;;  %v1538_v44 = vmul.f32 %v4959_v36, %v4943_v63 }
 0x64e   : > { %v4961_v40 = vpop.eup %4960  ;;  %4966 = vrcp.f32 %v1520_v37 }
 0x64f   : > { %v1539_v45 = vmul.f32 %v4961_v40, %v4945_v4  ;;  %v1523_v46 = vpop.xlane.xlu1 %1522 }
 0x650   : > { %4968 = vrcp.f32 %v1523_v46 }
 0x651   : > { %v1546_v28 = vpack.c.bf16 %v1539_v45, %v1538_v44  ;;  %v1526_v50 = vpop.xlane.xlu0 %1525 }
 0x652   : > { %4970 = vrcp.f32 %v1526_v50 }
 0x653   : > { %4405 = vmatmul.mubr.msk.bf16.vlgmr.msra.gmra.mrb[12].mxu0 %vm1457_vm3, %v1546_v28  ;;  %v1784_v48 = vpop.permute.xlu1 %1783 }
 0x654   : > { %v4963_v21 = vpop.eup %4962  ;;  %4415 = vmatpush3.bf16.msra.mxu0 %v6505_v43  ;;  %4416 = vmatprep.mubr.msk.bf16.mxu0 %vm5743_vm1, %v5742_v49 }
 0x655   : > { %4426 = vmatprep.subr.bf16.mxu0 %v5742_v49  ;;  %v1540_v51 = vmul.f32 %v4963_v21, %v4947_v9  ;;  %v1731_v58 = vpop.permute.xlu0 %1730  ;;  %v1789_v9 = vsel %vm1268_vm2, %v1784_v48, 0 }
 0x656   : > { %v4965_v47 = vpop.eup %4964  ;;  %v1736_v39 = vsel %vm1268_vm2, %v1731_v58, 0 }
 0x657   : > { %v1541_v52 = vmul.f32 %v4965_v47, %v4949_v11  ;;  %v1728_v62 = vpop.permute.xlu1 %1727 }
 0x658   : > { %v4967_v54 = vpop.eup %4966 }
 0x659   : > { %v1547_v38 = vpack.c.bf16 %v1541_v52, %v1540_v51  ;;  %v1542_v56 = vmul.f32 %v4967_v54, %v4951_v13  ;;  %v1781_v2 = vpop.permute.xlu0 %1780 }
 0x65a   : > { %v4969_v55 = vpop.eup %4968 }
 0x65b   : > { %v1543_v57 = vmul.f32 %v4969_v55, %v4953_v19  ;;  %4411 = vmatmul.mubr.msk.bf16.vlgmr.msra.gmra.mrb[28].mxu1 %vm1457_vm3, %v1547_v38 }
 0x65c   : > { %4421 = vmatpush3.bf16.msra.mxu1 %v6501_v41  ;;  %4422 = vmatprep.mubr.msk.bf16.mxu1 %vm5743_vm1, %v5742_v49  ;;  %v4971_v3 = vpop.eup %4970 }
 0x65d   : > { %v1548_v59 = vpack.c.bf16 %v1543_v57, %v1542_v56  ;;  %4432 = vmatprep.subr.bf16.mxu1 %v5742_v49  ;;  %v1544_v5 = vmul.f32 %v4971_v3, %v6564_v23  ;;  %v1834_v6 = vpop.permute.xlu0 %1833 }
 0x65f   : > { %4417 = vmatmul.mubr.msk.bf16.vlgmr.msra.gmra.mrb[16].mxu0 %vm1457_vm3, %v1548_v59 }
 0x660   : > { %4427 = vmatpush3.bf16.xpose.msra.mxu0 %v1736_v39  ;;  %4428 = vmatprep.mubr.msk.bf16.mxu0 %vm5743_vm1, %v5742_v49 }
 0x661   : > { %4438 = vmatprep.subr.bf16.mxu0 %v5742_v49 }
 0x667   : > { %4429 = vmatmul.mubr.msk.bf16.vlgmr.msra.gmra.mrb[20].mxu0 %vm1268_vm2, %v1728_v62 }
 0x668   : > { %4440 = vmatprep.mubr.msk.bf16.mxu0 %vm5743_vm1, %v5742_v49 }
 0x688   : > { %v1529_v63 = vpop.xlane.xlu1 %1528 }
 0x689   : > { %4972 = vrcp.f32 %v1529_v63 }
 0x68c   : > { %v1837_v0 = vpop.permute.xlu1 %1836 }
 0x68d   : > { %v1842_v1 = vsel %vm1268_vm2, %v1837_v0, 0 }
 0x68e   : > { %4439 = vmatpush3.bf16.xpose.msra.mxu0 %v1842_v1 }
 0x68f   : > { %4450 = vmatprep.subr.bf16.mxu0 %v5742_v49 }
 0x690   : > { %v1890_v10 = vpop.permute.xlu1 %1889 }
 0x691   : > { %v1895_v11 = vsel %vm1268_vm2, %v1890_v10, 0 }
 0x693   : > { %v4973_v4 = vpop.eup %4972 }
 0x694   : > { %v1545_v7 = vmul.f32 %v4973_v4, %v6579_v30  ;;  %v1887_v12 = vpop.permute.xlu1 %1886 }
 0x695   : > { %4441 = vmatmul.mubr.msk.bf16.vlgmr.msra.gmra.mrb[24].mxu0 %vm1268_vm2, %v1834_v6 }
 0x696   : > { %v1549_v8 = vpack.c.bf16 %v1545_v7, %v1544_v5  ;;  %4452 = vmatprep.mubr.msk.bf16.mxu0 %vm5743_vm1, %v5742_v49 }
 0x698   : > { %4423 = vmatmul.mubr.msk.bf16.vlgmr.msra.gmra.mrb[32].mxu1 %vm1457_vm3, %v1549_v8 }
 0x699   : > { %4433 = vmatpush3.bf16.xpose.msra.mxu1 %v1789_v9  ;;  %4434 = vmatprep.mubr.msk.bf16.mxu1 %vm5743_vm1, %v5742_v49 }
 0x69a   : > { %4444 = vmatprep.subr.bf16.mxu1 %v5742_v49 }
 0x6a0   : > { %4435 = vmatmul.mubr.msk.bf16.vlgmr.msra.gmra.mrb[36].mxu1 %vm1268_vm2, %v1781_v2 }
 0x6a1   : > { %4445 = vmatpush3.bf16.xpose.msra.mxu1 %v1895_v11  ;;  %4446 = vmatprep.mubr.msk.bf16.mxu1 %vm5743_vm1, %v5742_v49 }
 0x6a2   : > { %4456 = vmatprep.subr.bf16.mxu1 %v5742_v49 }
 0x6a8   : > { %4447 = vmatmul.mubr.msk.bf16.vlgmr.msra.gmra.mrb[40].mxu1 %vm1268_vm2, %v1887_v12 }
 0x6a9   : > { %4458 = vmatprep.mubr.msk.bf16.mxu1 %vm5743_vm1, %v5742_v49 }
 0x726   : > { %v6627_v13 = vpop.f32.mrb[12].mxu0 }
 0x727   : > { %v4406_v14 = vpop.f32.mrb[13].mxu0 }
 0x728   : > { %v6629_v19 = vpop.f32.mrb[14].mxu0 }
 0x729   : > { %v4407_v22 = vpop.f32.mrb[15].mxu0 }
 0x72e   : > { %v6631_v23 = vpop.f32.mrb[28].mxu1 }
 0x72f   : > { %v4412_v24 = vpop.f32.mrb[29].mxu1 }
 0x730   : > { %v6633_v25 = vpop.f32.mrb[30].mxu1 }
 0x731   : > { %v4413_v26 = vpop.f32.mrb[31].mxu1 }
 0x732   : > { %v6635_v27 = vpop.f32.mrb[16].mxu0 }
 0x733   : > { %v4418_v30 = vpop.f32.mrb[17].mxu0 }
 0x734   : > { %v6637_v31 = vpop.f32.mrb[18].mxu0 }
 0x735   : > { %v4419_v32 = vpop.f32.mrb[19].mxu0 }
 0x73a   : > { %v1772_v34 = vpop.f32.mrb[20].mxu0 }
 0x73b   : > { %v1773_v36 = vadd.f32 %v1772_v34, %v1262_v33  ;;  %v4430_v37 = vpop.f32.mrb[21].mxu0 }
 0x73c   : > { %v1775_v40 = vpop.f32.mrb[22].mxu0 }
 0x73d   : > { %v1776_v44 = vadd.f32 %v1775_v40, %v1263_v35  ;;  %v4431_v45 = vpop.f32.mrb[23].mxu0  ;;  %v1938_v46 = vsel %vm1457_vm3, %v1773_v36, -inf }
 0x73e   : > { %1939 = vmax.xlane.f32.xlu0 %v1938_v46 }
 0x73f   : > { %v1941_v28 = vsel %vm1457_vm3, %v1776_v44, -inf }
 0x740   : > { %1942 = vmax.xlane.f32.xlu1 %v1941_v28 }
 0x768   : > { %v1878_v21 = vpop.f32.mrb[24].mxu0 }
 0x769   : > { %v4442_v47 = vpop.f32.mrb[25].mxu0  ;;  %v1879_v1 = vadd.f32 %v1878_v21, %v1262_v33 }
 0x76a   : > { %v1881_v50 = vpop.f32.mrb[26].mxu0 }
 0x76b   : > { %v1882_v51 = vadd.f32 %v1881_v50, %v1263_v35  ;;  %v6641_v52 = vpop.f32.mrb[32].mxu1  ;;  %v4443_v54 = vpop.f32.mrb[27].mxu0  ;;  %v1950_v8 = vsel %vm1457_vm3, %v1879_v1, -inf }
 0x76c   : > { %v4424_v38 = vpop.f32.mrb[33].mxu1 }
 0x76d   : > { %v6643_v55 = vpop.f32.mrb[34].mxu1  ;;  %v1953_v56 = vsel %vm1457_vm3, %v1882_v51, -inf }
 0x76e   : > { %v4425_v57 = vpop.f32.mrb[35].mxu1  ;;  %1954 = vmax.xlane.f32.xlu1 %v1953_v56 }
 0x773   : > { %v1825_v58 = vpop.f32.mrb[36].mxu1 }
 0x774   : > { %v1826_v59 = vadd.f32 %v1825_v58, %v1262_v33  ;;  %v4436_v39 = vpop.f32.mrb[37].mxu1 }
 0x775   : > { %v1828_v48 = vpop.f32.mrb[38].mxu1 }
 0x776   : > { %v1829_v62 = vadd.f32 %v1828_v48, %v1263_v35  ;;  %v4437_v63 = vpop.f32.mrb[39].mxu1  ;;  %v1944_v0 = vsel %vm1457_vm3, %v1826_v59, -inf }
 0x777   : > { %1945 = vmax.xlane.f32.xlu0 %v1944_v0 }
 0x778   : > { %v1947_v2 = vsel %vm1457_vm3, %v1829_v62, -inf }
 0x77b   : > { %v1931_v3 = vpop.f32.mrb[40].mxu1  ;;  %1948 = vmax.xlane.f32.xlu0 %v1947_v2 }
 0x77c   : > { %v4448_v4 = vpop.f32.mrb[41].mxu1  ;;  %v1932_v6 = vadd.f32 %v1931_v3, %v1262_v33 }
 0x77d   : > { %v1934_v5 = vpop.f32.mrb[42].mxu1 }
 0x77e   : > { %v4449_v7 = vpop.f32.mrb[43].mxu1  ;;  %v1956_v9 = vsel %vm1457_vm3, %v1932_v6, -inf  ;;  %v6656_v10 = vadd.f32 %v1934_v5, %v1263_v35 }
 0x77f   : > { %1951 = vmax.xlane.f32.xlu0 %v1950_v8  ;;  %2079 = vrot.lane.b32.xlu1 %v6493_v16, %s5744_s0 }
 0x780   : > { %v1959_v11 = vsel %vm1457_vm3, %v6656_v10, -inf }
 0x783   : > { %1957 = vmax.xlane.f32.xlu0 %v1956_v9  ;;  %2127 = vrot.lane.b32.xlu1 %v6505_v43, %s5744_s0 }
 0x799   : > { %2031 = vrot.lane.b32.xlu0 %v6497_v18, %s5744_s0 }
 0x7a7   : > { %1960 = vmax.xlane.f32.xlu1 %v1959_v11 }
 0x7b8   : > { %2175 = vrot.lane.b32.xlu1 %v6501_v41, %s5744_s0  ;;  %s7272_s0 = sld [smem:[#allocation54_spill]] }
 0x7cb   : > { %v1940_v12 = vpop.xlane.xlu0 %1939 }
 0x7cc   : > { %v1962_v14 = vsub.f32 %v1773_v36, %v1940_v12 }
 0x7cd   : > { %v1943_v22 = vpop.xlane.xlu1 %1942 }
 0x7ce   : > { %v1970_v24 = vmul.f32 1.442695, %v1962_v14  ;;  %v1963_v26 = vsub.f32 %v1776_v44, %v1943_v22 }
 0x7d0   : > { %4974 = vpow2.f32 %v1970_v24  ;;  %v1972_v30 = vmul.f32 1.442695, %v1963_v26 }
 0x7d2   : > { %4976 = vpow2.f32 %v1972_v30 }
 0x7da   : > { %v6662_v32 = vpop.eup %4974 }
 0x7db   : > { %v1986_v33 = vsel %vm1457_vm3, %v6662_v32, 0.0 }
 0x7dc   : > { %v6666_v34 = vpop.eup %4976  ;;  %1987 = vadd.xlane.f32.xlu0 %v1986_v33 }
 0x7dd   : > { %v1989_v35 = vsel %vm1457_vm3, %v6666_v34, 0.0 }
 0x7de   : > { %1990 = vadd.xlane.f32.xlu1 %v1989_v35 }
 0x7fb   : > { %v1955_v37 = vpop.xlane.xlu1 %1954 }
 0x7fc   : > { %v1967_v45 = vsub.f32 %v1882_v51, %v1955_v37 }
 0x7fe   : > { %v1980_v47 = vmul.f32 1.442695, %v1967_v45 }
 0x7ff   : > { %v2080_v36 = vpop.permute.xlu1 %2079 }
 0x800   : > { %4457 = vmatpush3.bf16.msra.mxu1 %v2080_v36 }
 0x801   : > { %4468 = vmatprep.subr.bf16.mxu1 %v5742_v49 }
 0x804   : > { %v1946_v40 = vpop.xlane.xlu0 %1945 }
 0x805   : > { %v1964_v44 = vsub.f32 %v1826_v59, %v1946_v40 }
 0x807   : > { %v1974_v46 = vmul.f32 1.442695, %v1964_v44 }
 0x808   : > { %v1949_v28 = vpop.xlane.xlu0 %1948 }
 0x809   : > { %4978 = vpow2.f32 %v1974_v46  ;;  %v1965_v21 = vsub.f32 %v1829_v62, %v1949_v28 }
 0x80b   : > { %v1976_v50 = vmul.f32 1.442695, %v1965_v21 }
 0x80c   : > { %v1952_v54 = vpop.xlane.xlu0 %1951 }
 0x80d   : > { %4980 = vpow2.f32 %v1976_v50  ;;  %v1966_v38 = vsub.f32 %v1879_v1, %v1952_v54 }
 0x80e   : > { %4982 = vpow2.f32 %v1980_v47 }
 0x80f   : > { %v1978_v56 = vmul.f32 1.442695, %v1966_v38 }
 0x810   : > { %v1958_v57 = vpop.xlane.xlu0 %1957 }
 0x811   : > { %4984 = vpow2.f32 %v1978_v56  ;;  %v1968_v58 = vsub.f32 %v1932_v6, %v1958_v57  ;;  %v2128_v6 = vpop.permute.xlu1 %2127 }
 0x813   : > { %v4979_v39 = vpop.eup %4978  ;;  %v1982_v48 = vmul.f32 1.442695, %v1968_v58 }
 0x814   : > { %v2032_v63 = vpop.permute.xlu0 %2031  ;;  %v1992_v59 = vsel %vm1457_vm3, %v4979_v39, 0.0 }
 0x815   : > { %4986 = vpow2.f32 %v1982_v48  ;;  %1993 = vadd.xlane.f32.xlu0 %v1992_v59  ;;  %4451 = vmatpush3.bf16.msra.mxu0 %v2032_v63 }
 0x816   : > { %4462 = vmatprep.subr.bf16.mxu0 %v5742_v49 }
 0x817   : > { %v4981_v51 = vpop.eup %4980 }
 0x818   : > { %v1995_v62 = vsel %vm1457_vm3, %v4981_v51, 0.0  ;;  %v4983_v0 = vpop.eup %4982 }
 0x819   : > { %1996 = vadd.xlane.f32.xlu1 %v1995_v62  ;;  %v2001_v3 = vsel %vm1457_vm3, %v4983_v0, 0.0 }
 0x81b   : > { %v4985_v1 = vpop.eup %4984 }
 0x81c   : > { %v1998_v2 = vsel %vm1457_vm3, %v4985_v1, 0.0 }
 0x81d   : > { %1999 = vadd.xlane.f32.xlu0 %v1998_v2  ;;  %2002 = vadd.xlane.f32.xlu1 %v2001_v3 }
 0x81f   : > { %v6676_v4 = vpop.eup %4986 }
 0x820   : > { %v2004_v5 = vsel %vm1457_vm3, %v6676_v4, 0.0 }
 0x821   : > { %2005 = vadd.xlane.f32.xlu0 %v2004_v5 }
 0x82e   : > { %2275 = vrot.lane.b32.xlu1 %v6507_v29, %s5745_s28 }
 0x834   : > { %v1961_v7 = vpop.xlane.xlu1 %1960 }
 0x835   : > { %v1969_v8 = vsub.f32 %v6656_v10, %v1961_v7 }
 0x837   : > { %2224 = vrot.lane.b32.xlu0 %v6509_v53, %s5745_s28  ;;  %v1984_v9 = vmul.f32 1.442695, %v1969_v8 }
 0x838   : > { %v2176_v14 = vpop.permute.xlu1 %2175 }
 0x839   : > { %4988 = vpow2.f32 %v1984_v9 }
 0x83b   : > { %2222 = vrot.lane.b32.xlu0 %v6495_v17, %s5745_s28 }
 0x83f   : > { %2273 = vrot.lane.b32.xlu0 %v6491_v15, %s5745_s28 }
 0x843   : > { %2324 = vrot.lane.b32.xlu0 %v6503_v42, %s5745_s28  ;;  %v6691_v11 = vpop.eup %4988 }
 0x844   : > { %v2007_v12 = vsel %vm1457_vm3, %v6691_v11, 0.0 }
 0x852   : > { %2008 = vadd.xlane.f32.xlu1 %v2007_v12 }
 0x863   : > { %2326 = vrot.lane.b32.xlu1 %v6516_v60, %s5745_s28 }
 0x867   : > { %2377 = vrot.lane.b32.xlu1 %v6514_v61, %s5745_s28 }
 0x869   : > { %v1988_v10 = vpop.xlane.xlu0 %1987 }
 0x86a   : > { %4990 = vrcp.f32 %v1988_v10 }
 0x86b   : > { %2375 = vrot.lane.b32.xlu1 %v6499_v20, %s5745_s28  ;;  %v1991_v22 = vpop.xlane.xlu1 %1990 }
 0x86c   : > { %4992 = vrcp.f32 %v1991_v22 }
 0x874   : > { %v4991_v24 = vpop.eup %4990 }
 0x875   : > { %v2018_v30 = vmul.f32 %v4991_v24, %v6662_v32 }
 0x876   : > { %v4993_v26 = vpop.eup %4992 }
 0x877   : > { %v2019_v33 = vmul.f32 %v4993_v26, %v6666_v34 }
 0x879   : > { %v2026_v35 = vpack.c.bf16 %v2019_v33, %v2018_v30 }
 0x87b   : > { %4453 = vmatmul.mubr.msk.bf16.vlgmr.msra.gmra.mrb[28].mxu0 %vm1457_vm3, %v2026_v35 }
 0x87c   : > { %4463 = vmatpush3.bf16.msra.mxu0 %v2128_v6  ;;  %4464 = vmatprep.mubr.msk.bf16.mxu0 %vm5743_vm1, %v5742_v49 }
 0x87d   : > { %4474 = vmatprep.subr.bf16.mxu0 %v5742_v49 }
 0x8a2   : > { %v1994_v37 = vpop.xlane.xlu0 %1993 }
 0x8a3   : > { %4994 = vrcp.f32 %v1994_v37 }
 0x8a6   : > { %v1997_v36 = vpop.xlane.xlu1 %1996 }
 0x8a7   : > { %4996 = vrcp.f32 %v1997_v36 }
 0x8aa   : > { %v2000_v40 = vpop.xlane.xlu0 %1999  ;;  %v2003_v44 = vpop.xlane.xlu1 %2002 }
 0x8ab   : > { %4998 = vrcp.f32 %v2000_v40 }
 0x8ac   : > { %5000 = vrcp.f32 %v2003_v44 }
 0x8ad   : > { %v4995_v32 = vpop.eup %4994 }
 0x8ae   : > { %v2020_v34 = vmul.f32 %v4995_v32, %v4979_v39  ;;  %v2006_v28 = vpop.xlane.xlu0 %2005  ;;  %v2276_v48 = vpop.permute.xlu1 %2275 }
 0x8af   : > { %5002 = vrcp.f32 %v2006_v28  ;;  %v2281_v7 = vsel %vm1268_vm2, %v2276_v48, 0 }
 0x8b1   : > { %v4997_v45 = vpop.eup %4996 }
 0x8b2   : > { %v2021_v46 = vmul.f32 %v4997_v45, %v4981_v51  ;;  %v2225_v56 = vpop.permute.xlu0 %2224  ;;  %v1264_v45 = vld [vmem:[#allocation20 + $0x20] sm:$0xff] }
 0x8b3   : > { %v2230_v58 = vsel %vm1268_vm2, %v2225_v56, 0 }
 0x8b4   : > { %v2027_v21 = vpack.c.bf16 %v2021_v46, %v2020_v34  ;;  %v1265_v46 = vld [vmem:[#allocation20 + $0x28] sm:$0xff] }
 0x8b5   : > { %v4999_v47 = vpop.eup %4998 }
 0x8b6   : > { %v5001_v50 = vpop.eup %5000  ;;  %v2022_v54 = vmul.f32 %v4999_v47, %v4985_v1  ;;  %4459 = vmatmul.mubr.msk.bf16.vlgmr.msra.gmra.mrb[44].mxu1 %vm1457_vm3, %v2027_v21  ;;  %v2223_v39 = vpop.permute.xlu0 %2222 }
 0x8b7   : > { %v2023_v38 = vmul.f32 %v5001_v50, %v4983_v0  ;;  %4469 = vmatpush3.bf16.msra.mxu1 %v2176_v14  ;;  %4470 = vmatprep.mubr.msk.bf16.mxu1 %vm5743_vm1, %v5742_v49 }
 0x8b8   : > { %4480 = vmatprep.subr.bf16.mxu1 %v5742_v49 }
 0x8b9   : > { %v2028_v57 = vpack.c.bf16 %v2023_v38, %v2022_v54  ;;  %v5003_v0 = vpop.eup %5002 }
 0x8ba   : > { %v2274_v62 = vpop.permute.xlu0 %2273  ;;  %v2024_v2 = vmul.f32 %v5003_v0, %v6676_v4 }
 0x8bb   : > { %4465 = vmatmul.mubr.msk.bf16.vlgmr.msra.gmra.mrb[32].mxu0 %vm1457_vm3, %v2028_v57 }
 0x8bc   : > { %4475 = vmatpush3.bf16.xpose.msra.mxu0 %v2230_v58  ;;  %4476 = vmatprep.mubr.msk.bf16.mxu0 %vm5743_vm1, %v5742_v49 }
 0x8bd   : > { %4486 = vmatprep.subr.bf16.mxu0 %v5742_v49 }
 0x8be   : > { %v2325_v3 = vpop.permute.xlu0 %2324 }
 0x8c3   : > { %4477 = vmatmul.mubr.msk.bf16.vlgmr.msra.gmra.mrb[36].mxu0 %vm1268_vm2, %v2223_v39 }
 0x8c4   : > { %4488 = vmatprep.mubr.msk.bf16.mxu0 %vm5743_vm1, %v5742_v49 }
 0x8df   : > { %v2009_v63 = vpop.xlane.xlu1 %2008 }
 0x8e0   : > { %5004 = vrcp.f32 %v2009_v63 }
 0x8e3   : > { %v2327_v59 = vpop.permute.xlu1 %2326 }
 0x8e4   : > { %v2332_v51 = vsel %vm1268_vm2, %v2327_v59, 0 }
 0x8e5   : > { %4487 = vmatpush3.bf16.xpose.msra.mxu0 %v2332_v51 }
 0x8e6   : > { %4498 = vmatprep.subr.bf16.mxu0 %v5742_v49 }
 0x8e7   : > { %v2378_v4 = vpop.permute.xlu1 %2377 }
 0x8e8   : > { %v2383_v8 = vsel %vm1268_vm2, %v2378_v4, 0 }
 0x8ea   : > { %v5005_v1 = vpop.eup %5004 }
 0x8eb   : > { %v2025_v5 = vmul.f32 %v5005_v1, %v6691_v11  ;;  %v2376_v9 = vpop.permute.xlu1 %2375 }
 0x8ec   : > { %4489 = vmatmul.mubr.msk.bf16.vlgmr.msra.gmra.mrb[40].mxu0 %vm1268_vm2, %v2325_v3 }
 0x8ed   : > { %v2029_v6 = vpack.c.bf16 %v2025_v5, %v2024_v2  ;;  %4500 = vmatprep.mubr.msk.bf16.mxu0 %vm5743_vm1, %v5742_v49 }
 0x8ef   : > { %4471 = vmatmul.mubr.msk.bf16.vlgmr.msra.gmra.mrb[48].mxu1 %vm1457_vm3, %v2029_v6 }
 0x8f0   : > { %4481 = vmatpush3.bf16.xpose.msra.mxu1 %v2281_v7  ;;  %4482 = vmatprep.mubr.msk.bf16.mxu1 %vm5743_vm1, %v5742_v49 }
 0x8f1   : > { %4492 = vmatprep.subr.bf16.mxu1 %v5742_v49 }
 0x8f7   : > { %4483 = vmatmul.mubr.msk.bf16.vlgmr.msra.gmra.mrb[52].mxu1 %vm1268_vm2, %v2274_v62 }
 0x8f8   : > { %4493 = vmatpush3.bf16.xpose.msra.mxu1 %v2383_v8  ;;  %4494 = vmatprep.mubr.msk.bf16.mxu1 %vm5743_vm1, %v5742_v49 }
 0x8f9   : > { %4504 = vmatprep.subr.bf16.mxu1 %v5742_v49 }
 0x8ff   : > { %4495 = vmatmul.mubr.msk.bf16.vlgmr.msra.gmra.mrb[56].mxu1 %vm1268_vm2, %v2376_v9 }
 0x900   : > { %4506 = vmatprep.mubr.msk.bf16.mxu1 %vm5743_vm1, %v5742_v49 }
 0x94e   : > { %v6739_v11 = vpop.f32.mrb[28].mxu0 }
 0x94f   : > { %v4454_v12 = vpop.f32.mrb[29].mxu0 }
 0x950   : > { %v6741_v14 = vpop.f32.mrb[30].mxu0 }
 0x951   : > { %v4848_v10 = vpack.i.bf16 %v6741_v14, %v6739_v11  ;;  %v4455_v22 = vpop.f32.mrb[31].mxu0 }
 0x989   : > { %v6745_v24 = vpop.f32.mrb[44].mxu1 }
 0x98a   : > { %v4460_v26 = vpop.f32.mrb[45].mxu1 }
 0x98b   : > { %v6747_v30 = vpop.f32.mrb[46].mxu1 }
 0x98c   : > { %v4853_v33 = vpack.i.bf16 %v6747_v30, %v6745_v24  ;;  %v4461_v35 = vpop.f32.mrb[47].mxu1 }
 0x98e   : > { %v6751_v37 = vpop.f32.mrb[32].mxu0 }
 0x98f   : > { %v4466_v36 = vpop.f32.mrb[33].mxu0 }
 0x990   : > { %v6753_v40 = vpop.f32.mrb[34].mxu0 }
 0x991   : > { %v4868_v44 = vpack.i.bf16 %v6753_v40, %v6751_v37  ;;  %v4467_v32 = vpop.f32.mrb[35].mxu0 }
 0x996   : > { %v2266_v34 = vpop.f32.mrb[36].mxu0 }
 0x997   : > { %v2267_v28 = vadd.f32 %v2266_v34, %v1264_v45  ;;  %v4478_v21 = vpop.f32.mrb[37].mxu0 }
 0x998   : > { %v2269_v47 = vpop.f32.mrb[38].mxu0 }
 0x999   : > { %v2270_v50 = vadd.f32 %v2269_v47, %v1265_v46  ;;  %v4479_v54 = vpop.f32.mrb[39].mxu0  ;;  %v2426_v38 = vsel %vm1457_vm3, %v2267_v28, -inf }
 0x99a   : > { %2427 = vmax.xlane.f32.xlu0 %v2426_v38 }
 0x99b   : > { %v2429_v56 = vsel %vm1457_vm3, %v2270_v50, -inf }
 0x99c   : > { %2430 = vmax.xlane.f32.xlu1 %v2429_v56 }
 0x9bf   : > { %v2368_v57 = vpop.f32.mrb[40].mxu0 }
 0x9c0   : > { %v4490_v58 = vpop.f32.mrb[41].mxu0  ;;  %v2369_v12 = vadd.f32 %v2368_v57, %v1264_v45 }
 0x9c1   : > { %v2371_v39 = vpop.f32.mrb[42].mxu0 }
 0x9c2   : > { %v2372_v48 = vadd.f32 %v2371_v39, %v1265_v46  ;;  %v6759_v63 = vpop.f32.mrb[48].mxu1  ;;  %v4491_v59 = vpop.f32.mrb[43].mxu0  ;;  %v2438_v47 = vsel %vm1457_vm3, %v2369_v12, -inf }
 0x9c3   : > { %v4472_v51 = vpop.f32.mrb[49].mxu1 }
 0x9c4   : > { %v6761_v62 = vpop.f32.mrb[50].mxu1  ;;  %v2441_v0 = vsel %vm1457_vm3, %v2372_v48, -inf }
 0x9c5   : > { %v4873_v1 = vpack.i.bf16 %v6761_v62, %v6759_v63  ;;  %v4473_v2 = vpop.f32.mrb[51].mxu1  ;;  %2442 = vmax.xlane.f32.xlu1 %v2441_v0 }
 0x9ca   : > { %v2317_v3 = vpop.f32.mrb[52].mxu1 }
 0x9cb   : > { %v2318_v5 = vadd.f32 %v2317_v3, %v1264_v45  ;;  %v4484_v6 = vpop.f32.mrb[53].mxu1 }
 0x9cc   : > { %v2320_v7 = vpop.f32.mrb[54].mxu1 }
 0x9cd   : > { %v2321_v4 = vadd.f32 %v2320_v7, %v1265_v46  ;;  %v4485_v8 = vpop.f32.mrb[55].mxu1  ;;  %v2432_v9 = vsel %vm1457_vm3, %v2318_v5, -inf }
 0x9ce   : > { %2433 = vmax.xlane.f32.xlu0 %v2432_v9 }
 0x9cf   : > { %v2435_v22 = vsel %vm1457_vm3, %v2321_v4, -inf }
 0x9d2   : > { %v2419_v26 = vpop.f32.mrb[56].mxu1  ;;  %2436 = vmax.xlane.f32.xlu0 %v2435_v22 }
 0x9d3   : > { %v2420_v35 = vadd.f32 %v2419_v26, %v1264_v45  ;;  %v4496_v36 = vpop.f32.mrb[57].mxu1 }
 0x9d4   : > { %v2422_v32 = vpop.f32.mrb[58].mxu1 }
 0x9d5   : > { %v6768_v34 = vadd.f32 %v2422_v32, %v1265_v46  ;;  %v4497_v21 = vpop.f32.mrb[59].mxu1  ;;  %v2444_v54 = vsel %vm1457_vm3, %v2420_v35, -inf }
 0x9d6   : > { %2439 = vmax.xlane.f32.xlu0 %v2438_v47  ;;  %2565 = vrot.lane.b32.xlu1 %v6493_v16, %s5745_s28 }
 0x9d7   : > { %v2447_v45 = vsel %vm1457_vm3, %v6768_v34, -inf }
 0x9da   : > { %2445 = vmax.xlane.f32.xlu0 %v2444_v54  ;;  %2612 = vrot.lane.b32.xlu1 %v6505_v43, %s5745_s28 }
 0x9f0   : > { %2518 = vrot.lane.b32.xlu0 %v6497_v18, %s5745_s28 }
 0x9fe   : > { %2448 = vmax.xlane.f32.xlu1 %v2447_v45 }
 0xa0f   : > { %2659 = vrot.lane.b32.xlu1 %v6501_v41, %s5745_s28  ;;  %s7127_s28 = scalar_lea.hbm %s7272_s0, %s4235_s18 }
 0xa27   : > { %v2428_v46 = vpop.xlane.xlu0 %2427 }
 0xa28   : > { %v2450_v38 = vsub.f32 %v2267_v28, %v2428_v46 }
 0xa29   : > { %v2431_v56 = vpop.xlane.xlu1 %2430 }
 0xa2a   : > { %v2458_v57 = vmul.f32 1.442695, %v2450_v38  ;;  %v2451_v58 = vsub.f32 %v2270_v50, %v2431_v56 }
 0xa2c   : > { %5006 = vpow2.f32 %v2458_v57  ;;  %v2460_v39 = vmul.f32 1.442695, %v2451_v58 }
 0xa2e   : > { %5008 = vpow2.f32 %v2460_v39 }
 0xa36   : > { %v6782_v59 = vpop.eup %5006 }
 0xa37   : > { %v2474_v51 = vsel %vm1457_vm3, %v6782_v59, 0.0 }
 0xa38   : > { %v6786_v0 = vpop.eup %5008  ;;  %2475 = vadd.xlane.f32.xlu0 %v2474_v51 }
 0xa39   : > { %v2477_v2 = vsel %vm1457_vm3, %v6786_v0, 0.0 }
 0xa3a   : > { %2478 = vadd.xlane.f32.xlu1 %v2477_v2 }
 0xa52   : > { %v2443_v3 = vpop.xlane.xlu1 %2442 }
 0xa53   : > { %v2455_v7 = vsub.f32 %v2372_v48, %v2443_v3 }
 0xa55   : > { %v2468_v26 = vmul.f32 1.442695, %v2455_v7 }
 0xa56   : > { %v2566_v28 = vpop.permute.xlu1 %2565 }
 0xa57   : > { %4505 = vmatpush3.bf16.msra.mxu1 %v2566_v28 }
 0xa58   : > { %4516 = vmatprep.subr.bf16.mxu1 %v5742_v49 }
 0xa5a   : > { %v2613_v2 = vpop.permute.xlu1 %2612 }
 0xa5b   : > { %v2434_v50 = vpop.xlane.xlu0 %2433 }
 0xa5c   : > { %v2452_v6 = vsub.f32 %v2318_v5, %v2434_v50 }
 0xa5e   : > { %v2462_v8 = vmul.f32 1.442695, %v2452_v6 }
 0xa5f   : > { %v2437_v9 = vpop.xlane.xlu0 %2436 }
 0xa60   : > { %5010 = vpow2.f32 %v2462_v8  ;;  %v2453_v22 = vsub.f32 %v2321_v4, %v2437_v9 }
 0xa62   : > { %v2464_v36 = vmul.f32 1.442695, %v2453_v22 }
 0xa63   : > { %v2440_v32 = vpop.xlane.xlu0 %2439 }
 0xa64   : > { %5012 = vpow2.f32 %v2464_v36  ;;  %v2454_v21 = vsub.f32 %v2369_v12, %v2440_v32 }
 0xa65   : > { %5014 = vpow2.f32 %v2468_v26 }
 0xa66   : > { %v2466_v47 = vmul.f32 1.442695, %v2454_v21 }
 0xa67   : > { %v2446_v54 = vpop.xlane.xlu0 %2445 }
 0xa68   : > { %5016 = vpow2.f32 %v2466_v47  ;;  %v2456_v45 = vsub.f32 %v2420_v35, %v2446_v54 }
 0xa6a   : > { %v5011_v46 = vpop.eup %5010  ;;  %v2470_v38 = vmul.f32 1.442695, %v2456_v45 }
 0xa6b   : > { %v2519_v56 = vpop.permute.xlu0 %2518  ;;  %v2480_v5 = vsel %vm1457_vm3, %v5011_v46, 0.0 }
 0xa6c   : > { %5018 = vpow2.f32 %v2470_v38  ;;  %2481 = vadd.xlane.f32.xlu0 %v2480_v5  ;;  %4499 = vmatpush3.bf16.msra.mxu0 %v2519_v56 }
 0xa6d   : > { %4510 = vmatprep.subr.bf16.mxu0 %v5742_v49 }
 0xa6e   : > { %v5013_v48 = vpop.eup %5012 }
 0xa6f   : > { %v2483_v4 = vsel %vm1457_vm3, %v5013_v48, 0.0  ;;  %v5015_v57 = vpop.eup %5014 }
 0xa70   : > { %2484 = vadd.xlane.f32.xlu1 %v2483_v4  ;;  %v2489_v35 = vsel %vm1457_vm3, %v5015_v57, 0.0 }
 0xa72   : > { %v5017_v12 = vpop.eup %5016 }
 0xa73   : > { %v2486_v58 = vsel %vm1457_vm3, %v5017_v12, 0.0 }
 0xa74   : > { %2487 = vadd.xlane.f32.xlu0 %v2486_v58  ;;  %2490 = vadd.xlane.f32.xlu1 %v2489_v35 }
 0xa76   : > { %v6796_v39 = vpop.eup %5018 }
 0xa77   : > { %v2492_v51 = vsel %vm1457_vm3, %v6796_v39, 0.0 }
 0xa78   : > { %2493 = vadd.xlane.f32.xlu0 %v2492_v51 }
 0xa85   : > { %2759 = vrot.lane.b32.xlu1 %v6507_v29, %s5746_s23 }
 0xa8b   : > { %v2449_v3 = vpop.xlane.xlu1 %2448 }
 0xa8c   : > { %v2457_v28 = vsub.f32 %v6768_v34, %v2449_v3 }
 0xa8e   : > { %2708 = vrot.lane.b32.xlu0 %v6509_v53, %s5746_s23  ;;  %v2472_v50 = vmul.f32 1.442695, %v2457_v28 }
 0xa90   : > { %5020 = vpow2.f32 %v2472_v50 }
 0xa92   : > { %2706 = vrot.lane.b32.xlu0 %v6495_v17, %s5746_s23 }
 0xa96   : > { %2757 = vrot.lane.b32.xlu0 %v6491_v15, %s5746_s23  ;;  %v2660_v15 = vpop.permute.xlu1 %2659 }
 0xa9a   : > { %2808 = vrot.lane.b32.xlu0 %v6503_v42, %s5746_s23  ;;  %v6811_v6 = vpop.eup %5020 }
 0xa9b   : > { %v2495_v29 = vsel %vm1457_vm3, %v6811_v6, 0.0 }
 0xaa9   : > { %2496 = vadd.xlane.f32.xlu1 %v2495_v29 }
 0xaba   : > { %2810 = vrot.lane.b32.xlu1 %v6516_v60, %s5746_s23 }
 0xabe   : > { %2861 = vrot.lane.b32.xlu1 %v6514_v61, %s5746_s23 }
 0xac2   : > { %2859 = vrot.lane.b32.xlu1 %v6499_v20, %s5746_s23 }
 0xac5   : > { %v2476_v17 = vpop.xlane.xlu0 %2475 }
 0xac6   : > { %5022 = vrcp.f32 %v2476_v17 }
 0xac7   : > { %v2479_v42 = vpop.xlane.xlu1 %2478 }
 0xac8   : > { %5024 = vrcp.f32 %v2479_v42 }
 0xad0   : > { %v5023_v53 = vpop.eup %5022 }
 0xad1   : > { %v2506_v7 = vmul.f32 %v5023_v53, %v6782_v59 }
 0xad2   : > { %v5025_v34 = vpop.eup %5024 }
 0xad3   : > { %v2507_v8 = vmul.f32 %v5025_v34, %v6786_v0 }
 0xad5   : > { %v2514_v9 = vpack.c.bf16 %v2507_v8, %v2506_v7 }
 0xad7   : > { %4501 = vmatmul.mubr.msk.bf16.vlgmr.msra.gmra.mrb[44].mxu0 %vm1457_vm3, %v2514_v9 }
 0xad8   : > { %4511 = vmatpush3.bf16.msra.mxu0 %v2613_v2  ;;  %4512 = vmatprep.mubr.msk.bf16.mxu0 %vm5743_vm1, %v5742_v49 }
 0xad9   : > { %4522 = vmatprep.subr.bf16.mxu0 %v5742_v49 }
 0xaf9   : > { %v2482_v20 = vpop.xlane.xlu0 %2481 }
 0xafa   : > { %5026 = vrcp.f32 %v2482_v20 }
 0xafd   : > { %v2485_v61 = vpop.xlane.xlu1 %2484 }
 0xafe   : > { %5028 = vrcp.f32 %v2485_v61 }
 0xb01   : > { %v2488_v60 = vpop.xlane.xlu0 %2487  ;;  %v2491_v22 = vpop.xlane.xlu1 %2490 }
 0xb02   : > { %5030 = vrcp.f32 %v2488_v60 }
 0xb03   : > { %5032 = vrcp.f32 %v2491_v22 }
 0xb04   : > { %v5027_v59 = vpop.eup %5026 }
 0xb05   : > { %v2508_v0 = vmul.f32 %v5027_v59, %v5011_v46  ;;  %v2494_v32 = vpop.xlane.xlu0 %2493 }
 0xb06   : > { %5034 = vrcp.f32 %v2494_v32 }
 0xb08   : > { %v5029_v26 = vpop.eup %5028 }
 0xb09   : > { %v2509_v36 = vmul.f32 %v5029_v26, %v5013_v48  ;;  %v2709_v56 = vpop.permute.xlu0 %2708  ;;  %v2760_v48 = vpop.permute.xlu1 %2759 }
 0xb0a   : > { %v2714_v4 = vsel %vm1268_vm2, %v2709_v56, 0 }
 0xb0b   : > { %v2515_v21 = vpack.c.bf16 %v2509_v36, %v2508_v0 }
 0xb0c   : > { %v5031_v47 = vpop.eup %5030 }
 0xb0d   : > { %v5033_v54 = vpop.eup %5032  ;;  %v2510_v45 = vmul.f32 %v5031_v47, %v5017_v12  ;;  %4507 = vmatmul.mubr.msk.bf16.vlgmr.msra.gmra.mrb[60].mxu1 %vm1457_vm3, %v2515_v21  ;;  %v2707_v46 = vpop.permute.xlu0 %2706  ;;  %v1266_v21 = vld [vmem:[#allocation20 + $0x30] sm:$0xff] }
 0xb0e   : > { %v2511_v38 = vmul.f32 %v5033_v54, %v5015_v57  ;;  %4517 = vmatpush3.bf16.msra.mxu1 %v2660_v15  ;;  %4518 = vmatprep.mubr.msk.bf16.mxu1 %vm5743_vm1, %v5742_v49  ;;  %v2765_v15 = vsel %vm1268_vm2, %v2760_v48, 0  ;;  %v1267_v54 = vld [vmem:[#allocation20 + $0x38] sm:$0xff] }
 0xb0f   : > { %4528 = vmatprep.subr.bf16.mxu1 %v5742_v49 }
 0xb10   : > { %v2516_v5 = vpack.c.bf16 %v2511_v38, %v2510_v45  ;;  %v5035_v51 = vpop.eup %5034 }
 0xb11   : > { %v2758_v35 = vpop.permute.xlu0 %2757  ;;  %v2512_v3 = vmul.f32 %v5035_v51, %v6796_v39 }
 0xb12   : > { %4513 = vmatmul.mubr.msk.bf16.vlgmr.msra.gmra.mrb[48].mxu0 %vm1457_vm3, %v2516_v5 }
 0xb13   : > { %4523 = vmatpush3.bf16.xpose.msra.mxu0 %v2714_v4  ;;  %4524 = vmatprep.mubr.msk.bf16.mxu0 %vm5743_vm1, %v5742_v49 }
 0xb14   : > { %4534 = vmatprep.subr.bf16.mxu0 %v5742_v49 }
 0xb15   : > { %v2809_v28 = vpop.permute.xlu0 %2808 }
 0xb1a   : > { %4525 = vmatmul.mubr.msk.bf16.vlgmr.msra.gmra.mrb[52].mxu0 %vm1268_vm2, %v2707_v46 }
 0xb1b   : > { %4536 = vmatprep.mubr.msk.bf16.mxu0 %vm5743_vm1, %v5742_v49 }
 0xb36   : > { %v2497_v57 = vpop.xlane.xlu1 %2496 }
 0xb37   : > { %5036 = vrcp.f32 %v2497_v57 }
 0xb3a   : > { %v2811_v12 = vpop.permute.xlu1 %2810 }
 0xb3b   : > { %v2816_v58 = vsel %vm1268_vm2, %v2811_v12, 0 }
 0xb3c   : > { %4535 = vmatpush3.bf16.xpose.msra.mxu0 %v2816_v58 }
 0xb3d   : > { %4546 = vmatprep.subr.bf16.mxu0 %v5742_v49 }
 0xb3e   : > { %v2862_v39 = vpop.permute.xlu1 %2861 }
 0xb3f   : > { %v2867_v17 = vsel %vm1268_vm2, %v2862_v39, 0 }
 0xb41   : > { %v5037_v2 = vpop.eup %5036 }
 0xb42   : > { %v2513_v50 = vmul.f32 %v5037_v2, %v6811_v6  ;;  %v2860_v6 = vpop.permute.xlu1 %2859 }
 0xb43   : > { %4537 = vmatmul.mubr.msk.bf16.vlgmr.msra.gmra.mrb[56].mxu0 %vm1268_vm2, %v2809_v28 }
 0xb44   : > { %v2517_v29 = vpack.c.bf16 %v2513_v50, %v2512_v3  ;;  %4548 = vmatprep.mubr.msk.bf16.mxu0 %vm5743_vm1, %v5742_v49 }
 0xb46   : > { %4519 = vmatmul.mubr.msk.bf16.vlgmr.msra.gmra.mrb[64].mxu1 %vm1457_vm3, %v2517_v29 }
 0xb47   : > { %4529 = vmatpush3.bf16.xpose.msra.mxu1 %v2765_v15  ;;  %4530 = vmatprep.mubr.msk.bf16.mxu1 %vm5743_vm1, %v5742_v49 }
 0xb48   : > { %4540 = vmatprep.subr.bf16.mxu1 %v5742_v49 }
 0xb4e   : > { %4531 = vmatmul.mubr.msk.bf16.vlgmr.msra.gmra.mrb[68].mxu1 %vm1268_vm2, %v2758_v35 }
 0xb4f   : > { %4541 = vmatpush3.bf16.xpose.msra.mxu1 %v2867_v17  ;;  %4542 = vmatprep.mubr.msk.bf16.mxu1 %vm5743_vm1, %v5742_v49 }
 0xb50   : > { %4552 = vmatprep.subr.bf16.mxu1 %v5742_v49 }
 0xb56   : > { %4543 = vmatmul.mubr.msk.bf16.vlgmr.msra.gmra.mrb[72].mxu1 %vm1268_vm2, %v2860_v6 }
 0xb57   : > { %4554 = vmatprep.mubr.msk.bf16.mxu1 %vm5743_vm1, %v5742_v49 }
 0xbaa   : > { %v6859_v42 = vpop.f32.mrb[44].mxu0 }
 0xbab   : > { %v4502_v53 = vpop.f32.mrb[45].mxu0 }
 0xbac   : > { %v6861_v34 = vpop.f32.mrb[46].mxu0 }
 0xbad   : > { %v4858_v7 = vpack.i.bf16 %v6861_v34, %v6859_v42  ;;  %v4503_v8 = vpop.f32.mrb[47].mxu0 }
 0xbe0   : > { %v6865_v9 = vpop.f32.mrb[60].mxu1 }
 0xbe1   : > { %v4508_v20 = vpop.f32.mrb[61].mxu1 }
 0xbe2   : > { %v6867_v61 = vpop.f32.mrb[62].mxu1 }
 0xbe3   : > { %v4863_v60 = vpack.i.bf16 %v6867_v61, %v6865_v9  ;;  %v4509_v22 = vpop.f32.mrb[63].mxu1 }
 0xbe5   : > { %v6871_v59 = vpop.f32.mrb[48].mxu0 }
 0xbe6   : > { %v4514_v26 = vpop.f32.mrb[49].mxu0 }
 0xbe7   : > { %v6873_v0 = vpop.f32.mrb[50].mxu0 }
 0xbe8   : > { %v4883_v36 = vpack.i.bf16 %v6873_v0, %v6871_v59  ;;  %v4515_v32 = vpop.f32.mrb[51].mxu0 }
 0xbed   : > { %v2750_v47 = vpop.f32.mrb[52].mxu0 }
 0xbee   : > { %v2751_v45 = vadd.f32 %v2750_v47, %v1266_v21  ;;  %v4526_v38 = vpop.f32.mrb[53].mxu0 }
 0xbef   : > { %v2753_v56 = vpop.f32.mrb[54].mxu0 }
 0xbf0   : > { %v2754_v5 = vadd.f32 %v2753_v56, %v1267_v54  ;;  %v4527_v4 = vpop.f32.mrb[55].mxu0  ;;  %v2910_v46 = vsel %vm1457_vm3, %v2751_v45, -inf }
 0xbf1   : > { %2911 = vmax.xlane.f32.xlu0 %v2910_v46 }
 0xbf2   : > { %v2913_v48 = vsel %vm1457_vm3, %v2754_v5, -inf }
 0xbf3   : > { %2914 = vmax.xlane.f32.xlu1 %v2913_v48 }
 0xc16   : > { %v2852_v57 = vpop.f32.mrb[56].mxu0 }
 0xc17   : > { %v4538_v12 = vpop.f32.mrb[57].mxu0  ;;  %v2853_v26 = vadd.f32 %v2852_v57, %v1266_v21 }
 0xc18   : > { %v2855_v58 = vpop.f32.mrb[58].mxu0 }
 0xc19   : > { %v2856_v35 = vadd.f32 %v2855_v58, %v1267_v54  ;;  %v6879_v51 = vpop.f32.mrb[64].mxu1  ;;  %v4539_v2 = vpop.f32.mrb[59].mxu0  ;;  %v2922_v12 = vsel %vm1457_vm3, %v2853_v26, -inf }
 0xc1a   : > { %v4520_v3 = vpop.f32.mrb[65].mxu1 }
 0xc1b   : > { %v6881_v28 = vpop.f32.mrb[66].mxu1  ;;  %v2925_v50 = vsel %vm1457_vm3, %v2856_v35, -inf }
 0xc1c   : > { %v4893_v29 = vpack.i.bf16 %v6881_v28, %v6879_v51  ;;  %v4521_v15 = vpop.f32.mrb[67].mxu1  ;;  %2926 = vmax.xlane.f32.xlu1 %v2925_v50 }
 0xc21   : > { %v2801_v39 = vpop.f32.mrb[68].mxu1 }
 0xc22   : > { %v2802_v17 = vadd.f32 %v2801_v39, %v1266_v21  ;;  %v4532_v6 = vpop.f32.mrb[69].mxu1 }
 0xc23   : > { %v2804_v53 = vpop.f32.mrb[70].mxu1 }
 0xc24   : > { %v2805_v8 = vadd.f32 %v2804_v53, %v1267_v54  ;;  %v4533_v20 = vpop.f32.mrb[71].mxu1  ;;  %v2916_v22 = vsel %vm1457_vm3, %v2802_v17, -inf }
 0xc25   : > { %2917 = vmax.xlane.f32.xlu0 %v2916_v22 }
 0xc26   : > { %v2919_v32 = vsel %vm1457_vm3, %v2805_v8, -inf }
 0xc29   : > { %v2903_v47 = vpop.f32.mrb[72].mxu1  ;;  %2920 = vmax.xlane.f32.xlu0 %v2919_v32 }
 0xc2a   : > { %v2904_v38 = vadd.f32 %v2903_v47, %v1266_v21  ;;  %v4544_v56 = vpop.f32.mrb[73].mxu1 }
 0xc2b   : > { %v2906_v4 = vpop.f32.mrb[74].mxu1 }
 0xc2c   : > { %v6888_v46 = vadd.f32 %v2906_v4, %v1267_v54  ;;  %v4545_v48 = vpop.f32.mrb[75].mxu1  ;;  %v2928_v2 = vsel %vm1457_vm3, %v2904_v38, -inf }
 0xc2d   : > { %2923 = vmax.xlane.f32.xlu0 %v2922_v12 }
 0xc2e   : > { %v2931_v58 = vsel %vm1457_vm3, %v6888_v46, -inf }
 0xc2f   : > { %2932 = vmax.xlane.f32.xlu1 %v2931_v58 }
 0xc31   : > { %2929 = vmax.xlane.f32.xlu0 %v2928_v2 }
 0xc7e   : > { %v2912_v57 = vpop.xlane.xlu0 %2911 }
 0xc7f   : > { %v2934_v3 = vsub.f32 %v2751_v45, %v2912_v57 }
 0xc80   : > { %v2915_v50 = vpop.xlane.xlu1 %2914 }
 0xc81   : > { %v2942_v15 = vmul.f32 1.442695, %v2934_v3  ;;  %v2935_v21 = vsub.f32 %v2754_v5, %v2915_v50 }
 0xc83   : > { %5038 = vpow2.f32 %v2942_v15  ;;  %v2944_v39 = vmul.f32 1.442695, %v2935_v21 }
 0xc85   : > { %5040 = vpow2.f32 %v2944_v39 }
 0xc8d   : > { %v6894_v54 = vpop.eup %5038 }
 0xc8e   : > { %v2958_v6 = vsel %vm1457_vm3, %v6894_v54, 0.0 }
 0xc8f   : > { %v6898_v53 = vpop.eup %5040  ;;  %2959 = vadd.xlane.f32.xlu0 %v2958_v6 }
 0xc90   : > { %v2961_v20 = vsel %vm1457_vm3, %v6898_v53, 0.0 }
 0xc91   : > { %2962 = vadd.xlane.f32.xlu1 %v2961_v20 }
 0xca9   : > { %v2927_v22 = vpop.xlane.xlu1 %2926 }
 0xcaa   : > { %v2939_v47 = vsub.f32 %v2856_v35, %v2927_v22 }
 0xcac   : > { %v2952_v48 = vmul.f32 1.442695, %v2939_v47 }
 0xcb2   : > { %v2918_v45 = vpop.xlane.xlu0 %2917 }
 0xcb3   : > { %v2936_v32 = vsub.f32 %v2802_v17, %v2918_v45 }
 0xcb5   : > { %v2946_v5 = vmul.f32 1.442695, %v2936_v32 }
 0xcb6   : > { %v2921_v56 = vpop.xlane.xlu0 %2920 }
 0xcb7   : > { %5042 = vpow2.f32 %v2946_v5  ;;  %v2937_v4 = vsub.f32 %v2805_v8, %v2921_v56 }
 0xcb9   : > { %v2948_v12 = vmul.f32 1.442695, %v2937_v4 }
 0xcba   : > { %v2924_v58 = vpop.xlane.xlu0 %2923 }
 0xcbb   : > { %5044 = vpow2.f32 %v2948_v12  ;;  %v2938_v2 = vsub.f32 %v2853_v26, %v2924_v58 }
 0xcbc   : > { %5046 = vpow2.f32 %v2952_v48  ;;  %v2933_v45 = vpop.xlane.xlu1 %2932 }
 0xcbd   : > { %v2950_v57 = vmul.f32 1.442695, %v2938_v2 }
 0xcbe   : > { %v2930_v3 = vpop.xlane.xlu0 %2929 }
 0xcbf   : > { %5048 = vpow2.f32 %v2950_v57  ;;  %v2940_v50 = vsub.f32 %v2904_v38, %v2930_v3 }
 0xcc1   : > { %v5043_v15 = vpop.eup %5042  ;;  %v2954_v21 = vmul.f32 1.442695, %v2940_v50  ;;  %v4914_v50 = vld [vmem:[#allocation17] sm:$0xff]  }
 0xcc2   : > { %v2964_v39 = vsel %vm1457_vm3, %v5043_v15, 0.0 }
 0xcc3   : > { %5050 = vpow2.f32 %v2954_v21  ;;  %2965 = vadd.xlane.f32.xlu0 %v2964_v39 }
 0xcc5   : > { %v5045_v35 = vpop.eup %5044 }
 0xcc6   : > { %v2967_v17 = vsel %vm1457_vm3, %v5045_v35, 0.0  ;;  %v6904_v8 = vpop.eup %5046 }
 0xcc7   : > { %2968 = vadd.xlane.f32.xlu1 %v2967_v17  ;;  %v2973_v38 = vsel %vm1457_vm3, %v6904_v8, 0.0 }
 0xcc9   : > { %v6906_v6 = vpop.eup %5048 }
 0xcca   : > { %v2970_v26 = vsel %vm1457_vm3, %v6906_v6, 0.0 }
 0xccb   : > { %2971 = vadd.xlane.f32.xlu0 %v2970_v26  ;;  %2974 = vadd.xlane.f32.xlu1 %v2973_v38 }
 0xccd   : > { %v6912_v20 = vpop.eup %5050 }
 0xcce   : > { %v2976_v22 = vsel %vm1457_vm3, %v6912_v20, 0.0 }
 0xccf   : > { %2977 = vadd.xlane.f32.xlu0 %v2976_v22 }
 0xcdc   : > { %3049 = vrot.lane.b32.xlu1 %v6493_v16, %s5746_s23  ;;  %v2941_v16 = vsub.f32 %v6888_v46, %v2933_v45 }
 0xce0   : > { %3096 = vrot.lane.b32.xlu1 %v6505_v43, %s5746_s23 }
 0xce5   : > { %3002 = vrot.lane.b32.xlu0 %v6497_v18, %s5746_s23  ;;  %v2956_v18 = vmul.f32 1.442695, %v2941_v16 }
 0xce7   : > { %5052 = vpow2.f32 %v2956_v18 }
 0xce9   : > { %4849 = vrot.lane.b32.xlu0 %v4848_v10, %s5747_s21 }
 0xced   : > { %4859 = vrot.lane.b32.xlu0 %v4858_v7, %s5748_s1 }
 0xcf1   : > { %4869 = vrot.lane.b32.xlu0 %v4868_v44, %s5747_s21  ;;  %v5053_v43 = vpop.eup %5052 }
 0xcf2   : > { %v2979_v11 = vsel %vm1457_vm3, %v5053_v43, 0.0 }
 0xd04   : > { %2980 = vadd.xlane.f32.xlu1 %v2979_v11 }
 0xd15   : > { %3143 = vrot.lane.b32.xlu1 %v6501_v41, %s5746_s23  ;;  %s5616_s23 = scalar_lea.vmem %s7131_s29, 1024 }
 0xd16   : > { %p5617_p5 = scmp.ne.s32.totalorder %s7131_s29, %s5616_s23 }
 0xd18   : > { %p5618_p7 = pnand %p5617_p5, %p7273_p9 }
 0xd19   : > { %4854 = vrot.lane.b32.xlu1 %v4853_v33, %s5747_s21 }
 0xd1a   : > { %p5619_p10 = pneg %p5618_p7 }
 0xd1c   : > { %v2960_v14 = vpop.xlane.xlu0 %2959 }
 0xd1d   : > { %4864 = vrot.lane.b32.xlu1 %v4863_v60, %s5748_s1 }
 0xd1e   : > { %v2963_v10 = vpop.xlane.xlu1 %2962 }
 0xd1f   : > { %5054 = vrcp.f32 %v2963_v10 }
 0xd20   : > { %5056 = vrcp.f32 %v2960_v14 }
 0xd21   : > { %4874 = vrot.lane.b32.xlu1 %v4873_v1, %s5747_s21 }
 0xd29   : > { %v5055_v33 = vpop.eup %5054 }
 0xd2a   : > { %v5057_v40 = vpop.eup %5056  ;;  %v2991_v63 = vmul.f32 %v5055_v33, %v6898_v53 }
 0xd2b   : > { %v2990_v1 = vmul.f32 %v5057_v40, %v6894_v54 }
 0xd2d   : > { %v2998_v60 = vpack.c.bf16 %v2991_v63, %v2990_v1 }
 0xd50   : > { %v2966_v37 = vpop.xlane.xlu0 %2965 }
 0xd51   : > { %5058 = vrcp.f32 %v2966_v37 }
 0xd54   : > { %v2969_v41 = vpop.xlane.xlu1 %2968 }
 0xd55   : > { %5060 = vrcp.f32 %v2969_v41 }
 0xd58   : > { %v2972_v24 = vpop.xlane.xlu0 %2971  ;;  %v2975_v30 = vpop.xlane.xlu1 %2974 }
 0xd59   : > { %5062 = vrcp.f32 %v2972_v24 }
 0xd5a   : > { %5064 = vrcp.f32 %v2975_v30 }
 0xd5b   : > { %v5059_v34 = vpop.eup %5058 }
 0xd5c   : > { %v2978_v44 = vpop.xlane.xlu0 %2977  ;;  %v3050_v42 = vpop.permute.xlu1 %3049  ;;  %v2992_v7 = vmul.f32 %v5059_v34, %v5043_v15 }
 0xd5d   : > { %4553 = vmatpush3.bf16.msra.mxu1 %v3050_v42  ;;  %5066 = vrcp.f32 %v2978_v44 }
 0xd5e   : > { %4564 = vmatprep.subr.bf16.mxu1 %v5742_v49 }
 0xd5f   : > { %v5061_v62 = vpop.eup %5060 }
 0xd60   : > { %v2993_v9 = vmul.f32 %v5061_v62, %v5045_v35  ;;  %v3003_v61 = vpop.permute.xlu0 %3002  ;;  %v3097_v5 = vpop.permute.xlu1 %3096 }
 0xd61   : > { %4547 = vmatpush3.bf16.msra.mxu0 %v3003_v61 }
 0xd62   : > { %4558 = vmatprep.subr.bf16.mxu0 %v5742_v49  ;;  %v2999_v46 = vpack.c.bf16 %v2993_v9, %v2992_v7 }
 0xd63   : > { %v5063_v32 = vpop.eup %5062 }
 0xd64   : > { %v5065_v47 = vpop.eup %5064  ;;  %4549 = vmatmul.mubr.msk.bf16.vlgmr.msra.gmra.mrb[60].mxu0 %vm1457_vm3, %v2998_v60  ;;  %4555 = vmatmul.mubr.msk.bf16.vlgmr.msra.gmra.mrb[76].mxu1 %vm1457_vm3, %v2999_v46  ;;  %v2994_v54 = vmul.f32 %v5063_v32, %v6906_v6  ;;  %v4850_v24 = vpop.permute.xlu0 %4849 }
 0xd65   : > { %4559 = vmatpush3.bf16.msra.mxu0 %v3097_v5  ;;  %4560 = vmatprep.mubr.msk.bf16.mxu0 %vm5743_vm1, %v5742_v49  ;;  %v2995_v53 = vmul.f32 %v5065_v47, %v6904_v8  ;;  %v4851_v33 = vunpack.i.l.bf16 %v4850_v24 }
 0xd66   : > { %4566 = vmatprep.mubr.msk.bf16.mxu1 %vm5743_vm1, %v5742_v49  ;;  %4570 = vmatprep.subr.bf16.mxu0 %v4914_v50  ;;  %v4915_v49 = vld [vmem:[#allocation17 + $0x8] sm:$0xff]  }
 0xd67   : > { %v3000_v56 = vpack.c.bf16 %v2995_v53, %v2994_v54  ;;  %v5067_v12 = vpop.eup %5066  ;;  %v3286_v1 = vsel %vm1268_vm2, %v6627_v13, %v4851_v33 }
 0xd68   : > { %v2996_v2 = vmul.f32 %v5067_v12, %v6912_v20  ;;  %v4860_v51 = vpop.permute.xlu0 %4859 }
 0xd69   : > { %v4862_v44 = vunpack.i.h.bf16 %v4860_v51  ;;  %v4861_v42 = vunpack.i.l.bf16 %v4860_v51 }
 0xd6b   : > { %v3294_v54 = vsel %vm1457_vm3, %v3286_v1, %v4861_v42 }
 0xd6c   : > { %4561 = vmatmul.mubr.msk.bf16.vlgmr.msra.gmra.mrb[64].mxu0 %vm1457_vm3, %v3000_v56  ;;  %v4870_v40 = vpop.permute.xlu0 %4869 }
 0xd6d   : > { %4571 = vmatpush3.bf16.msra.mxu0 %v4914_v50 }
 0xd6e   : > { %4572 = vmatprep.subr.bf16.mxu0 %v4915_v49 }
 0xd71   : > { %4573 = vmatpush3.bf16.msra.mxu0 %v4915_v49 }
 0xd91   : > { %v2981_v4 = vpop.xlane.xlu1 %2980 }
 0xd92   : > { %5068 = vrcp.f32 %v2981_v4 }
 0xd95   : > { %v3144_v48 = vpop.permute.xlu1 %3143 }
 0xd96   : > { %4565 = vmatpush3.bf16.msra.mxu1 %v3144_v48 }
 0xd99   : > { %v4855_v30 = vpop.permute.xlu1 %4854 }
 0xd9a   : > { %v4857_v59 = vunpack.i.h.bf16 %v4855_v30  ;;  %v4856_v0 = vunpack.i.l.bf16 %v4855_v30 }
 0xd9c   : > { %v5069_v58 = vpop.eup %5068  ;;  %v3289_v7 = vsel %vm1268_vm2, %v6633_v25, %v4857_v59  ;;  %v3288_v9 = vsel %vm1268_vm2, %v6631_v23, %v4856_v0  ;;  %v5102_v59 = vld [vmem:[%s6363_s20] sm:$0xff] }
 0xd9d   : > { %v2997_v57 = vmul.f32 %v5069_v58, %v5053_v43  ;;  %v4865_v28 = vpop.permute.xlu1 %4864 }
 0xd9e   : > { %v4867_v34 = vunpack.i.h.bf16 %v4865_v28  ;;  %v4866_v63 = vunpack.i.l.bf16 %v4865_v28 }
 0xd9f   : > { %v3001_v3 = vpack.c.bf16 %v2997_v57, %v2996_v2  ;;  %v4872_v2 = vunpack.i.h.bf16 %v4870_v40  ;;  %v4871_v57 = vunpack.i.l.bf16 %v4870_v40 }
 0xda0   : > { %v3296_v53 = vsel %vm1457_vm3, %v3288_v9, %v4866_v63  ;;  %v3297_v13 = vsel %vm1457_vm3, %v3289_v7, %v4867_v34  ;;  %v5104_v63 = vld [vmem:[%s6363_s20 + $0x8] sm:$0xff]  ;;  %v5105_v9 = vld [vmem:[%s6363_s20 + $0x18] sm:$0xff] }
 0xda1   : > { %4567 = vmatmul.mubr.msk.bf16.vlgmr.msra.gmra.mrb[80].mxu1 %vm1457_vm3, %v3001_v3 }
 0xe37   : > { %v3042_v15 = vpop.f32.mrb[60].mxu0  ;;  %v3089_v21 = vpop.f32.mrb[76].mxu1 }
 0xe38   : > { %v4550_v39 = vpop.f32.mrb[61].mxu0  ;;  %v4556_v35 = vpop.f32.mrb[77].mxu1 }
 0xe39   : > { %v3045_v17 = vpop.f32.mrb[62].mxu0  ;;  %v3092_v8 = vpop.f32.mrb[78].mxu1 }
 0xe3a   : > { %v4878_v6 = vpack.i.bf16 %v3045_v17, %v3042_v15  ;;  %v4888_v26 = vpack.i.bf16 %v3092_v8, %v3089_v21  ;;  %v4551_v38 = vpop.f32.mrb[63].mxu0  ;;  %v4557_v20 = vpop.f32.mrb[79].mxu1  ;;  %v3291_v15 = vsel %vm1268_vm2, %v6637_v31, %v4872_v2  ;;  %v3290_v21 = vsel %vm1268_vm2, %v6635_v27, %v4871_v57  ;;  %v5109_v57 = vld [vmem:[%s6363_s20 + $0x38] sm:$0xff] }
 0xe3c   : > { %4889 = vrot.lane.b32.xlu1 %v4888_v26, %s5749_s30  ;;  %4879 = vrot.lane.b32.xlu0 %v4878_v6, %s5749_s30 }
 0xe3f   : > { %v3136_v22 = vpop.f32.mrb[64].mxu0 }
 0xe40   : > { %4894 = vrot.lane.b32.xlu1 %v4893_v29, %s5748_s1  ;;  %4884 = vrot.lane.b32.xlu0 %v4883_v36, %s5748_s1  ;;  %v4562_v45 = vpop.f32.mrb[65].mxu0  ;;  %v4852_v29 = vunpack.i.h.bf16 %v4850_v24  ;;  %v4875_v36 = vpop.permute.xlu1 %4874  ;;  %s5750_s1 = smov [#allocation31]  }
 0xe41   : > { %v3139_v16 = vpop.f32.mrb[66].mxu0  ;;  %v4876_v45 = vunpack.i.l.bf16 %v4875_v36 }
 0xe42   : > { %v4898_v18 = vpack.i.bf16 %v3139_v16, %v3136_v22  ;;  %v4563_v43 = vpop.f32.mrb[67].mxu0  ;;  %v3287_v62 = vsel %vm1268_vm2, %v6629_v19, %v4852_v29  ;;  %v4877_v22 = vunpack.i.h.bf16 %v4875_v36 }
 0xe43   : > { %v3295_v19 = vsel %vm1457_vm3, %v3287_v62, %v4862_v44  ;;  %v3292_v43 = vsel %vm1268_vm2, %v6641_v52, %v4876_v45  ;;  %v5103_v44 = vld [vmem:[%s6363_s20 + $0x10] sm:$0xff] }
 0xe44   : > { %4899 = vrot.lane.b32.xlu0 %v4898_v18, %s5749_s30  ;;  %v3293_v27 = vsel %vm1268_vm2, %v6643_v55, %v4877_v22  ;;  %v4204_v55 = vld [vmem:[#allocation19] ss:$0 sm:$0xff] }
 0xe74   : > { %v3183_v11 = vpop.f32.mrb[80].mxu1 }
 0xe75   : > { %v4568_v14 = vpop.f32.mrb[81].mxu1 }
 0xe76   : > { %v3186_v10 = vpop.f32.mrb[82].mxu1 }
 0xe77   : > { %v4903_v37 = vpack.i.bf16 %v3186_v10, %v3183_v11  ;;  %v4569_v41 = vpop.f32.mrb[83].mxu1 }
 0xe79   : > { %4904 = vrot.lane.b32.xlu1 %v4903_v37, %s5749_s30  ;;  %s5620_s30 = sshll.u32 %s5750_s1, 4  ;;  %s5621_s30 = int_to_ptr.vmem [resolvable:$false] %s5620_s30 }
 0xe7a   : > { %s5622_s18 = scalar_lea.vmem %s5621_s30, 2048  ;;  %p5623_p4 = scmp.lt.s32.totalorder %s7131_s29, %s5621_s30 }
 0xe7b   : > { %p5624_p13 = scmp.lt.s32.totalorder %s5622_s18, %s5616_s23 }
 0xe7d   : > { %p5625_p1 = por %p5624_p13, %p5623_p4 }
 0xe7f   : > { %p5626_p3 = pnand %p5625_p1, %p5619_p10 }
 0xeae   : > { %v4890_v61 = vpop.permute.xlu1 %4889  ;;  %v4880_v60 = vpop.permute.xlu0 %4879 }
 0xeaf   : > { %v4892_v46 = vunpack.i.h.bf16 %v4890_v61  ;;  %v4891_v32 = vunpack.i.l.bf16 %v4890_v61  ;;  %v4882_v47 = vunpack.i.h.bf16 %v4880_v60  ;;  %v4881_v5 = vunpack.i.l.bf16 %v4880_v60 }
 0xeb1   : > { %v3305_v25 = vsel %vm3302_vm4, %v3296_v53, %v4891_v32  ;;  %v3306_v56 = vsel %vm3302_vm4, %v3297_v13, %v4892_v46  ;;  %v3304_v23 = vsel %vm3302_vm4, %v3295_v19, %v4882_v47  ;;  %v3303_v4 = vsel %vm3302_vm4, %v3294_v54, %v4881_v5 }
 0xeb2   : > { %v3312_v48 = vpack.c.bf16 %v3306_v56, %v3305_v25  ;;  %v3311_v12 = vpack.c.bf16 %v3304_v23, %v3303_v4  ;;  %v4885_v58 = vpop.permute.xlu0 %4884  ;;  %v4895_v20 = vpop.permute.xlu1 %4894  ;;  %v5106_v25 = vld [vmem:[%s6363_s20 + $0x20] sm:$0xff]  ;;  %v5107_v4 = vld [vmem:[%s6363_s20 + $0x30] sm:$0xff] }
 0xeb3   : > { %v4887_v3 = vunpack.i.h.bf16 %v4885_v58  ;;  %v4886_v50 = vunpack.i.l.bf16 %v4885_v58  ;;  %v4897_v31 = vunpack.i.h.bf16 %v4895_v20  ;;  %v4896_v16 = vunpack.i.l.bf16 %v4895_v20 }
 0xeb4   : > { %4574 = vmatprep.mubr.msk.bf16.mxu0 %vm832_vm0, %v3311_v12  ;;  %v5108_v12 = vld [vmem:[%s6363_s20 + $0x28] sm:$0xff] }
 0xeb5   : > { %4575 = vmatmul.mubr.msk.bf16.vlgmr.msra.gmra.mrb[68].mxu0 %vm832_vm0, %v3312_v48  ;;  %v3299_v17 = vsel %vm1457_vm3, %v3291_v15, %v4887_v3  ;;  %v3298_v8 = vsel %vm1457_vm3, %v3290_v21, %v4886_v50  ;;  %v3300_v10 = vsel %vm1457_vm3, %v3292_v43, %v4896_v16  ;;  %v3301_v37 = vsel %vm1457_vm3, %v3293_v27, %v4897_v31 }
 0xeb6   : > { %v4900_v49 = vpop.permute.xlu0 %4899 }
 0xeb7   : > { %v4902_v39 = vunpack.i.h.bf16 %v4900_v49  ;;  %v4901_v35 = vunpack.i.l.bf16 %v4900_v49 }
 0xeb9   : > { %v3308_v6 = vsel %vm3302_vm4, %v3299_v17, %v4902_v39  ;;  %v3307_v26 = vsel %vm3302_vm4, %v3298_v8, %v4901_v35 }
 0xeba   : > { %v3313_v38 = vpack.c.bf16 %v3308_v6, %v3307_v26 }
 0xebc   : > { %4578 = vmatprep.mubr.msk.bf16.mxu0 %vm832_vm0, %v3313_v38 }
 0xeeb   : > { %v4905_v18 = vpop.permute.xlu1 %4904 }
 0xeec   : > { %v4907_v11 = vunpack.i.h.bf16 %v4905_v18  ;;  %v4906_v14 = vunpack.i.l.bf16 %v4905_v18 }
 0xeee   : > { %v3309_v41 = vsel %vm3302_vm4, %v3300_v10, %v4906_v14  ;;  %v3310_v24 = vsel %vm3302_vm4, %v3301_v37, %v4907_v11 }
 0xeef   : > { %v3314_v30 = vpack.c.bf16 %v3310_v24, %v3309_v41  ;;  %v4916_v41 = vld [vmem:[#allocation25] sm:$0xff]   ;;  %v4917_v24 = vld [vmem:[#allocation25 + $0x8] sm:$0xff]  }
 0xef0   : > { %4582 = vmatprep.subr.bf16.mxu1 %v4916_v41 }
 0xef1   : > { %4579 = vmatmul.mubr.msk.bf16.gmra.mrb[72].mxu0 %vm832_vm0, %v3314_v30  ;;  %4583 = vmatpush3.bf16.msra.mxu1 %v4916_v41 }
 0xef2   : > { %4584 = vmatprep.subr.bf16.mxu1 %v4917_v24 }
 0xef5   : > { %4585 = vmatpush3.bf16.msra.mxu1 %v4917_v24 }
 0xf88   : > { %v4576_v51 = vpop.f32.mrb[68].mxu0 }
 0xf89   : > { %v3384_v28 = vpop.f32.mrb[69].mxu0  ;;  %v3393_v52 = vadd.f32 %v4576_v51, %v4204_v55 }
 0xf8a   : > { %v3385_v29 = vadd.f32 %v4204_v55, %v3384_v28  ;;  %v4577_v33 = vpop.f32.mrb[70].mxu0 }
 0xf8b   : > { %v3387_v40 = vpop.f32.mrb[71].mxu0  ;;  %v7013_v42 = vadd.f32 %v5103_v44, %v3393_v52  ;;  %v3396_v34 = vadd.f32 %v4577_v33, %v4204_v55 }
 0xf8c   : > { %v7010_v0 = vadd.f32 %v5102_v59, %v3385_v29  ;;  %v3388_v36 = vadd.f32 %v4204_v55, %v3387_v40 }
 0xf8d   : > { %v7023_v61 = vadd.f32 %v5105_v9, %v3396_v34  ;;  %v3429_v60 = vsel %vm832_vm0, %v7013_v42, 0.0 }
 0xf8e   : > { %v7016_v62 = vadd.f32 %v5104_v63, %v3388_v36  ;;  %v3423_v1 = vsel %vm832_vm0, %v7010_v0, 0.0 }
 0xf8f   : > { %3424 = vadd.xlane.f32.xlu0 %v3423_v1  ;;  %v3432_v46 = vsel %vm832_vm0, %v7023_v61, 0.0 }
 0xf90   : > { %v3426_v7 = vsel %vm832_vm0, %v7016_v62, 0.0 }
 0xf91   : > { %3427 = vadd.xlane.f32.xlu1 %v3426_v7 }
 0xf93   : > { %3430 = vadd.xlane.f32.xlu0 %v3429_v60 }
 0xf97   : > { %3433 = vadd.xlane.f32.xlu0 %v3432_v46 }
 0xfc4   : > { %v4580_v32 = vpop.f32.mrb[72].mxu0 }
 0xfc5   : > { %v3409_v47 = vadd.f32 %v4580_v32, %v4204_v55  ;;  %v3400_v5 = vpop.f32.mrb[73].mxu0 }
 0xfc6   : > { %v3401_v54 = vadd.f32 %v4204_v55, %v3400_v5  ;;  %v4581_v19 = vpop.f32.mrb[74].mxu0  ;;  %v4918_v5 = vld [vmem:[#allocation28] sm:$0xff]  }
 0xfc7   : > { %v3412_v53 = vadd.f32 %v4581_v19, %v4204_v55  ;;  %v3403_v13 = vpop.f32.mrb[75].mxu0  ;;  %v7033_v48 = vadd.f32 %v5107_v4, %v3409_v47  ;;  %4594 = vmatprep.subr.bf16.mxu0 %v4918_v5 }
 0xfc8   : > { %v7030_v56 = vadd.f32 %v5106_v25, %v3401_v54  ;;  %v3404_v23 = vadd.f32 %v4204_v55, %v3403_v13  ;;  %v4919_v54 = vld [vmem:[#allocation28 + $0x8] sm:$0xff]   ;;  %4595 = vmatpush3.bf16.msra.mxu0 %v4918_v5 }
 0xfc9   : > { %v7041_v3 = vadd.f32 %v5109_v57, %v3412_v53  ;;  %v3441_v49 = vsel %vm832_vm0, %v7033_v48, 0.0  ;;  %4596 = vmatprep.subr.bf16.mxu0 %v4919_v54 }
 0xfca   : > { %v7036_v58 = vadd.f32 %v5108_v12, %v3404_v23  ;;  %v3435_v2 = vsel %vm832_vm0, %v7030_v56, 0.0 }
 0xfcb   : > { %3436 = vadd.xlane.f32.xlu0 %v3435_v2  ;;  %v3444_v15 = vsel %vm832_vm0, %v7041_v3, 0.0 }
 0xfcc   : > { %v3438_v50 = vsel %vm832_vm0, %v7036_v58, 0.0  ;;  %4597 = vmatpush3.bf16.msra.mxu0 %v4919_v54 }
 0xfcd   : > { %3439 = vadd.xlane.f32.xlu1 %v3438_v50 }
 0xfcf   : > { %3442 = vadd.xlane.f32.xlu0 %v3441_v49 }
 0xfd1   : > { %3445 = vadd.xlane.f32.xlu1 %v3444_v15 }
0x101c   : > { %v3425_v21 = vpop.xlane.xlu0 %3424 }
0x101d   : > { %v3447_v39 = vmul.f32 0.03125, %v3425_v21 }
0x101e   : > { %v3428_v35 = vpop.xlane.xlu1 %3427 }
0x101f   : > { %v7050_v17 = vsub.f32 %v7010_v0, %v3447_v39  ;;  %v3448_v8 = vmul.f32 0.03125, %v3428_v35  ;;  %v4211_v39 = vld [vmem:[#allocation22] ss:$0 sm:$0xff] }
0x1020   : > { %v3431_v6 = vpop.xlane.xlu0 %3430 }
0x1021   : > { %v7053_v26 = vsub.f32 %v7016_v62, %v3448_v8  ;;  %v3449_v38 = vmul.f32 0.03125, %v3431_v6  ;;  %v3463_v20 = vmul.f32 %v7050_v17, %v7050_v17 }
0x1023   : > { %v7058_v22 = vsub.f32 %v7013_v42, %v3449_v38  ;;  %v3471_v45 = vsel %vm832_vm0, %v3463_v20, 0.0  ;;  %v3464_v31 = vmul.f32 %v7053_v26, %v7053_v26 }
0x1024   : > { %3472 = vadd.xlane.f32.xlu0 %v3471_v45  ;;  %v3434_v16 = vpop.xlane.xlu0 %3433  ;;  %v4212_v45 = vld [vmem:[#allocation23] ss:$0 sm:$0xff] }
0x1025   : > { %v3450_v18 = vmul.f32 0.03125, %v3434_v16  ;;  %v3474_v27 = vsel %vm832_vm0, %v3464_v31, 0.0  ;;  %v3465_v43 = vmul.f32 %v7058_v22, %v7058_v22 }
0x1026   : > { %3475 = vadd.xlane.f32.xlu1 %v3474_v27 }
0x1027   : > { %v7067_v11 = vsub.f32 %v7023_v61, %v3450_v18  ;;  %v3477_v14 = vsel %vm832_vm0, %v3465_v43, 0.0 }
0x1028   : > { %3478 = vadd.xlane.f32.xlu0 %v3477_v14 }
0x1029   : > { %v3466_v10 = vmul.f32 %v7067_v11, %v7067_v11 }
0x102b   : > { %v3480_v37 = vsel %vm832_vm0, %v3466_v10, 0.0 }
0x102c   : > { %3481 = vadd.xlane.f32.xlu1 %v3480_v37 }
0x1058   : > { %v3437_v30 = vpop.xlane.xlu0 %3436 }
0x1059   : > { %v3451_v55 = vmul.f32 0.03125, %v3437_v30 }
0x105a   : > { %v3440_v51 = vpop.xlane.xlu1 %3439 }
0x105b   : > { %v7074_v28 = vsub.f32 %v7030_v56, %v3451_v55  ;;  %v3452_v52 = vmul.f32 0.03125, %v3440_v51 }
0x105c   : > { %v3443_v29 = vpop.xlane.xlu0 %3442 }
0x105d   : > { %v7077_v33 = vsub.f32 %v7036_v58, %v3452_v52  ;;  %v3453_v40 = vmul.f32 0.03125, %v3443_v29  ;;  %v3467_v59 = vmul.f32 %v7074_v28, %v7074_v28 }
0x105e   : > { %v3446_v36 = vpop.xlane.xlu1 %3445 }
0x105f   : > { %v7082_v44 = vsub.f32 %v7033_v48, %v3453_v40  ;;  %v3454_v34 = vmul.f32 0.03125, %v3446_v36  ;;  %v3483_v63 = vsel %vm832_vm0, %v3467_v59, 0.0  ;;  %v3468_v1 = vmul.f32 %v7077_v33, %v7077_v33 }
0x1060   : > { %3484 = vadd.xlane.f32.xlu0 %v3483_v63 }
0x1061   : > { %v7088_v7 = vsub.f32 %v7041_v3, %v3454_v34  ;;  %v3486_v9 = vsel %vm832_vm0, %v3468_v1, 0.0  ;;  %v3469_v60 = vmul.f32 %v7082_v44, %v7082_v44 }
0x1062   : > { %3487 = vadd.xlane.f32.xlu1 %v3486_v9 }
0x1063   : > { %v3489_v46 = vsel %vm832_vm0, %v3469_v60, 0.0  ;;  %v3470_v32 = vmul.f32 %v7088_v7, %v7088_v7 }
0x1064   : > { %3490 = vadd.xlane.f32.xlu0 %v3489_v46 }
0x1065   : > { %v3492_v47 = vsel %vm832_vm0, %v3470_v32, 0.0 }
0x1066   : > { %3493 = vadd.xlane.f32.xlu1 %v3492_v47 }
0x10b1   : > { %v3473_v19 = vpop.xlane.xlu0 %3472 }
0x10b2   : > { %v3495_v53 = vmul.f32 0.03125, %v3473_v19 }
0x10b3   : > { %v3476_v13 = vpop.xlane.xlu1 %3475 }
0x10b4   : > { %v3503_v25 = vadd.f32 1e-05, %v3495_v53  ;;  %v3496_v23 = vmul.f32 0.03125, %v3476_v13 }
0x10b5   : > { %v3479_v4 = vpop.xlane.xlu0 %3478 }
0x10b6   : > { %5070 = vrsqrt.f32 %v3503_v25  ;;  %v3504_v12 = vadd.f32 1e-05, %v3496_v23  ;;  %v3497_v2 = vmul.f32 0.03125, %v3479_v4 }
0x10b8   : > { %5072 = vrsqrt.f32 %v3504_v12  ;;  %v3505_v57 = vadd.f32 1e-05, %v3497_v2 }
0x10b9   : > { %v3482_v50 = vpop.xlane.xlu1 %3481 }
0x10ba   : > { %5074 = vrsqrt.f32 %v3505_v57  ;;  %v3498_v49 = vmul.f32 0.03125, %v3482_v50  ;;  %v4922_v50 = vld [vmem:[#allocation28 + $0x20] sm:$0xff]  }
0x10bc   : > { %v3506_v15 = vadd.f32 1e-05, %v3498_v49  ;;  %v4924_v49 = vld [vmem:[#allocation28 + $0x30] sm:$0xff]  }
0x10be   : > { %5076 = vrsqrt.f32 %v3506_v15  ;;  %v4925_v15 = vld [vmem:[#allocation28 + $0x38] sm:$0xff]  }
0x10c0   : > { %v5071_v21 = vpop.eup %5070 }
0x10c1   : > { %v3519_v35 = vmul.f32 %v5071_v21, %v7050_v17  ;;  %v4213_v21 = vld [vmem:[#allocation26] ss:$0 sm:$0xff] }
0x10c2   : > { %v5073_v8 = vpop.eup %5072 }
0x10c3   : > { %v3520_v6 = vmul.f32 %v5073_v8, %v7053_v26  ;;  %v3534_v38 = vmul.f32 %v4211_v39, %v3519_v35 }
0x10c4   : > { %v5075_v20 = vpop.eup %5074 }
0x10c5   : > { %v3521_v31 = vmul.f32 %v5075_v20, %v7058_v22  ;;  %v3535_v16 = vmul.f32 %v4211_v39, %v3520_v6  ;;  %v3549_v18 = vadd.f32 %v4212_v45, %v3534_v38 }
0x10c7   : > { %v3550_v27 = vadd.f32 %v4212_v45, %v3535_v16  ;;  %v3536_v14 = vmul.f32 %v4211_v39, %v3521_v31 }
0x10c8   : > { %v5077_v43 = vpop.eup %5076 }
0x10c9   : > { %v3522_v10 = vmul.f32 %v5077_v43, %v7067_v11  ;;  %v3557_v37 = vpack.c.bf16 %v3550_v27, %v3549_v18  ;;  %v3551_v17 = vadd.f32 %v4212_v45, %v3536_v14 }
0x10cb   : > { %v3537_v41 = vmul.f32 %v4211_v39, %v3522_v10  ;;  %4586 = vmatprep.mubr.msk.bf16.mxu1 %vm832_vm0, %v3557_v37 }
0x10cd   : > { %v3552_v24 = vadd.f32 %v4212_v45, %v3537_v41 }
0x10cf   : > { %v3558_v30 = vpack.c.bf16 %v3552_v24, %v3551_v17 }
0x10d1   : > { %4587 = vmatmul.mubr.msk.bf16.vlgmr.msra.gmra.mrb[84].mxu1 %vm832_vm0, %v3558_v30 }
0x10ed   : > { %v3485_v26 = vpop.xlane.xlu0 %3484 }
0x10ee   : > { %v3499_v55 = vmul.f32 0.03125, %v3485_v26 }
0x10ef   : > { %v3488_v51 = vpop.xlane.xlu1 %3487 }
0x10f0   : > { %v3507_v22 = vadd.f32 1e-05, %v3499_v55  ;;  %v3500_v52 = vmul.f32 0.03125, %v3488_v51 }
0x10f1   : > { %v3491_v29 = vpop.xlane.xlu0 %3490 }
0x10f2   : > { %5078 = vrsqrt.f32 %v3507_v22  ;;  %v3508_v40 = vadd.f32 1e-05, %v3500_v52  ;;  %v3501_v59 = vmul.f32 0.03125, %v3491_v29 }
0x10f3   : > { %v3494_v36 = vpop.xlane.xlu1 %3493 }
0x10f4   : > { %5080 = vrsqrt.f32 %v3508_v40  ;;  %v3509_v11 = vadd.f32 1e-05, %v3501_v59  ;;  %v3502_v34 = vmul.f32 0.03125, %v3494_v36 }
0x10f6   : > { %5082 = vrsqrt.f32 %v3509_v11  ;;  %v3510_v63 = vadd.f32 1e-05, %v3502_v34 }
0x10f8   : > { %5084 = vrsqrt.f32 %v3510_v63 }
0x10fc   : > { %v5079_v1 = vpop.eup %5078 }
0x10fd   : > { %v3523_v9 = vmul.f32 %v5079_v1, %v7074_v28 }
0x10fe   : > { %v5081_v60 = vpop.eup %5080 }
0x10ff   : > { %v3524_v46 = vmul.f32 %v5081_v60, %v7077_v33  ;;  %v3538_v32 = vmul.f32 %v4211_v39, %v3523_v9  ;;  %v4920_v33 = vld [vmem:[#allocation28 + $0x10] sm:$0xff]  }
0x1100   : > { %v5083_v47 = vpop.eup %5082  ;;  %4598 = vmatprep.subr.bf16.mxu0 %v4920_v33 }
0x1101   : > { %v3525_v5 = vmul.f32 %v5083_v47, %v7082_v44  ;;  %v3539_v54 = vmul.f32 %v4211_v39, %v3524_v46  ;;  %v3553_v13 = vadd.f32 %v4212_v45, %v3538_v32  ;;  %4599 = vmatpush3.bf16.msra.mxu0 %v4920_v33  ;;  %v4921_v44 = vld [vmem:[#allocation28 + $0x18] sm:$0xff]  }
0x1102   : > { %v5085_v19 = vpop.eup %5084  ;;  %4600 = vmatprep.subr.bf16.mxu0 %v4921_v44 }
0x1103   : > { %v3526_v53 = vmul.f32 %v5085_v19, %v7088_v7  ;;  %v3554_v25 = vadd.f32 %v4212_v45, %v3539_v54  ;;  %v3540_v23 = vmul.f32 %v4211_v39, %v3525_v5  ;;  %v4923_v7 = vld [vmem:[#allocation28 + $0x28] sm:$0xff]  }
0x1105   : > { %v3559_v4 = vpack.c.bf16 %v3554_v25, %v3553_v13  ;;  %v3541_v12 = vmul.f32 %v4211_v39, %v3526_v53  ;;  %v3555_v2 = vadd.f32 %v4212_v45, %v3540_v23  ;;  %4601 = vmatpush3.bf16.msra.mxu0 %v4921_v44 }
0x1106   : > { %4602 = vmatprep.subr.bf16.mxu0 %v4922_v50 }
0x1107   : > { %4590 = vmatprep.mubr.msk.bf16.mxu1 %vm832_vm0, %v3559_v4  ;;  %v3556_v28 = vadd.f32 %v4212_v45, %v3541_v12 }
0x1109   : > { %v3560_v57 = vpack.c.bf16 %v3556_v28, %v3555_v2  ;;  %4603 = vmatpush3.bf16.msra.mxu0 %v4922_v50 }
0x110a   : > { %4604 = vmatprep.subr.bf16.mxu0 %v4923_v7 }
0x110b   : > { %4591 = vmatmul.mubr.msk.bf16.gmra.mrb[88].mxu1 %vm832_vm0, %v3560_v57 }
0x110d   : > { %4605 = vmatpush3.bf16.msra.mxu0 %v4923_v7 }
0x110e   : > { %4606 = vmatprep.subr.bf16.mxu0 %v4924_v49 }
0x1111   : > { %4607 = vmatpush3.bf16.msra.mxu0 %v4924_v49 }
0x1112   : > { %4608 = vmatprep.subr.bf16.mxu0 %v4925_v15 }
0x1115   : > { %4609 = vmatpush3.bf16.msra.mxu0 %v4925_v15 }
0x11a4   : > { %v4588_v39 = vpop.f32.mrb[84].mxu1 }
0x11a5   : > { %v3639_v35 = vadd.f32 %v4588_v39, %v4213_v21  ;;  %v3630_v8 = vpop.f32.mrb[85].mxu1 }
0x11a6   : > { %v3631_v6 = vadd.f32 %v4213_v21, %v3630_v8  ;;  %v4589_v38 = vpop.f32.mrb[86].mxu1 }
0x11a7   : > { %v3671_v20 = vmul.f32 0.70710677, %v3639_v35  ;;  %v3642_v45 = vadd.f32 %v4589_v38, %v4213_v21  ;;  %v3633_v31 = vpop.f32.mrb[87].mxu1  ;;  %v3663_v30 = vmul.f32 0.5, %v3639_v35  ;;  %v4220_v38 = vld [vmem:[#allocation29] ss:$0 sm:$0xff] }
0x11a8   : > { %v3669_v16 = vmul.f32 0.70710677, %v3631_v6  ;;  %v3634_v18 = vadd.f32 %v4213_v21, %v3633_v31  ;;  %v3661_v51 = vmul.f32 0.5, %v3631_v6 }
0x11a9   : > { %5086 = verf.f32 %v3671_v20  ;;  %v3672_v27 = vmul.f32 0.70710677, %v3642_v45  ;;  %v3664_v26 = vmul.f32 0.5, %v3642_v45 }
0x11aa   : > { %5088 = verf.f32 %v3669_v16  ;;  %v3670_v43 = vmul.f32 0.70710677, %v3634_v18  ;;  %v3662_v22 = vmul.f32 0.5, %v3634_v18 }
0x11ab   : > { %5090 = verf.f32 %v3672_v27 }
0x11ac   : > { %5092 = verf.f32 %v3670_v43 }
0x11b3   : > { %v5087_v14 = vpop.eup %5086 }
0x11b4   : > { %v5089_v10 = vpop.eup %5088  ;;  %v3687_v37 = vadd.f32 1.0, %v5087_v14 }
0x11b5   : > { %v5091_v41 = vpop.eup %5090  ;;  %v3685_v17 = vadd.f32 1.0, %v5089_v10 }
0x11b6   : > { %v5093_v24 = vpop.eup %5092  ;;  %v3688_v55 = vadd.f32 1.0, %v5091_v41  ;;  %v3695_v29 = vmul.f32 %v3687_v37, %v3663_v30 }
0x11b7   : > { %v3686_v52 = vadd.f32 1.0, %v5093_v24  ;;  %v3693_v59 = vmul.f32 %v3685_v17, %v3661_v51 }
0x11b8   : > { %v3696_v40 = vmul.f32 %v3688_v55, %v3664_v26 }
0x11b9   : > { %v3694_v36 = vmul.f32 %v3686_v52, %v3662_v22 }
0x11ba   : > { %v3702_v11 = vpack.c.bf16 %v3696_v40, %v3695_v29 }
0x11bb   : > { %v3701_v34 = vpack.c.bf16 %v3694_v36, %v3693_v59 }
0x11bd   : > { %4610 = vmatprep.mubr.bf16.mxu0 %v3701_v34 }
0x11be   : > { %4611 = vmatmul.mubr.bf16.vlgmr.msra.gmra.mrb[76].mxu0 %v3702_v11 }
0x11de   : > { %v4592_v63 = vpop.f32.mrb[88].mxu1 }
0x11df   : > { %v3655_v1 = vadd.f32 %v4592_v63, %v4213_v21  ;;  %v3646_v9 = vpop.f32.mrb[89].mxu1 }
0x11e0   : > { %v3647_v60 = vadd.f32 %v4213_v21, %v3646_v9  ;;  %v4593_v46 = vpop.f32.mrb[90].mxu1 }
0x11e1   : > { %v3675_v32 = vmul.f32 0.70710677, %v3655_v1  ;;  %v3658_v47 = vadd.f32 %v4593_v46, %v4213_v21  ;;  %v3649_v5 = vpop.f32.mrb[91].mxu1  ;;  %v3667_v57 = vmul.f32 0.5, %v3655_v1 }
0x11e2   : > { %v3673_v54 = vmul.f32 0.70710677, %v3647_v60  ;;  %v3650_v19 = vadd.f32 %v4213_v21, %v3649_v5  ;;  %v3665_v50 = vmul.f32 0.5, %v3647_v60 }
0x11e3   : > { %5094 = verf.f32 %v3675_v32  ;;  %v3676_v53 = vmul.f32 0.70710677, %v3658_v47  ;;  %v3668_v33 = vmul.f32 0.5, %v3658_v47 }
0x11e4   : > { %5096 = verf.f32 %v3673_v54  ;;  %v3674_v13 = vmul.f32 0.70710677, %v3650_v19  ;;  %v3666_v7 = vmul.f32 0.5, %v3650_v19 }
0x11e5   : > { %5098 = verf.f32 %v3676_v53 }
0x11e6   : > { %5100 = verf.f32 %v3674_v13 }
0x11ed   : > { %v5095_v25 = vpop.eup %5094 }
0x11ee   : > { %v5097_v23 = vpop.eup %5096  ;;  %v3691_v4 = vadd.f32 1.0, %v5095_v25 }
0x11ef   : > { %v5099_v12 = vpop.eup %5098  ;;  %v3689_v2 = vadd.f32 1.0, %v5097_v23 }
0x11f0   : > { %v5101_v28 = vpop.eup %5100  ;;  %v3692_v44 = vadd.f32 1.0, %v5099_v12  ;;  %v3699_v15 = vmul.f32 %v3691_v4, %v3667_v57 }
0x11f1   : > { %v3690_v49 = vadd.f32 1.0, %v5101_v28  ;;  %v3697_v39 = vmul.f32 %v3689_v2, %v3665_v50 }
0x11f2   : > { %v3700_v21 = vmul.f32 %v3692_v44, %v3668_v33 }
0x11f3   : > { %v3698_v35 = vmul.f32 %v3690_v49, %v3666_v7 }
0x11f4   : > { %v3704_v8 = vpack.c.bf16 %v3700_v21, %v3699_v15 }
0x11f5   : > { %v3703_v6 = vpack.c.bf16 %v3698_v35, %v3697_v39 }
0x11f7   : > { %4614 = vmatprep.mubr.bf16.mxu0 %v3703_v6 }
0x11f8   : > { %4615 = vmatmul.mubr.bf16.gmra.mrb[80].mxu0 %v3704_v8 }
0x1291   : > { %v4612_v20 = vpop.f32.mrb[76].mxu0 }
0x1292   : > { %v3819_v45 = vadd.f32 %v4612_v20, %v4220_v38  ;;  %v3810_v31 = vpop.f32.mrb[77].mxu0 }
0x1293   : > { %v3811_v16 = vadd.f32 %v4220_v38, %v3810_v31  ;;  %v4613_v18 = vpop.f32.mrb[78].mxu0 }
0x1294   : > { %v3843_v27 = vadd.f32 %v3819_v45, %v7013_v42  ;;  %v3822_v43 = vadd.f32 %v4613_v18, %v4220_v38  ;;  %v3813_v14 = vpop.f32.mrb[79].mxu0 }
0x1295   : > { %v3841_v10 = vadd.f32 %v3811_v16, %v7010_v0  ;;  %v3814_v37 = vadd.f32 %v4220_v38, %v3813_v14 }
0x1296   : > { %3851 = vst.msk [vmem:[%s820_s27 + $0x10] sm:$0xff] %vm832_vm0, %v3843_v27  ;;  %v3844_v41 = vadd.f32 %v3822_v43, %v7023_v61 }
0x1297   : > { %3849 = vst.msk [vmem:[%s820_s27] sm:$0xff] %vm832_vm0, %v3841_v10  ;;  %v3842_v17 = vadd.f32 %v3814_v37, %v7016_v62 }
0x1298   : > { %3852 = vst.msk [vmem:[%s820_s27 + $0x18] sm:$0xff] %vm832_vm0, %v3844_v41 }
0x1299   : > { %3850 = vst.msk [vmem:[%s820_s27 + $0x8] sm:$0xff] %vm832_vm0, %v3842_v17 }
0x12cb   : > { %v4616_v42 = vpop.f32.mrb[80].mxu0 }
0x12cc   : > { %v3835_v24 = vadd.f32 %v4616_v42, %v4220_v38  ;;  %v3826_v30 = vpop.f32.mrb[81].mxu0 }
0x12cd   : > { %v3827_v26 = vadd.f32 %v4220_v38, %v3826_v30  ;;  %v4617_v0 = vpop.f32.mrb[82].mxu0 }
0x12ce   : > { %v3847_v55 = vadd.f32 %v3835_v24, %v7033_v48  ;;  %v3838_v51 = vadd.f32 %v4617_v0, %v4220_v38  ;;  %v3829_v61 = vpop.f32.mrb[83].mxu0 }
0x12cf   : > { %v3845_v22 = vadd.f32 %v3827_v26, %v7030_v56  ;;  %v3830_v62 = vadd.f32 %v4220_v38, %v3829_v61 }
0x12d0   : > { %3855 = vst.msk [vmem:[%s820_s27 + $0x30] sm:$0xff] %vm832_vm0, %v3847_v55  ;;  %v3848_v52 = vadd.f32 %v3838_v51, %v7041_v3 }
0x12d1   : > { %3853 = vst.msk [vmem:[%s820_s27 + $0x20] sm:$0xff] %vm832_vm0, %v3845_v22  ;;  %v3846_v48 = vadd.f32 %v3830_v62, %v7036_v58 }
0x12d2   : > { %3856 = vst.msk [vmem:[%s820_s27 + $0x38] sm:$0xff] %vm832_vm0, %v3848_v52 }
0x12d3   : > { %3854 = vst.msk [vmem:[%s820_s27 + $0x28] sm:$0xff] %vm832_vm0, %v3846_v48 }
0x12d4   : > { %5629 = shalt.err (!%p5626_p3)
}
0x12d5   : > { %s5630_s27 = scalar_lea.hbm %s7127_s28, 1024  ;;  %s5634_s1 = scalar_lea.hbm %s7272_s0, 2048 }
0x12d6   : > { %p5631_p2 = scmp.ne.s32.totalorder %s7127_s28, %s5630_s27  ;;  %p5635_p11 = scmp.lt.u32.totalorder %s7127_s28, %s7272_s0 }
0x12d7   : > { %p5636_p12 = scmp.lt.u32.totalorder %s5634_s1, %s5630_s27  ;;  %p5638_p5 = scmp.lt.u32.totalorder %s5630_s27, %s7127_s28 }
0x12d8   : > { %p5632_p8 = pnand %p5631_p2, %p7273_p9 }
0x12d9   : > { %p5637_p0 = por %p5636_p12, %p5635_p11 }
0x12da   : > { %p5633_p6 = pneg %p5632_p8 }
0x12db   : > { %p5639_p7 = por %p5638_p5, %p5637_p0 }
0x12dd   : > { %p5640_p10 = pnand %p5639_p7, %p5633_p6 }
0x12df   : > { %5643 = shalt.err (!%p5640_p10)
}
0x12e0   : > { %s5751_s23 = smov 128   ;;  %s7274_s18 = scalar_lea.sflag [#allocation4], %s6357_s4 }
0x12e1   : > { %4688 = dma.vmem_to_hbm [thread:$0]  (%p7273_p9), %s7131_s29, 1024, %s7127_s28, %s7274_s18, %s5751_s23, %s5751_s23, %s5747_s21  }
0x12e2 PF: > { %s7275_s24 = sld [smem:[#allocation43_spill]]  ;;  %s7276_s3 = sld [smem:[#allocation46_spill]] }
0x12e3   : > { %p7277_p4 = scmp.ne.s32.totalorder %s7246_s19, 0 }
0x12e8   : > { %s3886_s20 = sand.u32 1, %s7275_s24   ;;  %p7278_p13 = scmp.ge.s32.totalorder %s7276_s3, 2 }
0x12e9   : > { %s3887_s27 = scalar_lea.sflag [#allocation4], %s3886_s20 }
0x12ea   : > { %p4747_p1 = pnand %p7278_p13, %p7277_p4 }
0x12ec   : > { %5701 = dma.done.wait (!%p4747_p1), %s3887_s27, 1024  }
0x12ed   : > { %5703 = vsyncadd (!%p4747_p1), %s3887_s27, 4294966272  ;;  %s7279_s27 = sld [smem:[#allocation44_spill]]  ;;  %s7280_s28 = sld [smem:[#allocation45_spill]] }
0x12ee   : > { %p40_p3 = scmp.ge.s32.totalorder %s6281_s2, 4   ;;  %s7281_s29 = smov %s6293_s22 }
0x12ef   : > { %s7282_s30 = smov %s6281_s2 }
0x12f0   :  { %42 = sbr.rel (!%p40_p3) target bundleno = 21 (0x15), region = 205 }
0x12f7   :  { %3892 = vsyncpa [#allocation3], 1 }
0x12f8   :  { %3894 = vsyncpa [#allocation3 + $0x1], 1 }
0x12f9   :  { %3895 = vsyncpa [#allocation6], 1 }
0x12fa   :  { %3896 = vsyncpa [#allocation9], 1 }
0x12fb   :  { %3897 = vsyncpa [#allocation12], 1 }
0x12fc   :  { %3898 = vsyncpa [#allocation15], 1 }
0x12fd   :  { %3899 = vsyncpa [#allocation18], 1 }
0x12fe   :  { %3900 = vsyncpa [#allocation21], 1 }
0x12ff   :  { %3901 = vsyncpa [#allocation24], 1 }
0x1300   :  { %3902 = vsyncpa [#allocation27], 1 }
0x1301   :  { %3903 = vsyncpa [#allocation30], 1 }
0x1302   :  { %3904 = vsyncpa [#allocation4], 1 }
0x1303   :  { %3906 = vsyncpa [#allocation4 + $0x1], 1 }

</bundles_post_ra>
